<compile_context>
chip_gen: v7x
topology: tpu7x:2x2x1
jax: 0.10.0
libtpu: 0.0.40
codegen_flags: <defaults>
</compile_context>

<pallas_src>
import numpy as np
import jax
import jax.numpy as jnp
from jax import lax
from jax.experimental import pallas as pl
from jax.experimental.pallas import tpu as pltpu


def _decoder_kernel(
    bs_ref,                                  # SMEM (T,) int32 -- active batch per step
    visual_ref,                              # (B, R, V)
    vis_mean_ref,                            # (B, V)    mean over regions (loop-invariant)
    att_fea_ref,                             # (B, R, A) = visual @ w_vw + att_bias (loop-invariant)
    wemb_ref,                                # (T, B, E) word embeddings, time-major
    joint_ref,                               # (B, M)
    w_ih_vis_ref, w_ih_emb_ref,              # (V, 4H), (E, 4H)
    w_hh_ref, b_lstm_ref,                    # (H, 4H), (1, 4H)
    w_inith_ref, b_inith_ref,                # (M, H), (1, H)
    w_initc_ref, b_initc_ref,                # (M, H), (1, H)
    w_hw_ref, w_w_ref,                       # (H, A), (1, 1, A)
    w_fc_ref, b_fc_ref,                      # (H, VOCP), (1, VOCP)
    pred_ref,                                # out: (T, B, VOCP)
):
    B = joint_ref.shape[0]
    H = w_hh_ref.shape[0]
    T = pred_ref.shape[0]
    f32 = jnp.float32

    # ---- loop-invariant loads (issued once) ----
    visual = visual_ref[...]
    att_fea = att_fea_ref[...]
    w_hw = w_hw_ref[...]
    w_w = w_w_ref[...]
    w_ih_vis = w_ih_vis_ref[...]
    w_ih_emb = w_ih_emb_ref[...]
    w_hh = w_hh_ref[...]
    b_lstm = b_lstm_ref[...]
    w_fc = w_fc_ref[...]
    b_fc = b_fc_ref[...]

    # ---- get_start_states(joint) ----
    j = joint_ref[...]
    h = jnp.dot(j, w_inith_ref[...], preferred_element_type=f32) + b_inith_ref[...]
    c = jnp.dot(j, w_initc_ref[...], preferred_element_type=f32) + b_initc_ref[...]

    def lstm_fc(feas, words, h, c):
        # split-weight form: no lane-axis concat of [feas, words]
        gates = (jnp.dot(feas, w_ih_vis, preferred_element_type=f32)
                 + jnp.dot(words, w_ih_emb, preferred_element_type=f32)
                 + jnp.dot(h, w_hh, preferred_element_type=f32)
                 + b_lstm)                                      # (B, 4H), gate order [i,f,g,o]
        i_g = jax.nn.sigmoid(gates[:, 0 * H:1 * H])
        f_g = jax.nn.sigmoid(gates[:, 1 * H:2 * H])
        g_g = jnp.tanh(gates[:, 2 * H:3 * H])
        o_g = jax.nn.sigmoid(gates[:, 3 * H:4 * H])
        c_new = f_g * c + i_g * g_g
        h_new = o_g * jnp.tanh(c_new)
        logits = jnp.dot(h_new, w_fc, preferred_element_type=f32) + b_fc   # (B, VOCP)
        return h_new, c_new, logits

    def masked_commit(t, h, c, h_new, c_new, logits):
        # rows >= active batch keep stale state; their predicts stay zero for this step
        bs = bs_ref[t]
        active = lax.broadcasted_iota(jnp.int32, (B, 1), 0) < bs
        pred_ref[t] = jnp.where(active, logits, 0.0)
        return jnp.where(active, h_new, h), jnp.where(active, c_new, c)

    # ---- step 0: mean-pooled visual features (no attention) ----
    h_new, c_new, logits0 = lstm_fc(vis_mean_ref[...], wemb_ref[0], h, c)
    h, c = masked_commit(0, h, c, h_new, c_new, logits0)

    # ---- steps 1..T-1: soft attention over the 36 regions ----
    def body(t, carry):
        h, c = carry
        att_h = jnp.dot(h, w_hw, preferred_element_type=f32)             # (B, A)
        att_full = jnp.maximum(att_fea + att_h[:, None, :], 0.0)         # (B, R, A)
        score = jnp.sum(att_full * w_w, axis=2, keepdims=True)           # (B, R, 1)
        m = jnp.max(score, axis=1, keepdims=True)                        # (B, 1, 1)
        e = jnp.exp(score - m)
        denom = jnp.sum(e, axis=1, keepdims=True)                        # (B, 1, 1)
        alpha = e * pl.reciprocal(denom, approx=True)                    # softmax over regions
        feas = jnp.sum(alpha * visual, axis=1)                           # (B, V) context
        h_new, c_new, logits = lstm_fc(feas, wemb_ref[t], h, c)
        return masked_commit(t, h, c, h_new, c_new, logits)

    lax.fori_loop(1, T, body, (h, c), unroll=True)


def decoder_forward(params, visual, joint, captions, lengths, max_len):
    """Returns predicts of shape (B, max_len - 1, vocab_size), matching Decoder.forward.

    Note: like the PyTorch module, assumes `lengths` is sorted in descending order."""
    B, R, V = visual.shape
    E = params["embed"].shape[1]
    H = params["w_init_h"].shape[1]
    VOC = params["w_fc"].shape[1]
    A = params["w_vw"].shape[1]
    T = max_len - 1
    VOCP = ((VOC + 127) // 128) * 128                    # lane-dense (128-multiple) vocab pad
    f32 = jnp.float32

    # glue / loop-invariant preprocessing (pure XLA): embedding gather (eval-mode dropout =
    # identity), mean pooling, the state-independent att_vw projection, active-batch sizes.
    wemb_t = jnp.transpose(params["embed"][captions[:, :T]], (1, 0, 2))      # (T, B, E)
    vis_mean = jnp.mean(visual, axis=1)                                      # (B, V)
    att_fea = (jnp.einsum("brv,va->bra", visual, params["w_vw"])
               + params["att_bias"][None, :, None]).astype(f32)              # (B, R, A)

    lengths_arr = jnp.asarray(lengths, jnp.int32)
    bs_per_step = jnp.sum(
        lengths_arr[None, :] > jnp.arange(T, dtype=jnp.int32)[:, None], axis=1
    ).astype(jnp.int32)                                                      # (T,)

    # parameter prep: split w_ih (kills the in-kernel concat), fold biases, pad fc to 128 lanes
    w_ih_vis = params["w_ih"][:V]
    w_ih_emb = params["w_ih"][V:]
    b_lstm = (params["b_ih"] + params["b_hh"]).reshape(1, 4 * H)
    b_init_h = params["b_init_h"].reshape(1, H)
    b_init_c = params["b_init_c"].reshape(1, H)
    w_fc_p = jnp.zeros((H, VOCP), f32).at[:, :VOC].set(params["w_fc"])
    b_fc_p = jnp.zeros((1, VOCP), f32).at[0, :VOC].set(params["b_fc"])
    w_w3 = params["w_w"].reshape(1, 1, A)

    operands = (
        visual, vis_mean, att_fea, wemb_t, joint,
        w_ih_vis, w_ih_emb, params["w_hh"], b_lstm,
        params["w_init_h"], b_init_h, params["w_init_c"], b_init_c,
        params["w_hw"], w_w3, w_fc_p, b_fc_p,
    )

    def full_spec(arr):
        nd = arr.ndim
        return pl.BlockSpec(arr.shape, lambda i, bs, _nd=nd: (0,) * _nd)

    grid_spec = pltpu.PrefetchScalarGridSpec(
        num_scalar_prefetch=1,
        grid=(1,),
        in_specs=[full_spec(a) for a in operands],
        out_specs=pl.BlockSpec((T, B, VOCP), lambda i, bs: (0, 0, 0)),
    )

    preds_tm = pl.pallas_call(
        _decoder_kernel,
        out_shape=jax.ShapeDtypeStruct((T, B, VOCP), f32),
        grid_spec=grid_spec,
        compiler_params=pltpu.CompilerParams(dimension_semantics=("arbitrary",)),
    )(bs_per_step, *operands)

    return jnp.transpose(preds_tm[:, :, :VOC], (1, 0, 2))   # (B, T, VOC)


def init_params(key, vis_dim, mm_dim, embed_dim, att_dim, decode_dim, vocab_size):
    ks = jax.random.split(key, 15)
    rnd = lambda k, shape: 0.1 * jax.random.normal(k, shape, jnp.float32)
    embed = rnd(ks[0], (vocab_size, embed_dim)).at[0].set(0.0)   # padding_idx=0
    return dict(
        embed=embed,
        w_init_h=rnd(ks[1], (mm_dim, decode_dim)), b_init_h=rnd(ks[2], (decode_dim,)),
        w_init_c=rnd(ks[3], (mm_dim, decode_dim)), b_init_c=rnd(ks[4], (decode_dim,)),
        w_ih=rnd(ks[5], (vis_dim + embed_dim, 4 * decode_dim)),
        w_hh=rnd(ks[6], (decode_dim, 4 * decode_dim)),
        b_ih=rnd(ks[7], (4 * decode_dim,)), b_hh=rnd(ks[8], (4 * decode_dim,)),
        w_fc=rnd(ks[9], (decode_dim, vocab_size)), b_fc=rnd(ks[10], (vocab_size,)),
        w_vw=rnd(ks[11], (vis_dim, att_dim)),
        w_hw=rnd(ks[12], (decode_dim, att_dim)),
        att_bias=rnd(ks[13], (36,)),
        w_w=rnd(ks[14], (att_dim,)),
    )


def reference_forward(params, visual, joint, captions, lengths, max_len):
    """Pure numpy reference matching the PyTorch forward (eval-mode dropout)."""
    p = {k: np.asarray(v, np.float32) for k, v in params.items()}
    visual = np.asarray(visual, np.float32)
    joint = np.asarray(joint, np.float32)
    captions = np.asarray(captions)
    B, R, V = visual.shape
    H = p["w_init_h"].shape[1]
    VOC = p["w_fc"].shape[1]
    T = max_len - 1
    sig = lambda x: 1.0 / (1.0 + np.exp(-x))

    emb = p["embed"][captions]
    h = joint @ p["w_init_h"] + p["b_init_h"]
    c = joint @ p["w_init_c"] + p["b_init_c"]
    feas = visual.mean(axis=1)
    preds = np.zeros((B, T, VOC), np.float32)
    for step in range(T):
        bs = int(np.sum(np.asarray(lengths) > step))
        if step != 0:
            vis_b = visual[:bs]
            att_fea = vis_b @ p["w_vw"]
            att_h = (h[:bs] @ p["w_hw"])[:, None, :]
            full = np.maximum(att_fea + att_h + p["att_bias"][None, :, None], 0.0)
            att_out = (full * p["w_w"][None, None, :]).sum(-1)
            att_out = att_out - att_out.max(axis=1, keepdims=True)
            e = np.exp(att_out)
            alpha = e / e.sum(axis=1, keepdims=True)
            feas = (vis_b * alpha[:, :, None]).sum(axis=1)
        words = emb[:bs, step, :]
        inp = np.concatenate([feas, words], axis=1)
        gates = inp @ p["w_ih"] + h[:bs] @ p["w_hh"] + p["b_ih"] + p["b_hh"]
        i_g = sig(gates[:, :H]); f_g = sig(gates[:, H:2 * H])
        g_g = np.tanh(gates[:, 2 * H:3 * H]); o_g = sig(gates[:, 3 * H:])
        c = f_g * c[:bs] + i_g * g_g
        h = o_g * np.tanh(c)
        preds[:bs, step, :] = h @ p["w_fc"] + p["b_fc"]
    return preds


if __name__ == "__main__":
    vis_dim, mm_dim, embed_dim = 32, 24, 16
    att_dim, decode_dim, vocab_size = 32, 32, 48
    B, R, max_len = 4, 36, 6          # R fixed at 36 by att_bias in the module

    key = jax.random.PRNGKey(0)
    kp, kv, kj, kc = jax.random.split(key, 4)
    params = init_params(kp, vis_dim, mm_dim, embed_dim, att_dim, decode_dim, vocab_size)

    visual = jax.random.normal(kv, (B, R, vis_dim), jnp.float32)
    joint = jax.random.normal(kj, (B, mm_dim), jnp.float32)
    captions = jax.random.randint(kc, (B, max_len), 0, vocab_size, jnp.int32)
    lengths = [6, 6, 4, 2]            # sorted descending, as the PyTorch code assumes

    preds = decoder_forward(params, visual, joint, captions, lengths, max_len)
    preds = jax.block_until_ready(preds)

    ref = reference_forward(params, visual, joint, captions, lengths, max_len)
    np.testing.assert_allclose(np.asarray(preds), ref, atol=2e-2, rtol=2e-2)
    print("KERNEL_OK")
</pallas_src>

<mosaic_0001>
module attributes {stable_mosaic.version = 11 : i64} {
  func.func @_decoder_kernel(%arg0: i32, %arg1: memref<5xi32, #tpu.memory_space<smem>>, %arg2: memref<4x36x32xf32, #tpu.memory_space<vmem>>, %arg3: memref<4x32xf32, #tpu.memory_space<vmem>>, %arg4: memref<4x36x32xf32, #tpu.memory_space<vmem>>, %arg5: memref<5x4x16xf32, #tpu.memory_space<vmem>>, %arg6: memref<4x24xf32, #tpu.memory_space<vmem>>, %arg7: memref<32x128xf32, #tpu.memory_space<vmem>>, %arg8: memref<16x128xf32, #tpu.memory_space<vmem>>, %arg9: memref<32x128xf32, #tpu.memory_space<vmem>>, %arg10: memref<1x128xf32, #tpu.memory_space<vmem>>, %arg11: memref<24x32xf32, #tpu.memory_space<vmem>>, %arg12: memref<1x32xf32, #tpu.memory_space<vmem>>, %arg13: memref<24x32xf32, #tpu.memory_space<vmem>>, %arg14: memref<1x32xf32, #tpu.memory_space<vmem>>, %arg15: memref<32x32xf32, #tpu.memory_space<vmem>>, %arg16: memref<1x1x32xf32, #tpu.memory_space<vmem>>, %arg17: memref<32x128xf32, #tpu.memory_space<vmem>>, %arg18: memref<1x128xf32, #tpu.memory_space<vmem>>, %arg19: memref<5x4x128xf32, #tpu.memory_space<vmem>>) attributes {dimension_semantics = [#tpu.dimension_semantics<arbitrary>], iteration_bounds = array<i64: 1>, scalar_prefetch = 1 : i64, scratch_operands = 0 : i64, tpu.core_type = #tpu.core_type<tc>, window_params = [{pipeline_mode = #tpu.pipeline_mode<synchronous>, transform_indices = @transform_0, window_bounds = array<i64: 4, 36, 32>}, {pipeline_mode = #tpu.pipeline_mode<synchronous>, transform_indices = @transform_1, window_bounds = array<i64: 4, 32>}, {pipeline_mode = #tpu.pipeline_mode<synchronous>, transform_indices = @transform_2, window_bounds = array<i64: 4, 36, 32>}, {pipeline_mode = #tpu.pipeline_mode<synchronous>, transform_indices = @transform_3, window_bounds = array<i64: 5, 4, 16>}, {pipeline_mode = #tpu.pipeline_mode<synchronous>, transform_indices = @transform_4, window_bounds = array<i64: 4, 24>}, {pipeline_mode = #tpu.pipeline_mode<synchronous>, transform_indices = @transform_5, window_bounds = array<i64: 32, 128>}, {pipeline_mode = #tpu.pipeline_mode<synchronous>, transform_indices = @transform_6, window_bounds = array<i64: 16, 128>}, {pipeline_mode = #tpu.pipeline_mode<synchronous>, transform_indices = @transform_7, window_bounds = array<i64: 32, 128>}, {pipeline_mode = #tpu.pipeline_mode<synchronous>, transform_indices = @transform_8, window_bounds = array<i64: 1, 128>}, {pipeline_mode = #tpu.pipeline_mode<synchronous>, transform_indices = @transform_9, window_bounds = array<i64: 24, 32>}, {pipeline_mode = #tpu.pipeline_mode<synchronous>, transform_indices = @transform_10, window_bounds = array<i64: 1, 32>}, {pipeline_mode = #tpu.pipeline_mode<synchronous>, transform_indices = @transform_11, window_bounds = array<i64: 24, 32>}, {pipeline_mode = #tpu.pipeline_mode<synchronous>, transform_indices = @transform_12, window_bounds = array<i64: 1, 32>}, {pipeline_mode = #tpu.pipeline_mode<synchronous>, transform_indices = @transform_13, window_bounds = array<i64: 32, 32>}, {pipeline_mode = #tpu.pipeline_mode<synchronous>, transform_indices = @transform_14, window_bounds = array<i64: 1, 1, 32>}, {pipeline_mode = #tpu.pipeline_mode<synchronous>, transform_indices = @transform_15, window_bounds = array<i64: 32, 128>}, {pipeline_mode = #tpu.pipeline_mode<synchronous>, transform_indices = @transform_16, window_bounds = array<i64: 1, 128>}, {pipeline_mode = #tpu.pipeline_mode<synchronous>, transform_indices = @transform_17, window_bounds = array<i64: 5, 4, 128>}]} {
    %c0 = arith.constant 0 : index
    %c0_0 = arith.constant 0 : index
    %c0_1 = arith.constant 0 : index
    %0 = vector.load %arg2[%c0, %c0_0, %c0_1] : memref<4x36x32xf32, #tpu.memory_space<vmem>>, vector<4x36x32xf32>
    %c0_2 = arith.constant 0 : index
    %c0_3 = arith.constant 0 : index
    %c0_4 = arith.constant 0 : index
    %1 = vector.load %arg4[%c0_2, %c0_3, %c0_4] : memref<4x36x32xf32, #tpu.memory_space<vmem>>, vector<4x36x32xf32>
    %c0_5 = arith.constant 0 : index
    %c0_6 = arith.constant 0 : index
    %2 = vector.load %arg15[%c0_5, %c0_6] : memref<32x32xf32, #tpu.memory_space<vmem>>, vector<32x32xf32>
    %c0_7 = arith.constant 0 : index
    %c0_8 = arith.constant 0 : index
    %c0_9 = arith.constant 0 : index
    %3 = vector.load %arg16[%c0_7, %c0_8, %c0_9] : memref<1x1x32xf32, #tpu.memory_space<vmem>>, vector<1x1x32xf32>
    %c0_10 = arith.constant 0 : index
    %c0_11 = arith.constant 0 : index
    %4 = vector.load %arg7[%c0_10, %c0_11] : memref<32x128xf32, #tpu.memory_space<vmem>>, vector<32x128xf32>
    %c0_12 = arith.constant 0 : index
    %c0_13 = arith.constant 0 : index
    %5 = vector.load %arg8[%c0_12, %c0_13] : memref<16x128xf32, #tpu.memory_space<vmem>>, vector<16x128xf32>
    %c0_14 = arith.constant 0 : index
    %c0_15 = arith.constant 0 : index
    %6 = vector.load %arg9[%c0_14, %c0_15] : memref<32x128xf32, #tpu.memory_space<vmem>>, vector<32x128xf32>
    %c0_16 = arith.constant 0 : index
    %c0_17 = arith.constant 0 : index
    %7 = vector.load %arg10[%c0_16, %c0_17] : memref<1x128xf32, #tpu.memory_space<vmem>>, vector<1x128xf32>
    %c0_18 = arith.constant 0 : index
    %c0_19 = arith.constant 0 : index
    %8 = vector.load %arg17[%c0_18, %c0_19] : memref<32x128xf32, #tpu.memory_space<vmem>>, vector<32x128xf32>
    %c0_20 = arith.constant 0 : index
    %c0_21 = arith.constant 0 : index
    %9 = vector.load %arg18[%c0_20, %c0_21] : memref<1x128xf32, #tpu.memory_space<vmem>>, vector<1x128xf32>
    %c0_22 = arith.constant 0 : index
    %c0_23 = arith.constant 0 : index
    %10 = vector.load %arg6[%c0_22, %c0_23] : memref<4x24xf32, #tpu.memory_space<vmem>>, vector<4x24xf32>
    %c0_24 = arith.constant 0 : index
    %c0_25 = arith.constant 0 : index
    %11 = vector.load %arg11[%c0_24, %c0_25] : memref<24x32xf32, #tpu.memory_space<vmem>>, vector<24x32xf32>
    %cst = arith.constant dense<0.000000e+00> : vector<4x32xf32>
    %12 = tpu.matmul %10, %11, %cst {dimension_numbers = #tpu.dot_dimension_numbers<[1], [0], [0], [1], [0, 0, 1, 1], [], []>} : vector<4x24xf32>, vector<24x32xf32>, vector<4x32xf32> -> vector<4x32xf32>
    %c0_26 = arith.constant 0 : index
    %c0_27 = arith.constant 0 : index
    %13 = vector.load %arg12[%c0_26, %c0_27] : memref<1x32xf32, #tpu.memory_space<vmem>>, vector<1x32xf32>
    %14 = vector.broadcast %13 : vector<1x32xf32> to vector<4x32xf32>
    %15 = arith.addf %12, %14 : vector<4x32xf32>
    %c0_28 = arith.constant 0 : index
    %c0_29 = arith.constant 0 : index
    %16 = vector.load %arg13[%c0_28, %c0_29] : memref<24x32xf32, #tpu.memory_space<vmem>>, vector<24x32xf32>
    %cst_30 = arith.constant dense<0.000000e+00> : vector<4x32xf32>
    %17 = tpu.matmul %10, %16, %cst_30 {dimension_numbers = #tpu.dot_dimension_numbers<[1], [0], [0], [1], [0, 0, 1, 1], [], []>} : vector<4x24xf32>, vector<24x32xf32>, vector<4x32xf32> -> vector<4x32xf32>
    %c0_31 = arith.constant 0 : index
    %c0_32 = arith.constant 0 : index
    %18 = vector.load %arg14[%c0_31, %c0_32] : memref<1x32xf32, #tpu.memory_space<vmem>>, vector<1x32xf32>
    %19 = vector.broadcast %18 : vector<1x32xf32> to vector<4x32xf32>
    %20 = arith.addf %17, %19 : vector<4x32xf32>
    %c0_33 = arith.constant 0 : index
    %c0_34 = arith.constant 0 : index
    %21 = vector.load %arg3[%c0_33, %c0_34] : memref<4x32xf32, #tpu.memory_space<vmem>>, vector<4x32xf32>
    %c0_35 = arith.constant 0 : index
    %c0_36 = arith.constant 0 : index
    %c0_37 = arith.constant 0 : index
    %22 = vector.load %arg5[%c0_35, %c0_36, %c0_37] : memref<5x4x16xf32, #tpu.memory_space<vmem>>, vector<1x4x16xf32>
    %23 = vector.shape_cast %22 : vector<1x4x16xf32> to vector<4x16xf32>
    %cst_38 = arith.constant dense<0.000000e+00> : vector<4x128xf32>
    %24 = tpu.matmul %21, %4, %cst_38 {dimension_numbers = #tpu.dot_dimension_numbers<[1], [0], [0], [1], [0, 0, 1, 1], [], []>} : vector<4x32xf32>, vector<32x128xf32>, vector<4x128xf32> -> vector<4x128xf32>
    %cst_39 = arith.constant dense<0.000000e+00> : vector<4x128xf32>
    %25 = tpu.matmul %23, %5, %cst_39 {dimension_numbers = #tpu.dot_dimension_numbers<[1], [0], [0], [1], [0, 0, 1, 1], [], []>} : vector<4x16xf32>, vector<16x128xf32>, vector<4x128xf32> -> vector<4x128xf32>
    %26 = arith.addf %24, %25 : vector<4x128xf32>
    %cst_40 = arith.constant dense<0.000000e+00> : vector<4x128xf32>
    %27 = tpu.matmul %15, %6, %cst_40 {dimension_numbers = #tpu.dot_dimension_numbers<[1], [0], [0], [1], [0, 0, 1, 1], [], []>} : vector<4x32xf32>, vector<32x128xf32>, vector<4x128xf32> -> vector<4x128xf32>
    %28 = arith.addf %26, %27 : vector<4x128xf32>
    %29 = vector.broadcast %7 : vector<1x128xf32> to vector<4x128xf32>
    %30 = arith.addf %28, %29 : vector<4x128xf32>
    %31 = vector.extract_strided_slice %30 {offsets = [0, 0], sizes = [4, 32], strides = [1, 1]} : vector<4x128xf32> to vector<4x32xf32>
    %32 = arith.negf %31 : vector<4x32xf32>
    %33 = math.exp %32 : vector<4x32xf32>
    %cst_41 = arith.constant 1.000000e+00 : f32
    %34 = vector.broadcast %cst_41 : f32 to vector<4x32xf32>
    %35 = arith.addf %34, %33 : vector<4x32xf32>
    %36 = arith.divf %34, %35 : vector<4x32xf32>
    %37 = vector.extract_strided_slice %30 {offsets = [0, 32], sizes = [4, 32], strides = [1, 1]} : vector<4x128xf32> to vector<4x32xf32>
    %38 = arith.negf %37 : vector<4x32xf32>
    %39 = math.exp %38 : vector<4x32xf32>
    %cst_42 = arith.constant 1.000000e+00 : f32
    %40 = vector.broadcast %cst_42 : f32 to vector<4x32xf32>
    %41 = arith.addf %40, %39 : vector<4x32xf32>
    %42 = arith.divf %40, %41 : vector<4x32xf32>
    %43 = vector.extract_strided_slice %30 {offsets = [0, 64], sizes = [4, 32], strides = [1, 1]} : vector<4x128xf32> to vector<4x32xf32>
    %44 = math.tanh %43 : vector<4x32xf32>
    %45 = vector.extract_strided_slice %30 {offsets = [0, 96], sizes = [4, 32], strides = [1, 1]} : vector<4x128xf32> to vector<4x32xf32>
    %46 = arith.negf %45 : vector<4x32xf32>
    %47 = math.exp %46 : vector<4x32xf32>
    %cst_43 = arith.constant 1.000000e+00 : f32
    %48 = vector.broadcast %cst_43 : f32 to vector<4x32xf32>
    %49 = arith.addf %48, %47 : vector<4x32xf32>
    %50 = arith.divf %48, %49 : vector<4x32xf32>
    %51 = arith.mulf %42, %20 : vector<4x32xf32>
    %52 = arith.mulf %36, %44 : vector<4x32xf32>
    %53 = arith.addf %51, %52 : vector<4x32xf32>
    %54 = math.tanh %53 : vector<4x32xf32>
    %55 = arith.mulf %50, %54 : vector<4x32xf32>
    %cst_44 = arith.constant dense<0.000000e+00> : vector<4x128xf32>
    %56 = tpu.matmul %55, %8, %cst_44 {dimension_numbers = #tpu.dot_dimension_numbers<[1], [0], [0], [1], [0, 0, 1, 1], [], []>} : vector<4x32xf32>, vector<32x128xf32>, vector<4x128xf32> -> vector<4x128xf32>
    %57 = vector.broadcast %9 : vector<1x128xf32> to vector<4x128xf32>
    %58 = arith.addf %56, %57 : vector<4x128xf32>
    %c0_45 = arith.constant 0 : index
    %59 = memref.load %arg1[%c0_45] : memref<5xi32, #tpu.memory_space<smem>>
    %60 = tpu.iota {dimensions = array<i32: 0>} : vector<4x1xi32>
    %61 = vector.broadcast %59 : i32 to vector<4x1xi32>
    %62 = arith.cmpi slt, %60, %61 : vector<4x1xi32>
    %cst_46 = arith.constant 0.000000e+00 : f32
    %63 = vector.shape_cast %62 : vector<4x1xi1> to vector<4x1xi1>
    %64 = vector.broadcast %63 : vector<4x1xi1> to vector<4x128xi1>
    %65 = vector.broadcast %cst_46 : f32 to vector<4x128xf32>
    %66 = arith.select %64, %58, %65 : vector<4x128xi1>, vector<4x128xf32>
    %c0_47 = arith.constant 0 : index
    %c0_48 = arith.constant 0 : index
    %c0_49 = arith.constant 0 : index
    %67 = vector.load %arg19[%c0_47, %c0_48, %c0_49] : memref<5x4x128xf32, #tpu.memory_space<vmem>>, vector<1x4x128xf32>
    %68 = vector.shape_cast %67 : vector<1x4x128xf32> to vector<4x128xf32>
    %69 = vector.shape_cast %66 : vector<4x128xf32> to vector<1x4x128xf32>
    tpu.vector_store %arg19[%c0_47, %c0_48, %c0_49], %69 {strides = array<i32>} : memref<5x4x128xf32, #tpu.memory_space<vmem>>, vector<1x4x128xf32>,
    %70 = vector.shape_cast %62 : vector<4x1xi1> to vector<4x1xi1>
    %71 = vector.broadcast %70 : vector<4x1xi1> to vector<4x32xi1>
    %72 = arith.select %71, %55, %15 : vector<4x32xi1>, vector<4x32xf32>
    %73 = vector.shape_cast %62 : vector<4x1xi1> to vector<4x1xi1>
    %74 = vector.broadcast %73 : vector<4x1xi1> to vector<4x32xi1>
    %75 = arith.select %74, %53, %20 : vector<4x32xi1>, vector<4x32xf32>
    %c1_i32 = arith.constant 1 : i32
    %cst_50 = arith.constant dense<0.000000e+00> : vector<4x32xf32>
    %76 = tpu.matmul %72, %2, %cst_50 {dimension_numbers = #tpu.dot_dimension_numbers<[1], [0], [0], [1], [0, 0, 1, 1], [], []>} : vector<4x32xf32>, vector<32x32xf32>, vector<4x32xf32> -> vector<4x32xf32>
    %77 = vector.shape_cast %76 : vector<4x32xf32> to vector<4x1x32xf32>
    %78 = vector.broadcast %77 : vector<4x1x32xf32> to vector<4x36x32xf32>
    %79 = arith.addf %1, %78 : vector<4x36x32xf32>
    %cst_51 = arith.constant 0.000000e+00 : f32
    %80 = vector.broadcast %cst_51 : f32 to vector<4x36x32xf32>
    %81 = arith.maximumf %79, %80 : vector<4x36x32xf32>
    %82 = vector.broadcast %3 : vector<1x1x32xf32> to vector<4x36x32xf32>
    %83 = arith.mulf %81, %82 : vector<4x36x32xf32>
    %cst_52 = arith.constant dense<0.000000e+00> : vector<4x36xf32>
    %84 = vector.multi_reduction <add>, %83, %cst_52 [2] : vector<4x36x32xf32> to vector<4x36xf32>
    %85 = vector.shape_cast %84 : vector<4x36xf32> to vector<4x36x1xf32>
    %cst_53 = arith.constant dense<0xFF800000> : vector<4x1xf32>
    %86 = vector.multi_reduction <maximumf>, %85, %cst_53 [1] : vector<4x36x1xf32> to vector<4x1xf32>
    %87 = vector.shape_cast %86 : vector<4x1xf32> to vector<4x1x1xf32>
    %88 = vector.broadcast %87 : vector<4x1x1xf32> to vector<4x36x1xf32>
    %89 = arith.subf %85, %88 : vector<4x36x1xf32>
    %90 = math.exp %89 : vector<4x36x1xf32>
    %cst_54 = arith.constant dense<0.000000e+00> : vector<4x1xf32>
    %91 = vector.multi_reduction <add>, %90, %cst_54 [1] : vector<4x36x1xf32> to vector<4x1xf32>
    %92 = vector.shape_cast %91 : vector<4x1xf32> to vector<4x1x1xf32>
    %93 = tpu.reciprocal %92 {approx = true} : vector<4x1x1xf32> -> vector<4x1x1xf32>
    %94 = vector.broadcast %93 : vector<4x1x1xf32> to vector<4x36x1xf32>
    %95 = arith.mulf %90, %94 : vector<4x36x1xf32>
    %96 = vector.broadcast %95 : vector<4x36x1xf32> to vector<4x36x32xf32>
    %97 = arith.mulf %96, %0 : vector<4x36x32xf32>
    %cst_55 = arith.constant dense<0.000000e+00> : vector<4x32xf32>
    %98 = vector.multi_reduction <add>, %97, %cst_55 [1] : vector<4x36x32xf32> to vector<4x32xf32>
    %99 = arith.index_cast %c1_i32 : i32 to index
    %c0_56 = arith.constant 0 : index
    %c0_57 = arith.constant 0 : index
    %100 = vector.load %arg5[%99, %c0_56, %c0_57] : memref<5x4x16xf32, #tpu.memory_space<vmem>>, vector<1x4x16xf32>
    %101 = vector.shape_cast %100 : vector<1x4x16xf32> to vector<4x16xf32>
    %cst_58 = arith.constant dense<0.000000e+00> : vector<4x128xf32>
    %102 = tpu.matmul %98, %4, %cst_58 {dimension_numbers = #tpu.dot_dimension_numbers<[1], [0], [0], [1], [0, 0, 1, 1], [], []>} : vector<4x32xf32>, vector<32x128xf32>, vector<4x128xf32> -> vector<4x128xf32>
    %cst_59 = arith.constant dense<0.000000e+00> : vector<4x128xf32>
    %103 = tpu.matmul %101, %5, %cst_59 {dimension_numbers = #tpu.dot_dimension_numbers<[1], [0], [0], [1], [0, 0, 1, 1], [], []>} : vector<4x16xf32>, vector<16x128xf32>, vector<4x128xf32> -> vector<4x128xf32>
    %104 = arith.addf %102, %103 : vector<4x128xf32>
    %cst_60 = arith.constant dense<0.000000e+00> : vector<4x128xf32>
    %105 = tpu.matmul %72, %6, %cst_60 {dimension_numbers = #tpu.dot_dimension_numbers<[1], [0], [0], [1], [0, 0, 1, 1], [], []>} : vector<4x32xf32>, vector<32x128xf32>, vector<4x128xf32> -> vector<4x128xf32>
    %106 = arith.addf %104, %105 : vector<4x128xf32>
    %107 = vector.broadcast %7 : vector<1x128xf32> to vector<4x128xf32>
    %108 = arith.addf %106, %107 : vector<4x128xf32>
    %109 = vector.extract_strided_slice %108 {offsets = [0, 0], sizes = [4, 32], strides = [1, 1]} : vector<4x128xf32> to vector<4x32xf32>
    %110 = arith.negf %109 : vector<4x32xf32>
    %111 = math.exp %110 : vector<4x32xf32>
    %cst_61 = arith.constant 1.000000e+00 : f32
    %112 = vector.broadcast %cst_61 : f32 to vector<4x32xf32>
    %113 = arith.addf %112, %111 : vector<4x32xf32>
    %114 = arith.divf %112, %113 : vector<4x32xf32>
    %115 = vector.extract_strided_slice %108 {offsets = [0, 32], sizes = [4, 32], strides = [1, 1]} : vector<4x128xf32> to vector<4x32xf32>
    %116 = arith.negf %115 : vector<4x32xf32>
    %117 = math.exp %116 : vector<4x32xf32>
    %cst_62 = arith.constant 1.000000e+00 : f32
    %118 = vector.broadcast %cst_62 : f32 to vector<4x32xf32>
    %119 = arith.addf %118, %117 : vector<4x32xf32>
    %120 = arith.divf %118, %119 : vector<4x32xf32>
    %121 = vector.extract_strided_slice %108 {offsets = [0, 64], sizes = [4, 32], strides = [1, 1]} : vector<4x128xf32> to vector<4x32xf32>
    %122 = math.tanh %121 : vector<4x32xf32>
    %123 = vector.extract_strided_slice %108 {offsets = [0, 96], sizes = [4, 32], strides = [1, 1]} : vector<4x128xf32> to vector<4x32xf32>
    %124 = arith.negf %123 : vector<4x32xf32>
    %125 = math.exp %124 : vector<4x32xf32>
    %cst_63 = arith.constant 1.000000e+00 : f32
    %126 = vector.broadcast %cst_63 : f32 to vector<4x32xf32>
    %127 = arith.addf %126, %125 : vector<4x32xf32>
    %128 = arith.divf %126, %127 : vector<4x32xf32>
    %129 = arith.mulf %120, %75 : vector<4x32xf32>
    %130 = arith.mulf %114, %122 : vector<4x32xf32>
    %131 = arith.addf %129, %130 : vector<4x32xf32>
    %132 = math.tanh %131 : vector<4x32xf32>
    %133 = arith.mulf %128, %132 : vector<4x32xf32>
    %cst_64 = arith.constant dense<0.000000e+00> : vector<4x128xf32>
    %134 = tpu.matmul %133, %8, %cst_64 {dimension_numbers = #tpu.dot_dimension_numbers<[1], [0], [0], [1], [0, 0, 1, 1], [], []>} : vector<4x32xf32>, vector<32x128xf32>, vector<4x128xf32> -> vector<4x128xf32>
    %135 = vector.broadcast %9 : vector<1x128xf32> to vector<4x128xf32>
    %136 = arith.addf %134, %135 : vector<4x128xf32>
    %137 = arith.index_cast %c1_i32 : i32 to index
    %138 = memref.load %arg1[%137] : memref<5xi32, #tpu.memory_space<smem>>
    %139 = tpu.iota {dimensions = array<i32: 0>} : vector<4x1xi32>
    %140 = vector.broadcast %138 : i32 to vector<4x1xi32>
    %141 = arith.cmpi slt, %139, %140 : vector<4x1xi32>
    %cst_65 = arith.constant 0.000000e+00 : f32
    %142 = vector.shape_cast %141 : vector<4x1xi1> to vector<4x1xi1>
    %143 = vector.broadcast %142 : vector<4x1xi1> to vector<4x128xi1>
    %144 = vector.broadcast %cst_65 : f32 to vector<4x128xf32>
    %145 = arith.select %143, %136, %144 : vector<4x128xi1>, vector<4x128xf32>
    %146 = arith.index_cast %c1_i32 : i32 to index
    %c0_66 = arith.constant 0 : index
    %c0_67 = arith.constant 0 : index
    %147 = vector.load %arg19[%146, %c0_66, %c0_67] : memref<5x4x128xf32, #tpu.memory_space<vmem>>, vector<1x4x128xf32>
    %148 = vector.shape_cast %147 : vector<1x4x128xf32> to vector<4x128xf32>
    %149 = vector.shape_cast %145 : vector<4x128xf32> to vector<1x4x128xf32>
    tpu.vector_store %arg19[%146, %c0_66, %c0_67], %149 {strides = array<i32>} : memref<5x4x128xf32, #tpu.memory_space<vmem>>, vector<1x4x128xf32>,
    %150 = vector.shape_cast %141 : vector<4x1xi1> to vector<4x1xi1>
    %151 = vector.broadcast %150 : vector<4x1xi1> to vector<4x32xi1>
    %152 = arith.select %151, %133, %72 : vector<4x32xi1>, vector<4x32xf32>
    %153 = vector.shape_cast %141 : vector<4x1xi1> to vector<4x1xi1>
    %154 = vector.broadcast %153 : vector<4x1xi1> to vector<4x32xi1>
    %155 = arith.select %154, %131, %75 : vector<4x32xi1>, vector<4x32xf32>
    %c2_i32 = arith.constant 2 : i32
    %cst_68 = arith.constant dense<0.000000e+00> : vector<4x32xf32>
    %156 = tpu.matmul %152, %2, %cst_68 {dimension_numbers = #tpu.dot_dimension_numbers<[1], [0], [0], [1], [0, 0, 1, 1], [], []>} : vector<4x32xf32>, vector<32x32xf32>, vector<4x32xf32> -> vector<4x32xf32>
    %157 = vector.shape_cast %156 : vector<4x32xf32> to vector<4x1x32xf32>
    %158 = vector.broadcast %157 : vector<4x1x32xf32> to vector<4x36x32xf32>
    %159 = arith.addf %1, %158 : vector<4x36x32xf32>
    %cst_69 = arith.constant 0.000000e+00 : f32
    %160 = vector.broadcast %cst_69 : f32 to vector<4x36x32xf32>
    %161 = arith.maximumf %159, %160 : vector<4x36x32xf32>
    %162 = vector.broadcast %3 : vector<1x1x32xf32> to vector<4x36x32xf32>
    %163 = arith.mulf %161, %162 : vector<4x36x32xf32>
    %cst_70 = arith.constant dense<0.000000e+00> : vector<4x36xf32>
    %164 = vector.multi_reduction <add>, %163, %cst_70 [2] : vector<4x36x32xf32> to vector<4x36xf32>
    %165 = vector.shape_cast %164 : vector<4x36xf32> to vector<4x36x1xf32>
    %cst_71 = arith.constant dense<0xFF800000> : vector<4x1xf32>
    %166 = vector.multi_reduction <maximumf>, %165, %cst_71 [1] : vector<4x36x1xf32> to vector<4x1xf32>
    %167 = vector.shape_cast %166 : vector<4x1xf32> to vector<4x1x1xf32>
    %168 = vector.broadcast %167 : vector<4x1x1xf32> to vector<4x36x1xf32>
    %169 = arith.subf %165, %168 : vector<4x36x1xf32>
    %170 = math.exp %169 : vector<4x36x1xf32>
    %cst_72 = arith.constant dense<0.000000e+00> : vector<4x1xf32>
    %171 = vector.multi_reduction <add>, %170, %cst_72 [1] : vector<4x36x1xf32> to vector<4x1xf32>
    %172 = vector.shape_cast %171 : vector<4x1xf32> to vector<4x1x1xf32>
    %173 = tpu.reciprocal %172 {approx = true} : vector<4x1x1xf32> -> vector<4x1x1xf32>
    %174 = vector.broadcast %173 : vector<4x1x1xf32> to vector<4x36x1xf32>
    %175 = arith.mulf %170, %174 : vector<4x36x1xf32>
    %176 = vector.broadcast %175 : vector<4x36x1xf32> to vector<4x36x32xf32>
    %177 = arith.mulf %176, %0 : vector<4x36x32xf32>
    %cst_73 = arith.constant dense<0.000000e+00> : vector<4x32xf32>
    %178 = vector.multi_reduction <add>, %177, %cst_73 [1] : vector<4x36x32xf32> to vector<4x32xf32>
    %179 = arith.index_cast %c2_i32 : i32 to index
    %c0_74 = arith.constant 0 : index
    %c0_75 = arith.constant 0 : index
    %180 = vector.load %arg5[%179, %c0_74, %c0_75] : memref<5x4x16xf32, #tpu.memory_space<vmem>>, vector<1x4x16xf32>
    %181 = vector.shape_cast %180 : vector<1x4x16xf32> to vector<4x16xf32>
    %cst_76 = arith.constant dense<0.000000e+00> : vector<4x128xf32>
    %182 = tpu.matmul %178, %4, %cst_76 {dimension_numbers = #tpu.dot_dimension_numbers<[1], [0], [0], [1], [0, 0, 1, 1], [], []>} : vector<4x32xf32>, vector<32x128xf32>, vector<4x128xf32> -> vector<4x128xf32>
    %cst_77 = arith.constant dense<0.000000e+00> : vector<4x128xf32>
    %183 = tpu.matmul %181, %5, %cst_77 {dimension_numbers = #tpu.dot_dimension_numbers<[1], [0], [0], [1], [0, 0, 1, 1], [], []>} : vector<4x16xf32>, vector<16x128xf32>, vector<4x128xf32> -> vector<4x128xf32>
    %184 = arith.addf %182, %183 : vector<4x128xf32>
    %cst_78 = arith.constant dense<0.000000e+00> : vector<4x128xf32>
    %185 = tpu.matmul %152, %6, %cst_78 {dimension_numbers = #tpu.dot_dimension_numbers<[1], [0], [0], [1], [0, 0, 1, 1], [], []>} : vector<4x32xf32>, vector<32x128xf32>, vector<4x128xf32> -> vector<4x128xf32>
    %186 = arith.addf %184, %185 : vector<4x128xf32>
    %187 = vector.broadcast %7 : vector<1x128xf32> to vector<4x128xf32>
    %188 = arith.addf %186, %187 : vector<4x128xf32>
    %189 = vector.extract_strided_slice %188 {offsets = [0, 0], sizes = [4, 32], strides = [1, 1]} : vector<4x128xf32> to vector<4x32xf32>
    %190 = arith.negf %189 : vector<4x32xf32>
    %191 = math.exp %190 : vector<4x32xf32>
    %cst_79 = arith.constant 1.000000e+00 : f32
    %192 = vector.broadcast %cst_79 : f32 to vector<4x32xf32>
    %193 = arith.addf %192, %191 : vector<4x32xf32>
    %194 = arith.divf %192, %193 : vector<4x32xf32>
    %195 = vector.extract_strided_slice %188 {offsets = [0, 32], sizes = [4, 32], strides = [1, 1]} : vector<4x128xf32> to vector<4x32xf32>
    %196 = arith.negf %195 : vector<4x32xf32>
    %197 = math.exp %196 : vector<4x32xf32>
    %cst_80 = arith.constant 1.000000e+00 : f32
    %198 = vector.broadcast %cst_80 : f32 to vector<4x32xf32>
    %199 = arith.addf %198, %197 : vector<4x32xf32>
    %200 = arith.divf %198, %199 : vector<4x32xf32>
    %201 = vector.extract_strided_slice %188 {offsets = [0, 64], sizes = [4, 32], strides = [1, 1]} : vector<4x128xf32> to vector<4x32xf32>
    %202 = math.tanh %201 : vector<4x32xf32>
    %203 = vector.extract_strided_slice %188 {offsets = [0, 96], sizes = [4, 32], strides = [1, 1]} : vector<4x128xf32> to vector<4x32xf32>
    %204 = arith.negf %203 : vector<4x32xf32>
    %205 = math.exp %204 : vector<4x32xf32>
    %cst_81 = arith.constant 1.000000e+00 : f32
    %206 = vector.broadcast %cst_81 : f32 to vector<4x32xf32>
    %207 = arith.addf %206, %205 : vector<4x32xf32>
    %208 = arith.divf %206, %207 : vector<4x32xf32>
    %209 = arith.mulf %200, %155 : vector<4x32xf32>
    %210 = arith.mulf %194, %202 : vector<4x32xf32>
    %211 = arith.addf %209, %210 : vector<4x32xf32>
    %212 = math.tanh %211 : vector<4x32xf32>
    %213 = arith.mulf %208, %212 : vector<4x32xf32>
    %cst_82 = arith.constant dense<0.000000e+00> : vector<4x128xf32>
    %214 = tpu.matmul %213, %8, %cst_82 {dimension_numbers = #tpu.dot_dimension_numbers<[1], [0], [0], [1], [0, 0, 1, 1], [], []>} : vector<4x32xf32>, vector<32x128xf32>, vector<4x128xf32> -> vector<4x128xf32>
    %215 = vector.broadcast %9 : vector<1x128xf32> to vector<4x128xf32>
    %216 = arith.addf %214, %215 : vector<4x128xf32>
    %217 = arith.index_cast %c2_i32 : i32 to index
    %218 = memref.load %arg1[%217] : memref<5xi32, #tpu.memory_space<smem>>
    %219 = tpu.iota {dimensions = array<i32: 0>} : vector<4x1xi32>
    %220 = vector.broadcast %218 : i32 to vector<4x1xi32>
    %221 = arith.cmpi slt, %219, %220 : vector<4x1xi32>
    %cst_83 = arith.constant 0.000000e+00 : f32
    %222 = vector.shape_cast %221 : vector<4x1xi1> to vector<4x1xi1>
    %223 = vector.broadcast %222 : vector<4x1xi1> to vector<4x128xi1>
    %224 = vector.broadcast %cst_83 : f32 to vector<4x128xf32>
    %225 = arith.select %223, %216, %224 : vector<4x128xi1>, vector<4x128xf32>
    %226 = arith.index_cast %c2_i32 : i32 to index
    %c0_84 = arith.constant 0 : index
    %c0_85 = arith.constant 0 : index
    %227 = vector.load %arg19[%226, %c0_84, %c0_85] : memref<5x4x128xf32, #tpu.memory_space<vmem>>, vector<1x4x128xf32>
    %228 = vector.shape_cast %227 : vector<1x4x128xf32> to vector<4x128xf32>
    %229 = vector.shape_cast %225 : vector<4x128xf32> to vector<1x4x128xf32>
    tpu.vector_store %arg19[%226, %c0_84, %c0_85], %229 {strides = array<i32>} : memref<5x4x128xf32, #tpu.memory_space<vmem>>, vector<1x4x128xf32>,
    %230 = vector.shape_cast %221 : vector<4x1xi1> to vector<4x1xi1>
    %231 = vector.broadcast %230 : vector<4x1xi1> to vector<4x32xi1>
    %232 = arith.select %231, %213, %152 : vector<4x32xi1>, vector<4x32xf32>
    %233 = vector.shape_cast %221 : vector<4x1xi1> to vector<4x1xi1>
    %234 = vector.broadcast %233 : vector<4x1xi1> to vector<4x32xi1>
    %235 = arith.select %234, %211, %155 : vector<4x32xi1>, vector<4x32xf32>
    %c3_i32 = arith.constant 3 : i32
    %cst_86 = arith.constant dense<0.000000e+00> : vector<4x32xf32>
    %236 = tpu.matmul %232, %2, %cst_86 {dimension_numbers = #tpu.dot_dimension_numbers<[1], [0], [0], [1], [0, 0, 1, 1], [], []>} : vector<4x32xf32>, vector<32x32xf32>, vector<4x32xf32> -> vector<4x32xf32>
    %237 = vector.shape_cast %236 : vector<4x32xf32> to vector<4x1x32xf32>
    %238 = vector.broadcast %237 : vector<4x1x32xf32> to vector<4x36x32xf32>
    %239 = arith.addf %1, %238 : vector<4x36x32xf32>
    %cst_87 = arith.constant 0.000000e+00 : f32
    %240 = vector.broadcast %cst_87 : f32 to vector<4x36x32xf32>
    %241 = arith.maximumf %239, %240 : vector<4x36x32xf32>
    %242 = vector.broadcast %3 : vector<1x1x32xf32> to vector<4x36x32xf32>
    %243 = arith.mulf %241, %242 : vector<4x36x32xf32>
    %cst_88 = arith.constant dense<0.000000e+00> : vector<4x36xf32>
    %244 = vector.multi_reduction <add>, %243, %cst_88 [2] : vector<4x36x32xf32> to vector<4x36xf32>
    %245 = vector.shape_cast %244 : vector<4x36xf32> to vector<4x36x1xf32>
    %cst_89 = arith.constant dense<0xFF800000> : vector<4x1xf32>
    %246 = vector.multi_reduction <maximumf>, %245, %cst_89 [1] : vector<4x36x1xf32> to vector<4x1xf32>
    %247 = vector.shape_cast %246 : vector<4x1xf32> to vector<4x1x1xf32>
    %248 = vector.broadcast %247 : vector<4x1x1xf32> to vector<4x36x1xf32>
    %249 = arith.subf %245, %248 : vector<4x36x1xf32>
    %250 = math.exp %249 : vector<4x36x1xf32>
    %cst_90 = arith.constant dense<0.000000e+00> : vector<4x1xf32>
    %251 = vector.multi_reduction <add>, %250, %cst_90 [1] : vector<4x36x1xf32> to vector<4x1xf32>
    %252 = vector.shape_cast %251 : vector<4x1xf32> to vector<4x1x1xf32>
    %253 = tpu.reciprocal %252 {approx = true} : vector<4x1x1xf32> -> vector<4x1x1xf32>
    %254 = vector.broadcast %253 : vector<4x1x1xf32> to vector<4x36x1xf32>
    %255 = arith.mulf %250, %254 : vector<4x36x1xf32>
    %256 = vector.broadcast %255 : vector<4x36x1xf32> to vector<4x36x32xf32>
    %257 = arith.mulf %256, %0 : vector<4x36x32xf32>
    %cst_91 = arith.constant dense<0.000000e+00> : vector<4x32xf32>
    %258 = vector.multi_reduction <add>, %257, %cst_91 [1] : vector<4x36x32xf32> to vector<4x32xf32>
    %259 = arith.index_cast %c3_i32 : i32 to index
    %c0_92 = arith.constant 0 : index
    %c0_93 = arith.constant 0 : index
    %260 = vector.load %arg5[%259, %c0_92, %c0_93] : memref<5x4x16xf32, #tpu.memory_space<vmem>>, vector<1x4x16xf32>
    %261 = vector.shape_cast %260 : vector<1x4x16xf32> to vector<4x16xf32>
    %cst_94 = arith.constant dense<0.000000e+00> : vector<4x128xf32>
    %262 = tpu.matmul %258, %4, %cst_94 {dimension_numbers = #tpu.dot_dimension_numbers<[1], [0], [0], [1], [0, 0, 1, 1], [], []>} : vector<4x32xf32>, vector<32x128xf32>, vector<4x128xf32> -> vector<4x128xf32>
    %cst_95 = arith.constant dense<0.000000e+00> : vector<4x128xf32>
    %263 = tpu.matmul %261, %5, %cst_95 {dimension_numbers = #tpu.dot_dimension_numbers<[1], [0], [0], [1], [0, 0, 1, 1], [], []>} : vector<4x16xf32>, vector<16x128xf32>, vector<4x128xf32> -> vector<4x128xf32>
    %264 = arith.addf %262, %263 : vector<4x128xf32>
    %cst_96 = arith.constant dense<0.000000e+00> : vector<4x128xf32>
    %265 = tpu.matmul %232, %6, %cst_96 {dimension_numbers = #tpu.dot_dimension_numbers<[1], [0], [0], [1], [0, 0, 1, 1], [], []>} : vector<4x32xf32>, vector<32x128xf32>, vector<4x128xf32> -> vector<4x128xf32>
    %266 = arith.addf %264, %265 : vector<4x128xf32>
    %267 = vector.broadcast %7 : vector<1x128xf32> to vector<4x128xf32>
    %268 = arith.addf %266, %267 : vector<4x128xf32>
    %269 = vector.extract_strided_slice %268 {offsets = [0, 0], sizes = [4, 32], strides = [1, 1]} : vector<4x128xf32> to vector<4x32xf32>
    %270 = arith.negf %269 : vector<4x32xf32>
    %271 = math.exp %270 : vector<4x32xf32>
    %cst_97 = arith.constant 1.000000e+00 : f32
    %272 = vector.broadcast %cst_97 : f32 to vector<4x32xf32>
    %273 = arith.addf %272, %271 : vector<4x32xf32>
    %274 = arith.divf %272, %273 : vector<4x32xf32>
    %275 = vector.extract_strided_slice %268 {offsets = [0, 32], sizes = [4, 32], strides = [1, 1]} : vector<4x128xf32> to vector<4x32xf32>
    %276 = arith.negf %275 : vector<4x32xf32>
    %277 = math.exp %276 : vector<4x32xf32>
    %cst_98 = arith.constant 1.000000e+00 : f32
    %278 = vector.broadcast %cst_98 : f32 to vector<4x32xf32>
    %279 = arith.addf %278, %277 : vector<4x32xf32>
    %280 = arith.divf %278, %279 : vector<4x32xf32>
    %281 = vector.extract_strided_slice %268 {offsets = [0, 64], sizes = [4, 32], strides = [1, 1]} : vector<4x128xf32> to vector<4x32xf32>
    %282 = math.tanh %281 : vector<4x32xf32>
    %283 = vector.extract_strided_slice %268 {offsets = [0, 96], sizes = [4, 32], strides = [1, 1]} : vector<4x128xf32> to vector<4x32xf32>
    %284 = arith.negf %283 : vector<4x32xf32>
    %285 = math.exp %284 : vector<4x32xf32>
    %cst_99 = arith.constant 1.000000e+00 : f32
    %286 = vector.broadcast %cst_99 : f32 to vector<4x32xf32>
    %287 = arith.addf %286, %285 : vector<4x32xf32>
    %288 = arith.divf %286, %287 : vector<4x32xf32>
    %289 = arith.mulf %280, %235 : vector<4x32xf32>
    %290 = arith.mulf %274, %282 : vector<4x32xf32>
    %291 = arith.addf %289, %290 : vector<4x32xf32>
    %292 = math.tanh %291 : vector<4x32xf32>
    %293 = arith.mulf %288, %292 : vector<4x32xf32>
    %cst_100 = arith.constant dense<0.000000e+00> : vector<4x128xf32>
    %294 = tpu.matmul %293, %8, %cst_100 {dimension_numbers = #tpu.dot_dimension_numbers<[1], [0], [0], [1], [0, 0, 1, 1], [], []>} : vector<4x32xf32>, vector<32x128xf32>, vector<4x128xf32> -> vector<4x128xf32>
    %295 = vector.broadcast %9 : vector<1x128xf32> to vector<4x128xf32>
    %296 = arith.addf %294, %295 : vector<4x128xf32>
    %297 = arith.index_cast %c3_i32 : i32 to index
    %298 = memref.load %arg1[%297] : memref<5xi32, #tpu.memory_space<smem>>
    %299 = tpu.iota {dimensions = array<i32: 0>} : vector<4x1xi32>
    %300 = vector.broadcast %298 : i32 to vector<4x1xi32>
    %301 = arith.cmpi slt, %299, %300 : vector<4x1xi32>
    %cst_101 = arith.constant 0.000000e+00 : f32
    %302 = vector.shape_cast %301 : vector<4x1xi1> to vector<4x1xi1>
    %303 = vector.broadcast %302 : vector<4x1xi1> to vector<4x128xi1>
    %304 = vector.broadcast %cst_101 : f32 to vector<4x128xf32>
    %305 = arith.select %303, %296, %304 : vector<4x128xi1>, vector<4x128xf32>
    %306 = arith.index_cast %c3_i32 : i32 to index
    %c0_102 = arith.constant 0 : index
    %c0_103 = arith.constant 0 : index
    %307 = vector.load %arg19[%306, %c0_102, %c0_103] : memref<5x4x128xf32, #tpu.memory_space<vmem>>, vector<1x4x128xf32>
    %308 = vector.shape_cast %307 : vector<1x4x128xf32> to vector<4x128xf32>
    %309 = vector.shape_cast %305 : vector<4x128xf32> to vector<1x4x128xf32>
    tpu.vector_store %arg19[%306, %c0_102, %c0_103], %309 {strides = array<i32>} : memref<5x4x128xf32, #tpu.memory_space<vmem>>, vector<1x4x128xf32>,
    %310 = vector.shape_cast %301 : vector<4x1xi1> to vector<4x1xi1>
    %311 = vector.broadcast %310 : vector<4x1xi1> to vector<4x32xi1>
    %312 = arith.select %311, %293, %232 : vector<4x32xi1>, vector<4x32xf32>
    %313 = vector.shape_cast %301 : vector<4x1xi1> to vector<4x1xi1>
    %314 = vector.broadcast %313 : vector<4x1xi1> to vector<4x32xi1>
    %315 = arith.select %314, %291, %235 : vector<4x32xi1>, vector<4x32xf32>
    %c4_i32 = arith.constant 4 : i32
    %cst_104 = arith.constant dense<0.000000e+00> : vector<4x32xf32>
    %316 = tpu.matmul %312, %2, %cst_104 {dimension_numbers = #tpu.dot_dimension_numbers<[1], [0], [0], [1], [0, 0, 1, 1], [], []>} : vector<4x32xf32>, vector<32x32xf32>, vector<4x32xf32> -> vector<4x32xf32>
    %317 = vector.shape_cast %316 : vector<4x32xf32> to vector<4x1x32xf32>
    %318 = vector.broadcast %317 : vector<4x1x32xf32> to vector<4x36x32xf32>
    %319 = arith.addf %1, %318 : vector<4x36x32xf32>
    %cst_105 = arith.constant 0.000000e+00 : f32
    %320 = vector.broadcast %cst_105 : f32 to vector<4x36x32xf32>
    %321 = arith.maximumf %319, %320 : vector<4x36x32xf32>
    %322 = vector.broadcast %3 : vector<1x1x32xf32> to vector<4x36x32xf32>
    %323 = arith.mulf %321, %322 : vector<4x36x32xf32>
    %cst_106 = arith.constant dense<0.000000e+00> : vector<4x36xf32>
    %324 = vector.multi_reduction <add>, %323, %cst_106 [2] : vector<4x36x32xf32> to vector<4x36xf32>
    %325 = vector.shape_cast %324 : vector<4x36xf32> to vector<4x36x1xf32>
    %cst_107 = arith.constant dense<0xFF800000> : vector<4x1xf32>
    %326 = vector.multi_reduction <maximumf>, %325, %cst_107 [1] : vector<4x36x1xf32> to vector<4x1xf32>
    %327 = vector.shape_cast %326 : vector<4x1xf32> to vector<4x1x1xf32>
    %328 = vector.broadcast %327 : vector<4x1x1xf32> to vector<4x36x1xf32>
    %329 = arith.subf %325, %328 : vector<4x36x1xf32>
    %330 = math.exp %329 : vector<4x36x1xf32>
    %cst_108 = arith.constant dense<0.000000e+00> : vector<4x1xf32>
    %331 = vector.multi_reduction <add>, %330, %cst_108 [1] : vector<4x36x1xf32> to vector<4x1xf32>
    %332 = vector.shape_cast %331 : vector<4x1xf32> to vector<4x1x1xf32>
    %333 = tpu.reciprocal %332 {approx = true} : vector<4x1x1xf32> -> vector<4x1x1xf32>
    %334 = vector.broadcast %333 : vector<4x1x1xf32> to vector<4x36x1xf32>
    %335 = arith.mulf %330, %334 : vector<4x36x1xf32>
    %336 = vector.broadcast %335 : vector<4x36x1xf32> to vector<4x36x32xf32>
    %337 = arith.mulf %336, %0 : vector<4x36x32xf32>
    %cst_109 = arith.constant dense<0.000000e+00> : vector<4x32xf32>
    %338 = vector.multi_reduction <add>, %337, %cst_109 [1] : vector<4x36x32xf32> to vector<4x32xf32>
    %339 = arith.index_cast %c4_i32 : i32 to index
    %c0_110 = arith.constant 0 : index
    %c0_111 = arith.constant 0 : index
    %340 = vector.load %arg5[%339, %c0_110, %c0_111] : memref<5x4x16xf32, #tpu.memory_space<vmem>>, vector<1x4x16xf32>
    %341 = vector.shape_cast %340 : vector<1x4x16xf32> to vector<4x16xf32>
    %cst_112 = arith.constant dense<0.000000e+00> : vector<4x128xf32>
    %342 = tpu.matmul %338, %4, %cst_112 {dimension_numbers = #tpu.dot_dimension_numbers<[1], [0], [0], [1], [0, 0, 1, 1], [], []>} : vector<4x32xf32>, vector<32x128xf32>, vector<4x128xf32> -> vector<4x128xf32>
    %cst_113 = arith.constant dense<0.000000e+00> : vector<4x128xf32>
    %343 = tpu.matmul %341, %5, %cst_113 {dimension_numbers = #tpu.dot_dimension_numbers<[1], [0], [0], [1], [0, 0, 1, 1], [], []>} : vector<4x16xf32>, vector<16x128xf32>, vector<4x128xf32> -> vector<4x128xf32>
    %344 = arith.addf %342, %343 : vector<4x128xf32>
    %cst_114 = arith.constant dense<0.000000e+00> : vector<4x128xf32>
    %345 = tpu.matmul %312, %6, %cst_114 {dimension_numbers = #tpu.dot_dimension_numbers<[1], [0], [0], [1], [0, 0, 1, 1], [], []>} : vector<4x32xf32>, vector<32x128xf32>, vector<4x128xf32> -> vector<4x128xf32>
    %346 = arith.addf %344, %345 : vector<4x128xf32>
    %347 = vector.broadcast %7 : vector<1x128xf32> to vector<4x128xf32>
    %348 = arith.addf %346, %347 : vector<4x128xf32>
    %349 = vector.extract_strided_slice %348 {offsets = [0, 0], sizes = [4, 32], strides = [1, 1]} : vector<4x128xf32> to vector<4x32xf32>
    %350 = arith.negf %349 : vector<4x32xf32>
    %351 = math.exp %350 : vector<4x32xf32>
    %cst_115 = arith.constant 1.000000e+00 : f32
    %352 = vector.broadcast %cst_115 : f32 to vector<4x32xf32>
    %353 = arith.addf %352, %351 : vector<4x32xf32>
    %354 = arith.divf %352, %353 : vector<4x32xf32>
    %355 = vector.extract_strided_slice %348 {offsets = [0, 32], sizes = [4, 32], strides = [1, 1]} : vector<4x128xf32> to vector<4x32xf32>
    %356 = arith.negf %355 : vector<4x32xf32>
    %357 = math.exp %356 : vector<4x32xf32>
    %cst_116 = arith.constant 1.000000e+00 : f32
    %358 = vector.broadcast %cst_116 : f32 to vector<4x32xf32>
    %359 = arith.addf %358, %357 : vector<4x32xf32>
    %360 = arith.divf %358, %359 : vector<4x32xf32>
    %361 = vector.extract_strided_slice %348 {offsets = [0, 64], sizes = [4, 32], strides = [1, 1]} : vector<4x128xf32> to vector<4x32xf32>
    %362 = math.tanh %361 : vector<4x32xf32>
    %363 = vector.extract_strided_slice %348 {offsets = [0, 96], sizes = [4, 32], strides = [1, 1]} : vector<4x128xf32> to vector<4x32xf32>
    %364 = arith.negf %363 : vector<4x32xf32>
    %365 = math.exp %364 : vector<4x32xf32>
    %cst_117 = arith.constant 1.000000e+00 : f32
    %366 = vector.broadcast %cst_117 : f32 to vector<4x32xf32>
    %367 = arith.addf %366, %365 : vector<4x32xf32>
    %368 = arith.divf %366, %367 : vector<4x32xf32>
    %369 = arith.mulf %360, %315 : vector<4x32xf32>
    %370 = arith.mulf %354, %362 : vector<4x32xf32>
    %371 = arith.addf %369, %370 : vector<4x32xf32>
    %372 = math.tanh %371 : vector<4x32xf32>
    %373 = arith.mulf %368, %372 : vector<4x32xf32>
    %cst_118 = arith.constant dense<0.000000e+00> : vector<4x128xf32>
    %374 = tpu.matmul %373, %8, %cst_118 {dimension_numbers = #tpu.dot_dimension_numbers<[1], [0], [0], [1], [0, 0, 1, 1], [], []>} : vector<4x32xf32>, vector<32x128xf32>, vector<4x128xf32> -> vector<4x128xf32>
    %375 = vector.broadcast %9 : vector<1x128xf32> to vector<4x128xf32>
    %376 = arith.addf %374, %375 : vector<4x128xf32>
    %377 = arith.index_cast %c4_i32 : i32 to index
    %378 = memref.load %arg1[%377] : memref<5xi32, #tpu.memory_space<smem>>
    %379 = tpu.iota {dimensions = array<i32: 0>} : vector<4x1xi32>
    %380 = vector.broadcast %378 : i32 to vector<4x1xi32>
    %381 = arith.cmpi slt, %379, %380 : vector<4x1xi32>
    %cst_119 = arith.constant 0.000000e+00 : f32
    %382 = vector.shape_cast %381 : vector<4x1xi1> to vector<4x1xi1>
    %383 = vector.broadcast %382 : vector<4x1xi1> to vector<4x128xi1>
    %384 = vector.broadcast %cst_119 : f32 to vector<4x128xf32>
    %385 = arith.select %383, %376, %384 : vector<4x128xi1>, vector<4x128xf32>
    %386 = arith.index_cast %c4_i32 : i32 to index
    %c0_120 = arith.constant 0 : index
    %c0_121 = arith.constant 0 : index
    %387 = vector.load %arg19[%386, %c0_120, %c0_121] : memref<5x4x128xf32, #tpu.memory_space<vmem>>, vector<1x4x128xf32>
    %388 = vector.shape_cast %387 : vector<1x4x128xf32> to vector<4x128xf32>
    %389 = vector.shape_cast %385 : vector<4x128xf32> to vector<1x4x128xf32>
    tpu.vector_store %arg19[%386, %c0_120, %c0_121], %389 {strides = array<i32>} : memref<5x4x128xf32, #tpu.memory_space<vmem>>, vector<1x4x128xf32>,
    %390 = vector.shape_cast %381 : vector<4x1xi1> to vector<4x1xi1>
    %391 = vector.broadcast %390 : vector<4x1xi1> to vector<4x32xi1>
    %392 = arith.select %391, %373, %312 : vector<4x32xi1>, vector<4x32xf32>
    %393 = vector.shape_cast %381 : vector<4x1xi1> to vector<4x1xi1>
    %394 = vector.broadcast %393 : vector<4x1xi1> to vector<4x32xi1>
    %395 = arith.select %394, %371, %315 : vector<4x32xi1>, vector<4x32xf32>
    %c4_i32_122 = arith.constant 4 : i32
    return
  }
  func.func @transform_0(%arg0: i32, %arg1: memref<5xi32, #tpu.memory_space<smem>>) -> (i32, i32, i32) {
    %c0_i32 = arith.constant 0 : i32
    %c0_i32_0 = arith.constant 0 : i32
    %c0_i32_1 = arith.constant 0 : i32
    %c0_i32_2 = arith.constant 0 : i32
    return %c0_i32, %c0_i32_0, %c0_i32_1 : i32, i32, i32
  }
  func.func @transform_1(%arg0: i32, %arg1: memref<5xi32, #tpu.memory_space<smem>>) -> (i32, i32) {
    %c0_i32 = arith.constant 0 : i32
    %c0_i32_0 = arith.constant 0 : i32
    %c0_i32_1 = arith.constant 0 : i32
    return %c0_i32, %c0_i32_0 : i32, i32
  }
  func.func @transform_2(%arg0: i32, %arg1: memref<5xi32, #tpu.memory_space<smem>>) -> (i32, i32, i32) {
    %c0_i32 = arith.constant 0 : i32
    %c0_i32_0 = arith.constant 0 : i32
    %c0_i32_1 = arith.constant 0 : i32
    %c0_i32_2 = arith.constant 0 : i32
    return %c0_i32, %c0_i32_0, %c0_i32_1 : i32, i32, i32
  }
  func.func @transform_3(%arg0: i32, %arg1: memref<5xi32, #tpu.memory_space<smem>>) -> (i32, i32, i32) {
    %c0_i32 = arith.constant 0 : i32
    %c0_i32_0 = arith.constant 0 : i32
    %c0_i32_1 = arith.constant 0 : i32
    %c0_i32_2 = arith.constant 0 : i32
    return %c0_i32, %c0_i32_0, %c0_i32_1 : i32, i32, i32
  }
  func.func @transform_4(%arg0: i32, %arg1: memref<5xi32, #tpu.memory_space<smem>>) -> (i32, i32) {
    %c0_i32 = arith.constant 0 : i32
    %c0_i32_0 = arith.constant 0 : i32
    %c0_i32_1 = arith.constant 0 : i32
    return %c0_i32, %c0_i32_0 : i32, i32
  }
  func.func @transform_5(%arg0: i32, %arg1: memref<5xi32, #tpu.memory_space<smem>>) -> (i32, i32) {
    %c0_i32 = arith.constant 0 : i32
    %c0_i32_0 = arith.constant 0 : i32
    %c0_i32_1 = arith.constant 0 : i32
    return %c0_i32, %c0_i32_0 : i32, i32
  }
  func.func @transform_6(%arg0: i32, %arg1: memref<5xi32, #tpu.memory_space<smem>>) -> (i32, i32) {
    %c0_i32 = arith.constant 0 : i32
    %c0_i32_0 = arith.constant 0 : i32
    %c0_i32_1 = arith.constant 0 : i32
    return %c0_i32, %c0_i32_0 : i32, i32
  }
  func.func @transform_7(%arg0: i32, %arg1: memref<5xi32, #tpu.memory_space<smem>>) -> (i32, i32) {
    %c0_i32 = arith.constant 0 : i32
    %c0_i32_0 = arith.constant 0 : i32
    %c0_i32_1 = arith.constant 0 : i32
    return %c0_i32, %c0_i32_0 : i32, i32
  }
  func.func @transform_8(%arg0: i32, %arg1: memref<5xi32, #tpu.memory_space<smem>>) -> (i32, i32) {
    %c0_i32 = arith.constant 0 : i32
    %c0_i32_0 = arith.constant 0 : i32
    %c0_i32_1 = arith.constant 0 : i32
    return %c0_i32, %c0_i32_0 : i32, i32
  }
  func.func @transform_9(%arg0: i32, %arg1: memref<5xi32, #tpu.memory_space<smem>>) -> (i32, i32) {
    %c0_i32 = arith.constant 0 : i32
    %c0_i32_0 = arith.constant 0 : i32
    %c0_i32_1 = arith.constant 0 : i32
    return %c0_i32, %c0_i32_0 : i32, i32
  }
  func.func @transform_10(%arg0: i32, %arg1: memref<5xi32, #tpu.memory_space<smem>>) -> (i32, i32) {
    %c0_i32 = arith.constant 0 : i32
    %c0_i32_0 = arith.constant 0 : i32
    %c0_i32_1 = arith.constant 0 : i32
    return %c0_i32, %c0_i32_0 : i32, i32
  }
  func.func @transform_11(%arg0: i32, %arg1: memref<5xi32, #tpu.memory_space<smem>>) -> (i32, i32) {
    %c0_i32 = arith.constant 0 : i32
    %c0_i32_0 = arith.constant 0 : i32
    %c0_i32_1 = arith.constant 0 : i32
    return %c0_i32, %c0_i32_0 : i32, i32
  }
  func.func @transform_12(%arg0: i32, %arg1: memref<5xi32, #tpu.memory_space<smem>>) -> (i32, i32) {
    %c0_i32 = arith.constant 0 : i32
    %c0_i32_0 = arith.constant 0 : i32
    %c0_i32_1 = arith.constant 0 : i32
    return %c0_i32, %c0_i32_0 : i32, i32
  }
  func.func @transform_13(%arg0: i32, %arg1: memref<5xi32, #tpu.memory_space<smem>>) -> (i32, i32) {
    %c0_i32 = arith.constant 0 : i32
    %c0_i32_0 = arith.constant 0 : i32
    %c0_i32_1 = arith.constant 0 : i32
    return %c0_i32, %c0_i32_0 : i32, i32
  }
  func.func @transform_14(%arg0: i32, %arg1: memref<5xi32, #tpu.memory_space<smem>>) -> (i32, i32, i32) {
    %c0_i32 = arith.constant 0 : i32
    %c0_i32_0 = arith.constant 0 : i32
    %c0_i32_1 = arith.constant 0 : i32
    %c0_i32_2 = arith.constant 0 : i32
    return %c0_i32, %c0_i32_0, %c0_i32_1 : i32, i32, i32
  }
  func.func @transform_15(%arg0: i32, %arg1: memref<5xi32, #tpu.memory_space<smem>>) -> (i32, i32) {
    %c0_i32 = arith.constant 0 : i32
    %c0_i32_0 = arith.constant 0 : i32
    %c0_i32_1 = arith.constant 0 : i32
    return %c0_i32, %c0_i32_0 : i32, i32
  }
  func.func @transform_16(%arg0: i32, %arg1: memref<5xi32, #tpu.memory_space<smem>>) -> (i32, i32) {
    %c0_i32 = arith.constant 0 : i32
    %c0_i32_0 = arith.constant 0 : i32
    %c0_i32_1 = arith.constant 0 : i32
    return %c0_i32, %c0_i32_0 : i32, i32
  }
  func.func @transform_17(%arg0: i32, %arg1: memref<5xi32, #tpu.memory_space<smem>>) -> (i32, i32, i32) {
    %c0_i32 = arith.constant 0 : i32
    %c0_i32_0 = arith.constant 0 : i32
    %c0_i32_1 = arith.constant 0 : i32
    %c0_i32_2 = arith.constant 0 : i32
    return %c0_i32, %c0_i32_0, %c0_i32_1 : i32, i32, i32
  }
}

</mosaic_0001>

<bundles_post_ra>
// kernel: tpu_custom_call.1
= control target key start
LH: loop header
LB: loop body
LE: loop exit
PB: predicated region body
PF: predicated region fallthrough
CT: control target
= control target key end

     0   :  { %s6939_s0 = inlined_call_operand.vmem [shape: s32[5], index: 0, kind: input, shape index: {}]   ;;  %s6940_s1 = inlined_call_operand.vmem [shape: f32[4,36,32], index: 1, kind: input, shape index: {}]   ;;  %s6941_s2 = inlined_call_operand.vmem [shape: f32[4,32], index: 2, kind: input, shape index: {}]   ;;  %s6942_s3 = inlined_call_operand.vmem [shape: f32[4,36,32], index: 3, kind: input, shape index: {}]   ;;  %s6943_s4 = inlined_call_operand.vmem [shape: f32[5,4,16], index: 4, kind: input, shape index: {}]   ;;  %s6944_s5 = inlined_call_operand.vmem [shape: f32[4,24], index: 5, kind: input, shape index: {}]   ;;  %s6945_s6 = inlined_call_operand.vmem [shape: f32[32,128], index: 6, kind: input, shape index: {}]   ;;  %s6946_s7 = inlined_call_operand.vmem [shape: f32[16,128], index: 7, kind: input, shape index: {}]   ;;  %s6947_s8 = inlined_call_operand.vmem [shape: f32[32,128], index: 8, kind: input, shape index: {}]   ;;  %s6948_s9 = inlined_call_operand.vmem [shape: f32[1,128], index: 9, kind: input, shape index: {}]   ;;  %s6949_s10 = inlined_call_operand.vmem [shape: f32[24,32], index: 10, kind: input, shape index: {}]   ;;  %s6950_s11 = inlined_call_operand.vmem [shape: f32[1,32], index: 11, kind: input, shape index: {}]   ;;  %s6951_s12 = inlined_call_operand.vmem [shape: f32[24,32], index: 12, kind: input, shape index: {}]   ;;  %s6952_s13 = inlined_call_operand.vmem [shape: f32[1,32], index: 13, kind: input, shape index: {}]   ;;  %s6953_s14 = inlined_call_operand.vmem [shape: f32[32,32], index: 14, kind: input, shape index: {}]   ;;  %s6954_s15 = inlined_call_operand.vmem [shape: f32[1,1,32], index: 15, kind: input, shape index: {}]   ;;  %s6955_s16 = inlined_call_operand.vmem [shape: f32[32,128], index: 16, kind: input, shape index: {}]   ;;  %s6956_s17 = inlined_call_operand.vmem [shape: f32[1,128], index: 17, kind: input, shape index: {}]   ;;  %s6957_s18 = inlined_call_operand.hbm [shape: f32[5,4,128], index: 18, kind: output, shape index: {}]  }
   0x1   :  { %6997 = sst [smem:[#allocation35_spill]] %s6939_s0 }
   0x2   :  { %6998 = sst [smem:[#allocation36_spill]] %s6940_s1  ;;  %s7001_s29 = sld [smem:[#allocation35_spill]] }
   0x3   :  { %6999 = sst [smem:[#allocation37_spill]] %s6941_s2 }
   0x4   :  { %7000 = sst [smem:[#allocation38_spill]] %s6942_s3 }
   0x8   :  { %s23_s3 = sshll.u32 %s7001_s29, 4  ;;  %s24_s3 = int_to_ptr.vmem [resolvable:$true] %s23_s3 }
   0x9   :  { %s4852_s30 = scalar_lea.vmem %s24_s3, 16  ;;  %p4857_p1 = scmp.lt.s32.totalorder %s24_s3, %s24_s3 }
   0xa   :  { %p4853_p0 = scmp.ne.s32.totalorder %s24_s3, %s4852_s30  ;;  %p4858_p2 = scmp.lt.s32.totalorder %s4852_s30, %s4852_s30 }
   0xc   :  { %p4859_p3 = por %p4858_p2, %p4857_p1 }
   0xe   :  { %p4860_p4 = pnand %p4859_p3, %p4853_p0 }
  0x10   :  { %4863 = shalt.err (!%p4860_p4)  }
  0x11   :  { %s4890_s0 = smov [#allocation3]  }
  0x12   :  { %26 = dma.vmem_to_smem %s24_s3, 16, %s4890_s0, [#allocation2] }
  0x13   :  { %4886 = dma.done.wait [#allocation2], 16 }
  0x14   :  { %4887 = vsyncadd [#allocation2], 4294967280 }
  0x15   :  { %28 = sfence }
  0x16   :  { %v126_v0 = vld [vmem:[%s6949_s10] sm:$0xff]  ;;  %v127_v1 = vld [vmem:[%s6949_s10 + $0x8] sm:$0xff]  ;;  %v6960_v2 = vmov 0.0|0.0   ;;  %vm4892_vm0 = vmmov 0   ;;  %v6962_v4 = vmov 0.0   ;;  %v128_v10 = vld [vmem:[%s6949_s10 + $0x10] sm:$0xff] }
  0x17   :  { %4401 = vmatprep.subr.bf16.mxu0 %v6960_v2  ;;  %v4402_v3 = vpack.c.bf16 %v127_v1, %v126_v0  ;;  %4145 = vmatprep.mubr.msk.f32.mxu0 %vm4892_vm0, %v6962_v4  ;;  %v210_v5 = vld [vmem:[%s6951_s12] sm:$0xff]  ;;  %v211_v6 = vld [vmem:[%s6951_s12 + $0x8] sm:$0xff]  ;;  %vm136_vm1 = vcmask 195584   ;;  %v212_v14 = vld [vmem:[%s6951_s12 + $0x10] sm:$0xff] }
  0x18   :  { %4404 = vmatprep.subr.bf16.mxu1 %v6960_v2  ;;  %v4405_v7 = vpack.c.bf16 %v211_v6, %v210_v5  ;;  %4154 = vmatprep.mubr.msk.f32.mxu1 %vm4892_vm0, %v6962_v4  ;;  %v109_v8 = vld [vmem:[%s6945_s6] sm:$0xff]  ;;  %v110_v9 = vld [vmem:[%s6945_s6 + $0x8] sm:$0xff] }
  0x19   :  { %4403 = vmatpush3.bf16.msra.mxu0 %v4402_v3  ;;  %v113_v11 = vld [vmem:[%s6946_s7] sm:$0xff]  ;;  %v114_v12 = vld [vmem:[%s6946_s7 + $0x8] sm:$0xff]  ;;  %v5039_v15 = vpack.c.bf16 %v110_v9, %v109_v8 }
  0x1a   :  { %4143 = vmatprep.subr.mxu0 %v6962_v4  ;;  %4406 = vmatpush3.bf16.msra.mxu1 %v4405_v7  ;;  %v125_v13 = vld [vmem:[%s6944_s5] sm:$0xf] }
  0x1b   :  { %4152 = vmatprep.subr.mxu1 %v6962_v4  ;;  %7002 = vst [vmem:[#allocation8_spill] sm:$0xff] %v5039_v15 }
  0x1c   :  { %29 = vsyncpa [#allocation5], 0  ;;  %v5041_v16 = vpack.c.bf16 %v114_v12, %v113_v11  ;;  %v111_v17 = vld [vmem:[%s6945_s6 + $0x10] sm:$0xff]  ;;  %v112_v18 = vld [vmem:[%s6945_s6 + $0x18] sm:$0xff]  ;;  %vm292_vm2 = vcmask 130048   ;;  %s7005_s29 = sld [smem:[#allocation37_spill]]  ;;  %v631_v0 = vlaneseq }
  0x1d   :  { %4144 = vmatpush3.msra.mxu0 %v128_v10  ;;  %v115_v19 = vld [vmem:[%s6947_s8] sm:$0xff]  ;;  %v116_v20 = vld [vmem:[%s6947_s8 + $0x8] sm:$0xff]  ;;  %v5058_v21 = vpack.c.bf16 %v112_v18, %v111_v17  ;;  %vm366_vm3 = vcmask 261120   ;;  %v117_v25 = vld [vmem:[%s6947_s8 + $0x10] sm:$0xff]  ;;  %s4894_s10 = smov 64   ;;  %s4895_s2 = smov 32  }
  0x1e   :  { %7003 = vst [vmem:[#allocation9_spill] sm:$0xff] %v5041_v16  ;;  %4146 = vmatmul.mubr.msk.f32.vlgmr.msra.gmra.mrb[0].mxu0 %vm136_vm1, %v125_v13  ;;  %4153 = vmatpush3.msra.mxu1 %v212_v14  ;;  %v291_v22 = vld [vmem:[%s6943_s4] sm:$0xf]  ;;  %v5065_v23 = vpack.c.bf16 %v116_v20, %v115_v19  ;;  %v118_v26 = vld [vmem:[%s6947_s8 + $0x18] sm:$0xff]  ;;  %s4896_s7 = smov 96   ;;  %v105_v58 = vld [vmem:[%s6953_s14 + $0x8] sm:$0xff] }
  0x1f   :  { %4410 = vmatprep.subr.bf16.mxu1 %v6960_v2  ;;  %4155 = vmatmul.mubr.msk.f32.vlgmr.msra.gmra.mrb[0].mxu1 %vm136_vm1, %v125_v13  ;;  %7004 = vst [vmem:[#allocation10_spill] sm:$0xff] %v5058_v21  ;;  %v5091_v27 = vpack.c.bf16 %v118_v26, %v117_v25  ;;  %v3977_v28 = vld [vmem:[%s6950_s11] ss:$0 sm:$0xff]  ;;  %v106_v59 = vld [vmem:[%s6953_s14 + $0x10] sm:$0xff]  ;;  %v107_v61 = vld [vmem:[%s6953_s14 + $0x18] sm:$0xff]  ;;  %s630_s27 = sld [smem:[#allocation3]] }
  0x20   :  { %4412 = vmatpush3.bf16.msra.mxu1 %v5039_v15  ;;  %4407 = vmatprep.subr.bf16.mxu0 %v6960_v2  ;;  %v3984_v39 = vld [vmem:[%s6948_s9] ss:$0 sm:$0xff]  ;;  %v5131_v62 = vpack.c.bf16 %v107_v61, %v106_v59  ;;  %v5137_v1 = vshrl.u32 %v631_v0, 7  ;;  %v4897_v11 = vmov 1966171168   ;;  %vm842_vm5 = vcmask 257024  }
  0x21   :  { %4409 = vmatpush3.bf16.msra.mxu0 %v5041_v16  ;;  %4413 = vmatprep.subr.bf16.mxu1 %v6960_v2  ;;  %v3979_v45 = vld [vmem:[%s6952_s13] ss:$0 sm:$0xff]  ;;  %v721_v12 = vunpack.c.l.s4 %v4897_v11  ;;  %vm894_vm6 = vcmask 1043456   ;;  %s7011_s3 = sld [smem:[#allocation36_spill]]  ;;  %vm1223_vm7 = vcmask 1041409   ;;  %vm1225_vm8 = vcmask 1042434  }
  0x22   :  { %4161 = vmatprep.mubr.msk.f32.mxu0 %vm4892_vm0, %v6962_v4  ;;  %4172 = vmatprep.mubr.msk.f32.mxu1 %vm4892_vm0, %v6962_v4  ;;  %v290_v24 = vld [vmem:[%s7005_s29] sm:$0xf]  ;;  %v5167_v18 = vsub.s32 0, %v5137_v1  ;;  %s7010_s29 = sld [smem:[#allocation38_spill]]  ;;  %vm1227_vm9 = vcmask 1043459   ;;  %s3996_s21 = sld [smem:[#allocation3 + $0x1]] }
  0x23   :  { %4416 = vmatprep.subr.bf16.mxu0 %v6960_v2  ;;  %v104_v57 = vld [vmem:[%s6953_s14] sm:$0xff]  ;;  %v722_v13 = vunpack.c.0.s8 %v721_v12  ;;  %s4004_s28 = sld [smem:[#allocation3 + $0x2]] }
  0x24   :  { %4415 = vmatpush3.bf16.msra.mxu1 %v5058_v21  ;;  %4162 = vmatmul.mubr.msk.f32.vlgmr.msra.gmra.mrb[2].mxu0 %vm292_vm2, %v291_v22  ;;  %v5125_v60 = vpack.c.bf16 %v105_v58, %v104_v57  ;;  %7009 = vst [vmem:[#allocation12_spill] sm:$0xff] %v5167_v18 }
  0x25   :  { %4418 = vmatpush3.bf16.msra.mxu0 %v5065_v23  ;;  %4183 = vmatprep.mubr.msk.f32.mxu0 %vm4892_vm0, %v6962_v4  ;;  %v633_v3 = vstv %s630_s27  ;;  %v5164_v14 = vsub.s32 %v722_v13, %v5137_v1 }
  0x26   :  { %4419 = vmatprep.subr.bf16.mxu0 %v6960_v2  ;;  %4422 = vmatprep.subr.bf16.mxu1 %v6960_v2  ;;  %vm5142_vm4 = vcmp.lt.s32.totalorder %v5137_v1, %v633_v3 }
  0x27   :  { %4173 = vmatmul.mubr.msk.f32.vlgmr.msra.gmra.mrb[2].mxu1 %vm366_vm3, %v290_v24  ;;  %7008 = vst [vmem:[#allocation11_spill] sm:$0xff] %v5164_v14 }
  0x28   :  { %4194 = vmatprep.mubr.msk.f32.mxu1 %vm4892_vm0, %v6962_v4  ;;  %v85_v25 = vld [vmem:[%s7010_s29 + $0x8] sm:$0xff]  ;;  %v96_v0 = vld [vmem:[%s7010_s29 + $0x60] sm:$0xff]  ;;  %v95_v3 = vld [vmem:[%s7010_s29 + $0x58] sm:$0xff] }
  0x29   :  { %4421 = vmatpush3.bf16.msra.mxu0 %v5091_v27 }
  0x2a   :  { %4428 = vmatprep.subr.bf16.mxu0 %v6960_v2 }
  0xf1   :  { %v206_v29 = vpop.f32.mrb[0].mxu0 }
  0xf2   :  { %v207_v30 = vadd.f32 %v3977_v28, %v206_v29  ;;  %v4147_v31 = vpop.f32.mrb[1].mxu0  ;;  %v286_v32 = vpop.f32.mrb[0].mxu1 }
  0xf3   :  { %v4156_v33 = vpop.f32.mrb[1].mxu1  ;;  %v287_v46 = vadd.f32 %v3979_v45, %v286_v32  ;;  %v86_v31 = vld [vmem:[%s7010_s29 + $0x10] sm:$0xff]  ;;  %v87_v32 = vld [vmem:[%s7010_s29 + $0x18] sm:$0xff] }
  0xf4   :  { %4184 = vmatmul.mubr.msk.f32.vlgmr.msra.gmra.mrb[4].mxu0 %vm366_vm3, %v207_v30  ;;  %v88_v33 = vld [vmem:[%s7010_s29 + $0x20] sm:$0xf] }
  0xf5   :  { %4205 = vmatprep.mubr.msk.f32.mxu0 %vm4892_vm0, %v6962_v4  ;;  %4430 = vmatpush3.bf16.msra.mxu0 %v5125_v60 }
  0xf6   :  { %4431 = vmatprep.subr.bf16.mxu0 %v6960_v2 }
  0xf7   :  { %v362_v34 = vpop.f32.mrb[2].mxu0 }
  0xf8   :  { %v4163_v35 = vpop.f32.mrb[3].mxu0 }
  0xf9   :  { %4433 = vmatpush3.bf16.msra.mxu0 %v5131_v62 }
  0xfa   :  { %v436_v36 = vpop.f32.mrb[2].mxu1  ;;  %4437 = vmatprep.subr.bf16.mxu0 %v6960_v2 }
  0xfb   :  { %v437_v37 = vadd.f32 %v436_v36, %v362_v34  ;;  %v4174_v38 = vpop.f32.mrb[3].mxu1  ;;  %v89_v36 = vld [vmem:[%s7010_s29 + $0x28] sm:$0xff] }
 0x1c7   :  { %v509_v40 = vpop.f32.mrb[4].mxu0 }
 0x1c8   :  { %v513_v41 = vadd.f32 %v509_v40, %v437_v37  ;;  %v4185_v42 = vpop.f32.mrb[5].mxu0  ;;  %v5200_v37 = vld [vmem:[%s6954_s15] ss:$0 sm:$0xff] }
 0x1ca   :  { %v520_v43 = vadd.f32 %v3984_v39, %v513_v41 }
 0x1cc   :  { %4546 = vtanh.f32 %v520_v43  ;;  %v3985_v47 = vmul.f32 -1.442695, %v520_v43 }
 0x1ce   :  { %4548 = vpow2.f32 %v3985_v47 }
 0x1d6   :  { %v4547_v44 = vpop.eup %4546 }
 0x1d7   :  { %534 = vrot.lane.b32.xlu0 %v4547_v44, %s4894_s10 }
 0x1d8   :  { %v4549_v48 = vpop.eup %4548 }
 0x1d9   :  { %v524_v49 = vadd.f32 1.0, %v4549_v48  ;;  %v94_v48 = vld [vmem:[%s7010_s29 + $0x50] sm:$0xff] }
 0x1db   :  { %529 = vrot.lane.b32.xlu0 %v287_v46, %s4895_s2  ;;  %4550 = vrcp.f32 %v524_v49 }
 0x1df   :  { %639 = vrot.lane.b32.xlu0 %v207_v30, %s4896_s7  ;;  %v84_v30 = vld [vmem:[%s7010_s29] sm:$0xff] }
 0x1e5   :  { %v4551_v50 = vpop.eup %4550 }
 0x249   :  { %v535_v51 = vpop.permute.xlu0 %534 }
 0x24a   :  { %v537_v52 = vmul.f32 %v4551_v50, %v535_v51 }
 0x24c   :  { %539 = vrot.lane.b32.xlu1 %v537_v52, %s4895_s2 }
 0x24d   :  { %v5110_v53 = vpop.permute.xlu0 %529 }
 0x24e   :  { %v532_v54 = vmul.f32 %v4551_v50, %v5110_v53 }
 0x251   :  { %v640_v7 = vpop.permute.xlu0 %639 }
 0x2be   :  { %v540_v55 = vpop.permute.xlu1 %539 }
 0x2bf   :  { %v5113_v56 = vadd.f32 %v540_v55, %v532_v54 }
 0x2c1   :  { %4552 = vtanh.f32 %v5113_v56 }
 0x2cb   :  { %v4553_v63 = vpop.eup %4552 }
 0x2cc   :  { %545 = vrot.lane.b32.xlu1 %v4553_v63, %s4894_s10 }
 0x33e   :  { %v546_v5 = vpop.permute.xlu1 %545 }
 0x33f   :  { %v5139_v6 = vmul.f32 %v4551_v50, %v546_v5  ;;  %v90_v50 = vld [vmem:[%s7010_s29 + $0x30] sm:$0xff] }
 0x341   :  { %v5149_v9 = vsel %vm5142_vm4, %v5139_v6, %v640_v7 }
 0x342   :  { %645 = vrot.lane.b32.xlu1 %v5149_v9, %s4895_s2 }
 0x3b4   :  { %v5153_v10 = vpop.permute.xlu1 %645 }
 0x3b5   :  { %4206 = vmatmul.mubr.msk.f32.vlgmr.msra.gmra.mrb[6].mxu0 %vm366_vm3, %v5153_v10 }
 0x3b6   :  { %4439 = vmatpush3.bf16.msra.mxu0 %v5039_v15  ;;  %4223 = vmatprep.mubr.msk.f32.mxu0 %vm4892_vm0, %v6962_v4 }
 0x3b7   :  { %4440 = vmatprep.subr.bf16.mxu0 %v6960_v2 }
 0x3ba   :  { %4442 = vmatpush3.bf16.msra.mxu0 %v5058_v21 }
 0x3bb   :  { %4449 = vmatprep.subr.bf16.mxu0 %v6960_v2 }
 0x488   :  { %v715_v17 = vpop.f32.mrb[6].mxu0 }
 0x489   :  { %v726_v19 = vrot.slane %v715_v17, %v5164_v14  ;;  %v4207_v20 = vpop.f32.mrb[7].mxu0 }
 0x48b   :  { %v727_v22 = vcombine.high %v726_v19, %v726_v19  ;;  %v734_v24 = vrot.slane %v726_v19, %v5164_v14 }
 0x48d   :  { %v5175_v26 = vrot.slane %v727_v22, %v5164_v14  ;;  %v742_v28 = vcombine.high %v734_v24, %v734_v24  ;;  %v747_v29 = vrot.slane %v734_v24, %v5167_v18  ;;  %v92_v22 = vld [vmem:[%s7010_s29 + $0x40] sm:$0xff]  ;;  %v91_v24 = vld [vmem:[%s7010_s29 + $0x38] sm:$0xff] }
 0x48f   :  { %v5192_v34 = vrot.slane %v5175_v26, %v5167_v18  ;;  %v765_v35 = vadd.f32 %v747_v29, %v85_v25  ;;  %v764_v38 = vadd.f32 %v747_v29, %v84_v30  ;;  %v766_v39 = vadd.f32 %v747_v29, %v86_v31 }
 0x490   :  { %v767_v40 = vadd.f32 %v747_v29, %v87_v32  ;;  %v5203_v41 = vrot.slane %v742_v28, %v5167_v18  ;;  %v768_v43 = vadd.f32 %v747_v29, %v88_v33  ;;  %v743_v25 = vcombine.high %v5175_v26, %v5175_v26  ;;  %v93_v26 = vld [vmem:[%s7010_s29 + $0x48] sm:$0xf] }
 0x491   :  { %v785_v42 = vmax.f32 %v765_v35, 0.0  ;;  %v784_v44 = vmax.f32 %v764_v38, 0.0  ;;  %v786_v45 = vmax.f32 %v766_v39, 0.0  ;;  %v769_v47 = vadd.f32 %v5192_v34, %v89_v36  ;;  %v97_v38 = vld [vmem:[%s7010_s29 + $0x68] sm:$0xff] }
 0x492   :  { %v787_v46 = vmax.f32 %v767_v40, 0.0  ;;  %v788_v55 = vmax.f32 %v768_v43, 0.0  ;;  %v774_v57 = vadd.f32 %v5203_v41, %v94_v48  ;;  %v770_v63 = vadd.f32 %v5192_v34, %v90_v50  ;;  %v98_v50 = vld [vmem:[%s7010_s29 + $0x70] sm:$0xf] }
 0x493   :  { %v811_v49 = vmul.f32 %v5200_v37, %v785_v42  ;;  %v810_v51 = vmul.f32 %v5200_v37, %v784_v44  ;;  %v812_v54 = vmul.f32 %v5200_v37, %v786_v45  ;;  %v789_v61 = vmax.f32 %v769_v47, 0.0 }
 0x494   :  { %v813_v59 = vmul.f32 %v5200_v37, %v787_v46  ;;  %v814_v7 = vmul.f32 %v5200_v37, %v788_v55  ;;  %v794_v11 = vmax.f32 %v774_v57, 0.0  ;;  %v776_v12 = vadd.f32 %v5203_v41, %v96_v0 }
 0x495   :  { %v833_v52 = vsel %vm366_vm3, %v811_v49, 0.0  ;;  %v830_v58 = vsel %vm366_vm3, %v810_v51, 0.0  ;;  %v836_v5 = vsel %vm366_vm3, %v812_v54, 0.0  ;;  %v815_v17 = vmul.f32 %v5200_v37, %v789_v61  ;;  %v99_v49 = vld [vmem:[%s7010_s29 + $0x78] sm:$0xff]  ;;  %v102_v61 = vld [vmem:[%s7010_s29 + $0x90] sm:$0xff] }
 0x496   :  { %834 = vadd.xlane.f32.xlu1 %v833_v52  ;;  %831 = vadd.xlane.f32.xlu0 %v830_v58  ;;  %v839_v13 = vsel %vm366_vm3, %v813_v59, 0.0  ;;  %v790_v19 = vmax.f32 %v770_v63, 0.0  ;;  %v775_v20 = vadd.f32 %v5203_v41, %v95_v3  ;;  %v843_v28 = vsel %vm842_vm5, %v814_v7, 0.0  ;;  %v100_v63 = vld [vmem:[%s7010_s29 + $0x80] sm:$0xff] }
 0x497   :  { %v820_v29 = vmul.f32 %v5200_v37, %v794_v11  ;;  %v796_v30 = vmax.f32 %v776_v12, 0.0  ;;  %v772_v31 = vadd.f32 %v5192_v34, %v92_v22  ;;  %v846_v32 = vsel %vm366_vm3, %v815_v17, 0.0  ;;  %v101_v17 = vld [vmem:[%s7010_s29 + $0x88] sm:$0xff] }
 0x498   :  { %v816_v33 = vmul.f32 %v5200_v37, %v790_v19  ;;  %v795_v35 = vmax.f32 %v775_v20, 0.0  ;;  %v771_v36 = vadd.f32 %v5192_v34, %v91_v24  ;;  %v759_v39 = vrot.slane %v743_v25, %v5167_v18 }
 0x499   :  { %v861_v40 = vsel %vm366_vm3, %v820_v29, 0.0  ;;  %v822_v42 = vmul.f32 %v5200_v37, %v796_v30  ;;  %v792_v43 = vmax.f32 %v772_v31, 0.0  ;;  %v777_v44 = vadd.f32 %v5203_v41, %v97_v38  ;;  %v103_v30 = vld [vmem:[%s7010_s29 + $0x98] sm:$0xf] }
 0x49a   :  { %837 = vadd.xlane.f32.xlu1 %v836_v5  ;;  %840 = vadd.xlane.f32.xlu0 %v839_v13  ;;  %v849_v45 = vsel %vm366_vm3, %v816_v33, 0.0  ;;  %v821_v46 = vmul.f32 %v5200_v37, %v795_v35  ;;  %v791_v47 = vmax.f32 %v771_v36, 0.0  ;;  %v773_v48 = vadd.f32 %v5192_v34, %v93_v26 }
 0x49b   :  { %v867_v51 = vsel %vm366_vm3, %v822_v42, 0.0  ;;  %v818_v52 = vmul.f32 %v5200_v37, %v792_v43  ;;  %v797_v54 = vmax.f32 %v777_v44, 0.0  ;;  %v779_v55 = vadd.f32 %v759_v39, %v99_v49 }
 0x49c   :  { %v864_v57 = vsel %vm366_vm3, %v821_v46, 0.0  ;;  %v817_v34 = vmul.f32 %v5200_v37, %v791_v47  ;;  %v793_v58 = vmax.f32 %v773_v48, 0.0  ;;  %v778_v59 = vadd.f32 %v5203_v41, %v98_v50  ;;  %v121_v47 = vld [vmem:[%s6955_s16 + $0x8] sm:$0xff] }
 0x49d   :  { %v855_v0 = vsel %vm366_vm3, %v818_v52, 0.0  ;;  %v823_v3 = vmul.f32 %v5200_v37, %v797_v54  ;;  %v799_v5 = vmax.f32 %v779_v55, 0.0  ;;  %v782_v7 = vadd.f32 %v759_v39, %v102_v61 }
 0x49e   :  { %844 = vadd.xlane.f32.xlu1 %v843_v28  ;;  %847 = vadd.xlane.f32.xlu0 %v846_v32  ;;  %v852_v11 = vsel %vm366_vm3, %v817_v34, 0.0  ;;  %v819_v41 = vmul.f32 %v5200_v37, %v793_v58  ;;  %v798_v12 = vmax.f32 %v778_v59, 0.0  ;;  %v780_v13 = vadd.f32 %v759_v39, %v100_v63 }
 0x49f   :  { %v870_v19 = vsel %vm366_vm3, %v823_v3, 0.0  ;;  %v825_v20 = vmul.f32 %v5200_v37, %v799_v5  ;;  %v802_v22 = vmax.f32 %v782_v7, 0.0  ;;  %v781_v29 = vadd.f32 %v759_v39, %v101_v17 }
 0x4a0   :  { %v858_v24 = vsel %vm842_vm5, %v819_v41, 0.0  ;;  %v824_v25 = vmul.f32 %v5200_v37, %v798_v12  ;;  %v800_v28 = vmax.f32 %v780_v13, 0.0  ;;  %v783_v38 = vadd.f32 %v759_v39, %v103_v30  ;;  %v120_v39 = vld [vmem:[%s6955_s16] sm:$0xff] }
 0x4a1   :  { %v876_v31 = vsel %vm366_vm3, %v825_v20, 0.0  ;;  %v828_v32 = vmul.f32 %v5200_v37, %v802_v22  ;;  %v801_v36 = vmax.f32 %v781_v29, 0.0  ;;  %v5308_v48 = vpack.c.bf16 %v121_v47, %v120_v39 }
 0x4a2   :  { %862 = vadd.xlane.f32.xlu1 %v861_v40  ;;  %850 = vadd.xlane.f32.xlu0 %v849_v45  ;;  %v873_v33 = vsel %vm842_vm5, %v824_v25, 0.0  ;;  %v826_v35 = vmul.f32 %v5200_v37, %v800_v28  ;;  %v803_v43 = vmax.f32 %v783_v38, 0.0 }
 0x4a3   :  { %v885_v26 = vsel %vm366_vm3, %v828_v32, 0.0  ;;  %v827_v42 = vmul.f32 %v5200_v37, %v801_v36  ;;  %4424 = vmatpush3.bf16.msra.mxu1 %v5308_v48 }
 0x4a4   :  { %v879_v40 = vsel %vm366_vm3, %v826_v35, 0.0  ;;  %v829_v45 = vmul.f32 %v5200_v37, %v803_v43  ;;  %4425 = vmatprep.subr.bf16.mxu1 %v6960_v2  ;;  %v122_v37 = vld [vmem:[%s6955_s16 + $0x10] sm:$0xff] }
 0x4a5   :  { %v882_v44 = vsel %vm366_vm3, %v827_v42, 0.0 }
 0x4a6   :  { %868 = vadd.xlane.f32.xlu1 %v867_v51  ;;  %865 = vadd.xlane.f32.xlu0 %v864_v57  ;;  %v888_v46 = vsel %vm842_vm5, %v829_v45, 0.0 }
 0x4aa   :  { %856 = vadd.xlane.f32.xlu1 %v855_v0  ;;  %853 = vadd.xlane.f32.xlu0 %v852_v11 }
 0x4ae   :  { %871 = vadd.xlane.f32.xlu1 %v870_v19  ;;  %859 = vadd.xlane.f32.xlu0 %v858_v24 }
 0x4b2   :  { %877 = vadd.xlane.f32.xlu1 %v876_v31  ;;  %874 = vadd.xlane.f32.xlu0 %v873_v33 }
 0x4b6   :  { %886 = vadd.xlane.f32.xlu1 %v885_v26  ;;  %880 = vadd.xlane.f32.xlu0 %v879_v40 }
 0x4ba   :  { %883 = vadd.xlane.f32.xlu0 %v882_v44 }
 0x4be   :  { %889 = vadd.xlane.f32.xlu0 %v888_v46 }
 0x4c7   :  { %556 = vrot.lane.b32.xlu1 %v5139_v6, %s4895_s2  ;;  %v123_v6 = vld [vmem:[%s6955_s16 + $0x18] sm:$0xff] }
 0x4c8   :  { %v5318_v49 = vpack.c.bf16 %v123_v6, %v122_v37 }
 0x4ca   :  { %4427 = vmatpush3.bf16.msra.mxu1 %v5318_v49 }
 0x4cb   :  { %4434 = vmatprep.subr.bf16.mxu1 %v6960_v2 }
 0x523   :  { %v835_v50 = vpop.xlane.xlu1 %834  ;;  %v832_v51 = vpop.xlane.xlu0 %831 }
 0x524   :  { %v891_v52 = vmax.f32 %v832_v51, %v835_v50 }
 0x527   :  { %v838_v54 = vpop.xlane.xlu1 %837  ;;  %v841_v57 = vpop.xlane.xlu0 %840 }
 0x528   :  { %v892_v55 = vmax.f32 %v891_v52, %v838_v54 }
 0x52a   :  { %v893_v34 = vmax.f32 %v892_v55, %v841_v57 }
 0x52b   :  { %v845_v58 = vpop.xlane.xlu1 %844  ;;  %v5323_v61 = vpop.xlane.xlu0 %847 }
 0x52c   :  { %v895_v59 = vsel %vm894_vm6, %v845_v58, -inf }
 0x52d   :  { %v896_v63 = vmax.f32 %v893_v34, %v895_v59 }
 0x52f   :  { %v897_v0 = vrot.slane %v896_v63, 4  ;;  %v5325_v3 = vpop.xlane.xlu1 %862  ;;  %v5327_v5 = vpop.xlane.xlu0 %850 }
 0x530   :  { %v903_v19 = vmax.f32 %v5323_v61, %v5327_v5 }
 0x531   :  { %v898_v7 = vmax.f32 %v896_v63, %v897_v0 }
 0x533   :  { %v899_v11 = vrot.slane %v898_v7, 2  ;;  %v5329_v41 = vpop.xlane.xlu1 %868  ;;  %v5331_v12 = vpop.xlane.xlu0 %865 }
 0x534   :  { %v914_v28 = vmax.f32 %v5325_v3, %v5331_v12 }
 0x535   :  { %v900_v13 = vmax.f32 %v898_v7, %v899_v11 }
 0x536   :  { %v915_v43 = vmax.f32 %v914_v28, %v5329_v41 }
 0x537   :  { %v901_v17 = vrot.slane %v900_v13, 1  ;;  %v5335_v20 = vpop.xlane.xlu1 %856  ;;  %v5337_v22 = vpop.xlane.xlu0 %853 }
 0x538   :  { %v904_v25 = vmax.f32 %v903_v19, %v5337_v22 }
 0x539   :  { %v902_v24 = vmax.f32 %v900_v13, %v901_v17 }
 0x53a   :  { %v905_v36 = vmax.f32 %v904_v25, %v5335_v20  ;;  %v3990_v25 = vld [vmem:[%s6943_s4 + $0x4] sm:$0xf] }
 0x53b   :  { %v936_v29 = vsub.f32 %v832_v51, %v902_v24  ;;  %v937_v30 = vsub.f32 %v835_v50, %v902_v24  ;;  %v938_v31 = vsub.f32 %v838_v54, %v902_v24  ;;  %v5342_v32 = vpop.xlane.xlu1 %871  ;;  %v939_v33 = vsub.f32 %v841_v57, %v902_v24  ;;  %v5345_v38 = vpop.xlane.xlu0 %859 }
 0x53c   :  { %v940_v35 = vsub.f32 %v845_v58, %v902_v24  ;;  %v906_v44 = vsel %vm894_vm6, %v5345_v38, -inf  ;;  %v916_v37 = vmax.f32 %v915_v43, %v5342_v32 }
 0x53d   :  { %v956_v26 = vmul.f32 1.442695, %v936_v29  ;;  %v958_v40 = vmul.f32 1.442695, %v937_v30  ;;  %v960_v42 = vmul.f32 1.442695, %v938_v31  ;;  %v907_v46 = vmax.f32 %v905_v36, %v906_v44 }
 0x53e   :  { %v964_v45 = vmul.f32 1.442695, %v940_v35  ;;  %v962_v47 = vmul.f32 1.442695, %v939_v33 }
 0x53f   :  { %4554 = vpow2.f32 %v956_v26  ;;  %v5350_v39 = vpop.xlane.xlu1 %877  ;;  %v5353_v6 = vpop.xlane.xlu0 %874  ;;  %v908_v50 = vrot.slane %v907_v46, 4 }
 0x540   :  { %4556 = vpow2.f32 %v958_v40  ;;  %v917_v51 = vsel %vm894_vm6, %v5353_v6, -inf }
 0x541   :  { %4558 = vpow2.f32 %v960_v42  ;;  %v918_v52 = vmax.f32 %v916_v37, %v917_v51  ;;  %v909_v54 = vmax.f32 %v907_v46, %v908_v50 }
 0x542   :  { %4560 = vpow2.f32 %v964_v45 }
 0x543   :  { %v5357_v55 = vpop.xlane.xlu1 %886  ;;  %4562 = vpow2.f32 %v962_v47  ;;  %v919_v57 = vrot.slane %v918_v52, 4  ;;  %v5359_v34 = vpop.xlane.xlu0 %880  ;;  %v910_v58 = vrot.slane %v909_v54, 2 }
 0x544   :  { %v925_v0 = vmax.f32 %v5350_v39, %v5359_v34 }
 0x545   :  { %v920_v59 = vmax.f32 %v918_v52, %v919_v57  ;;  %v911_v63 = vmax.f32 %v909_v54, %v910_v58 }
 0x547   :  { %v557_v7 = vpop.permute.xlu1 %556  ;;  %v921_v11 = vrot.slane %v920_v59, 2  ;;  %v5363_v13 = vpop.xlane.xlu0 %883  ;;  %v912_v19 = vrot.slane %v911_v63, 1 }
 0x548   :  { %4195 = vmatmul.mubr.msk.f32.vlgmr.msra.gmra.mrb[4].mxu1 %vm366_vm3, %v557_v7  ;;  %v926_v24 = vmax.f32 %v925_v0, %v5363_v13 }
 0x549   :  { %v5366_v17 = vpop.eup %4554  ;;  %4436 = vmatpush3.bf16.msra.mxu1 %v5041_v16  ;;  %4212 = vmatprep.mubr.msk.f32.mxu1 %vm4892_vm0, %v6962_v4  ;;  %v922_v29 = vmax.f32 %v920_v59, %v921_v11  ;;  %v913_v31 = vmax.f32 %v911_v63, %v912_v19 }
 0x54a   :  { %v5375_v28 = vpop.eup %4556  ;;  %4443 = vmatprep.subr.bf16.mxu1 %v6960_v2  ;;  %v927_v36 = vmax.f32 %v926_v24, %v5357_v55 }
 0x54b   :  { %v996_v30 = vadd.f32 %v5375_v28, %v5366_v17  ;;  %v5380_v33 = vpop.eup %4558  ;;  %v923_v35 = vrot.slane %v922_v29, 1  ;;  %v941_v42 = vsub.f32 %v5323_v61, %v913_v31  ;;  %v942_v43 = vsub.f32 %v5327_v5, %v913_v31  ;;  %v5404_v59 = vpop.xlane.xlu0 %889 }
 0x54c   :  { %4213 = vmatmul.mubr.msk.f32.vlgmr.msra.gmra.mrb[6].mxu1 %vm292_vm2, %v3990_v25  ;;  %v5384_v26 = vpop.eup %4560  ;;  %v943_v44 = vsub.f32 %v5337_v22, %v913_v31  ;;  %v944_v46 = vsub.f32 %v5335_v20, %v913_v31  ;;  %v945_v47 = vsub.f32 %v5345_v38, %v913_v31  ;;  %v928_v11 = vsel %vm894_vm6, %v5404_v59, -inf }
 0x54d   :  { %v997_v40 = vadd.f32 %v5380_v33, %v996_v30  ;;  %4445 = vmatpush3.bf16.msra.mxu1 %v5065_v23  ;;  %v5391_v45 = vpop.eup %4562  ;;  %v924_v37 = vmax.f32 %v922_v29, %v923_v35  ;;  %4234 = vmatprep.mubr.msk.f32.mxu1 %vm4892_vm0, %v6962_v4  ;;  %v966_v50 = vmul.f32 1.442695, %v941_v42  ;;  %v968_v5 = vmul.f32 1.442695, %v942_v43 }
 0x54e   :  { %4446 = vmatprep.subr.bf16.mxu1 %v6960_v2  ;;  %v970_v51 = vmul.f32 1.442695, %v943_v44  ;;  %v999_v22 = vsel %vm894_vm6, %v5384_v26, 0.0  ;;  %v972_v52 = vmul.f32 1.442695, %v944_v46  ;;  %v929_v24 = vmax.f32 %v927_v36, %v928_v11 }
 0x54f   :  { %v998_v61 = vadd.f32 %v5391_v45, %v997_v40  ;;  %v946_v54 = vsub.f32 %v5325_v3, %v924_v37  ;;  %v947_v20 = vsub.f32 %v5331_v12, %v924_v37  ;;  %4564 = vpow2.f32 %v966_v50 }
 0x550   :  { %v974_v57 = vmul.f32 1.442695, %v945_v47  ;;  %v948_v58 = vsub.f32 %v5329_v41, %v924_v37  ;;  %4566 = vpow2.f32 %v968_v5  ;;  %v950_v63 = vsub.f32 %v5353_v6, %v924_v37 }
 0x551   :  { %v1000_v38 = vadd.f32 %v999_v22, %v998_v61  ;;  %4448 = vmatpush3.bf16.msra.mxu1 %v5091_v27  ;;  %v976_v0 = vmul.f32 1.442695, %v946_v54  ;;  %4568 = vpow2.f32 %v970_v51  ;;  %v949_v3 = vsub.f32 %v5342_v32, %v924_v37 }
 0x552   :  { %4455 = vmatprep.subr.bf16.mxu1 %v6960_v2  ;;  %v978_v12 = vmul.f32 1.442695, %v947_v20  ;;  %4570 = vpow2.f32 %v972_v52  ;;  %v980_v19 = vmul.f32 1.442695, %v948_v58  ;;  %v984_v6 = vmul.f32 1.442695, %v950_v63 }
 0x553   :  { %v1001_v7 = vrot.slane %v1000_v38, 4  ;;  %4572 = vpow2.f32 %v974_v57  ;;  %v982_v32 = vmul.f32 1.442695, %v949_v3  ;;  %v930_v25 = vrot.slane %v929_v24, 4 }
 0x554   :  { %4235 = vmatmul.mubr.msk.f32.vlgmr.msra.gmra.mrb[8].mxu1 %vm366_vm3, %v5153_v10  ;;  %4574 = vpow2.f32 %v976_v0 }
 0x555   :  { %v1002_v41 = vadd.f32 %v1001_v7, %v1000_v38  ;;  %4457 = vmatpush3.bf16.msra.mxu1 %v5125_v60  ;;  %4256 = vmatprep.mubr.msk.f32.mxu1 %vm4892_vm0, %v6962_v4  ;;  %4576 = vpow2.f32 %v978_v12  ;;  %v931_v30 = vmax.f32 %v929_v24, %v930_v25 }
 0x556   :  { %4458 = vmatprep.subr.bf16.mxu1 %v6960_v2  ;;  %4578 = vpow2.f32 %v980_v19 }
 0x557   :  { %v1003_v29 = vrot.slane %v1002_v41, 2  ;;  %4580 = vpow2.f32 %v984_v6  ;;  %v932_v31 = vrot.slane %v931_v30, 2 }
 0x558   :  { %4582 = vpow2.f32 %v982_v32 }
 0x559   :  { %4460 = vmatpush3.bf16.msra.mxu1 %v5131_v62  ;;  %v5420_v10 = vpop.eup %4564  ;;  %v1004_v36 = vadd.f32 %v1003_v29, %v1002_v41  ;;  %v933_v43 = vmax.f32 %v931_v30, %v932_v31 }
 0x55a   :  { %4464 = vmatprep.subr.bf16.mxu1 %v6960_v2  ;;  %v5422_v35 = vpop.eup %4566 }
 0x55b   :  { %v5424_v40 = vpop.eup %4568  ;;  %v1007_v42 = vadd.f32 %v5422_v35, %v5420_v10  ;;  %v934_v37 = vrot.slane %v933_v43, 1  ;;  %v1005_v50 = vrot.slane %v1004_v36, 1 }
 0x55c   :  { %v5428_v44 = vpop.eup %4570 }
 0x55d   :  { %v5430_v46 = vpop.eup %4572  ;;  %v1008_v47 = vadd.f32 %v5424_v40, %v1007_v42  ;;  %v935_v22 = vmax.f32 %v933_v43, %v934_v37  ;;  %v1006_v7 = vadd.f32 %v1005_v50, %v1004_v36 }
 0x55e   :  { %v5433_v61 = vpop.eup %4574  ;;  %v1010_v52 = vsel %vm894_vm6, %v5430_v46, 0.0 }
 0x55f   :  { %v5435_v5 = vpop.eup %4576  ;;  %v1009_v51 = vadd.f32 %v5428_v44, %v1008_v47  ;;  %v951_v57 = vsub.f32 %v5350_v39, %v935_v22  ;;  %v952_v58 = vsub.f32 %v5359_v34, %v935_v22  ;;  %v953_v63 = vsub.f32 %v5363_v13, %v935_v22 }
 0x560   :  { %v1018_v54 = vadd.f32 %v5435_v5, %v5433_v61  ;;  %v5442_v20 = vpop.eup %4578  ;;  %v954_v12 = vsub.f32 %v5357_v55, %v935_v22  ;;  %v955_v19 = vsub.f32 %v5404_v59, %v935_v22 }
 0x561   :  { %v1011_v38 = vadd.f32 %v1010_v52, %v1009_v51  ;;  %v5447_v0 = vpop.eup %4580  ;;  %v986_v24 = vmul.f32 1.442695, %v951_v57  ;;  %v988_v6 = vmul.f32 1.442695, %v952_v58  ;;  %v990_v32 = vmul.f32 1.442695, %v953_v63 }
 0x562   :  { %v1019_v3 = vadd.f32 %v5442_v20, %v1018_v54  ;;  %v5451_v11 = vpop.eup %4582  ;;  %v1021_v13 = vsel %vm894_vm6, %v5447_v0, 0.0  ;;  %v992_v29 = vmul.f32 1.442695, %v954_v12  ;;  %v994_v30 = vmul.f32 1.442695, %v955_v19  ;;  %v5476_v19 = vld [vmem:[%s7011_s3] sm:$0xff] }
 0x563   :  { %v1012_v41 = vrot.slane %v1011_v38, 4  ;;  %4584 = vpow2.f32 %v986_v24  ;;  %v5481_v24 = vld [vmem:[%s7011_s3 + $0x8] sm:$0xff] }
 0x564   :  { %v1020_v39 = vadd.f32 %v5451_v11, %v1019_v3  ;;  %4586 = vpow2.f32 %v988_v6 }
 0x565   :  { %v1013_v34 = vadd.f32 %v1012_v41, %v1011_v38  ;;  %4588 = vrcp.f32 %v1006_v7 }
 0x566   :  { %v1022_v25 = vadd.f32 %v1021_v13, %v1020_v39  ;;  %4590 = vpow2.f32 %v990_v32  ;;  %v70_v13 = vld [vmem:[%s7011_s3 + $0x30] sm:$0xff] }
 0x567   :  { %v1014_v55 = vrot.slane %v1013_v34, 2  ;;  %4592 = vpow2.f32 %v992_v29 }
 0x568   :  { %v1023_v36 = vrot.slane %v1022_v25, 4  ;;  %4594 = vpow2.f32 %v994_v30 }
 0x569   :  { %v1015_v31 = vadd.f32 %v1014_v55, %v1013_v34  ;;  %v69_v34 = vld [vmem:[%s7011_s3 + $0x28] sm:$0xff] }
 0x56a   :  { %v1024_v42 = vadd.f32 %v1023_v36, %v1022_v25  ;;  %v71_v36 = vld [vmem:[%s7011_s3 + $0x38] sm:$0xff] }
 0x56b   :  { %v1016_v59 = vrot.slane %v1015_v31, 1 }
 0x56c   :  { %v1025_v47 = vrot.slane %v1024_v42, 2 }
 0x56d   :  { %v1017_v43 = vadd.f32 %v1016_v59, %v1015_v31  ;;  %v5457_v37 = vpop.eup %4584 }
 0x56e   :  { %v1026_v50 = vadd.f32 %v1025_v47, %v1024_v42  ;;  %v5459_v51 = vpop.eup %4586  ;;  %v5503_v42 = vld [vmem:[%s7011_s3 + $0x10] sm:$0xff] }
 0x56f   :  { %4596 = vrcp.f32 %v1017_v43  ;;  %v4589_v22 = vpop.eup %4588  ;;  %v1029_v54 = vadd.f32 %v5459_v51, %v5457_v37 }
 0x570   :  { %v1027_v52 = vrot.slane %v1026_v50, 1  ;;  %v5463_v38 = vpop.eup %4590  ;;  %v1044_v3 = vmul.f32 %v4589_v22, %v5366_v17  ;;  %v1045_v12 = vmul.f32 %v4589_v22, %v5375_v28  ;;  %v1046_v31 = vmul.f32 %v4589_v22, %v5380_v33 }
 0x571   :  { %v1030_v58 = vadd.f32 %v5463_v38, %v1029_v54  ;;  %v5466_v63 = vpop.eup %4592  ;;  %v1047_v33 = vmul.f32 %v4589_v22, %v5391_v45  ;;  %v74_v45 = vld [vmem:[%s7011_s3 + $0x50] sm:$0xff] }
 0x572   :  { %v1028_v57 = vadd.f32 %v1027_v52, %v1026_v50  ;;  %v5468_v7 = vpop.eup %4594  ;;  %v1064_v28 = vmul.f32 %v1044_v3, %v5476_v19  ;;  %v1065_v32 = vmul.f32 %v1045_v12, %v5481_v24  ;;  %v5512_v52 = vld [vmem:[%s7011_s3 + $0x40] sm:$0xff]  ;;  %v1048_v12 = vmul.f32 %v4589_v22, %v5384_v26  ;;  %v5530_v26 = vld [vmem:[%s7011_s3 + $0x18] sm:$0xff] }
 0x573   :  { %v1031_v41 = vadd.f32 %v5466_v63, %v1030_v58  ;;  %v1032_v6 = vsel %vm894_vm6, %v5468_v7, 0.0 }
 0x574   :  { %4598 = vrcp.f32 %v1028_v57 }
 0x575   :  { %v1033_v39 = vadd.f32 %v1032_v6, %v1031_v41  ;;  %v1066_v41 = vmul.f32 %v1046_v31, %v5503_v42 }
 0x577   :  { %v1034_v25 = vrot.slane %v1033_v39, 4 }
 0x579   :  { %v4597_v17 = vpop.eup %4596  ;;  %v1035_v59 = vadd.f32 %v1034_v25, %v1033_v39  ;;  %v75_v39 = vld [vmem:[%s7011_s3 + $0x58] sm:$0xff] }
 0x57a   :  { %v1049_v29 = vmul.f32 %v4597_v17, %v5420_v10  ;;  %v1050_v55 = vmul.f32 %v4597_v17, %v5422_v35  ;;  %v1051_v30 = vmul.f32 %v4597_v17, %v5424_v40  ;;  %v1084_v10 = vsel %vm366_vm3, %v1064_v28, 0.0  ;;  %v76_v28 = vld [vmem:[%s7011_s3 + $0x60] sm:$0xff] }
 0x57b   :  { %v1085_v35 = vsel %vm366_vm3, %v1065_v32, 0.0  ;;  %v1052_v40 = vmul.f32 %v4597_v17, %v5428_v44  ;;  %v1036_v50 = vrot.slane %v1035_v59, 2  ;;  %v1053_v25 = vmul.f32 %v4597_v17, %v5430_v46  ;;  %v5546_v46 = vld [vmem:[%s7011_s3 + $0x48] sm:$0xf] }
 0x57c   :  { %v1069_v43 = vmul.f32 %v1049_v29, %v69_v34  ;;  %v1070_v47 = vmul.f32 %v1050_v55, %v70_v13  ;;  %v1071_v54 = vmul.f32 %v1051_v30, %v71_v36  ;;  %v1086_v22 = vadd.f32 %v1085_v35, %v1084_v10  ;;  %v77_v30 = vld [vmem:[%s7011_s3 + $0x68] sm:$0xff] }
 0x57d   :  { %v1037_v44 = vadd.f32 %v1036_v50, %v1035_v59  ;;  %v1072_v29 = vmul.f32 %v1052_v40, %v5512_v52  ;;  %v1087_v10 = vsel %vm366_vm3, %v1066_v41, 0.0 }
 0x57e   :  { %v1099_v57 = vsel %vm366_vm3, %v1069_v43, 0.0  ;;  %v1100_v58 = vsel %vm366_vm3, %v1070_v47, 0.0  ;;  %v4599_v3 = vpop.eup %4598  ;;  %v1102_v36 = vsel %vm366_vm3, %v1071_v54, 0.0  ;;  %v1088_v54 = vadd.f32 %v1087_v10, %v1086_v22 }
 0x57f   :  { %v1101_v6 = vadd.f32 %v1100_v58, %v1099_v57  ;;  %v1054_v32 = vmul.f32 %v4599_v3, %v5433_v61  ;;  %v1055_v34 = vmul.f32 %v4599_v3, %v5435_v5  ;;  %v1056_v13 = vmul.f32 %v4599_v3, %v5442_v20 }
 0x580   :  { %v1038_v55 = vrot.slane %v1037_v44, 1  ;;  %v1057_v31 = vmul.f32 %v4599_v3, %v5451_v11  ;;  %v1067_v5 = vmul.f32 %v1047_v33, %v5530_v26  ;;  %v1058_v17 = vmul.f32 %v4599_v3, %v5447_v0  ;;  %v5553_v11 = vld [vmem:[%s7011_s3 + $0x70] sm:$0xf]  ;;  %v5560_v33 = vld [vmem:[%s7011_s3 + $0x20] sm:$0xf] }
 0x581   :  { %v1074_v59 = vmul.f32 %v1054_v32, %v74_v45  ;;  %v1075_v43 = vmul.f32 %v1055_v34, %v75_v39  ;;  %v1076_v61 = vmul.f32 %v1056_v13, %v76_v28  ;;  %v1103_v20 = vadd.f32 %v1102_v36, %v1101_v6  ;;  %v5580_v36 = vld [vmem:[%s7011_s3 + $0x80] sm:$0xff] }
 0x582   :  { %v1039_v47 = vadd.f32 %v1038_v55, %v1037_v44  ;;  %v1077_v35 = vmul.f32 %v1057_v31, %v77_v30  ;;  %v1073_v57 = vmul.f32 %v1053_v25, %v5546_v46  ;;  %v1104_v58 = vsel %vm366_vm3, %v1072_v29, 0.0 }
 0x583   :  { %v1114_v40 = vsel %vm366_vm3, %v1074_v59, 0.0  ;;  %v1115_v50 = vsel %vm366_vm3, %v1075_v43, 0.0  ;;  %v1117_v3 = vsel %vm366_vm3, %v1076_v61, 0.0  ;;  %v1105_v41 = vadd.f32 %v1104_v58, %v1103_v20  ;;  %v5585_v59 = vld [vmem:[%s7011_s3 + $0x88] sm:$0xff] }
 0x584   :  { %4600 = vrcp.f32 %v1039_v47  ;;  %v1116_v0 = vadd.f32 %v1115_v50, %v1114_v40  ;;  %v1078_v6 = vmul.f32 %v1058_v17, %v5553_v11  ;;  %v1068_v45 = vmul.f32 %v1048_v12, %v5560_v33  ;;  %v5575_v12 = vld [vmem:[%s7011_s3 + $0x78] sm:$0xff]  ;;  %v5593_v47 = vld [vmem:[%s7011_s3 + $0x90] sm:$0xff] }
 0x585   :  { %v1089_v39 = vsel %vm366_vm3, %v1067_v5, 0.0  ;;  %v1119_v28 = vsel %vm366_vm3, %v1077_v35, 0.0  ;;  %v1106_v34 = vsel %vm842_vm5, %v1073_v57, 0.0 }
 0x586   :  { %v1118_v44 = vadd.f32 %v1117_v3, %v1116_v0  ;;  %v1090_v32 = vadd.f32 %v1089_v39, %v1088_v54  ;;  %v1107_v13 = vadd.f32 %v1106_v34, %v1105_v41  ;;  %v1121_v25 = vsel %vm842_vm5, %v1078_v6, 0.0 }
 0x587   :  { %v1091_v29 = vsel %vm842_vm5, %v1068_v45, 0.0 }
 0x588   :  { %v1120_v22 = vadd.f32 %v1119_v28, %v1118_v44  ;;  %v1092_v30 = vadd.f32 %v1091_v29, %v1090_v32  ;;  %v1108_v43 = vrot.slane %v1107_v13, 4 }
 0x58a   :  { %v1122_v55 = vadd.f32 %v1121_v25, %v1120_v22  ;;  %v1093_v35 = vrot.slane %v1092_v30, 4 }
 0x58c   :  { %v1123_v17 = vrot.slane %v1122_v55, 4 }
 0x58e   :  { %v4601_v31 = vpop.eup %4600  ;;  %v1124_v57 = vadd.f32 %v1123_v17, %v1122_v55 }
 0x58f   :  { %v1059_v61 = vmul.f32 %v4601_v31, %v5457_v37  ;;  %v1060_v5 = vmul.f32 %v4601_v31, %v5459_v51  ;;  %v1061_v20 = vmul.f32 %v4601_v31, %v5463_v38  ;;  %v1062_v10 = vmul.f32 %v4601_v31, %v5466_v63  ;;  %v5603_v51 = vld [vmem:[%s7011_s3 + $0x98] sm:$0xf] }
 0x590   :  { %v1063_v40 = vmul.f32 %v4601_v31, %v5468_v7  ;;  %v1109_v38 = vadd.f32 %v1108_v43, %v1107_v13  ;;  %v1094_v7 = vadd.f32 %v1093_v35, %v1092_v30  ;;  %v1125_v39 = vrot.slane %v1124_v57, 2 }
 0x591   :  { %v1079_v50 = vmul.f32 %v1059_v61, %v5575_v12  ;;  %v1080_v54 = vmul.f32 %v1060_v5, %v5580_v36  ;;  %v1081_v37 = vmul.f32 %v1061_v20, %v5585_v59  ;;  %v1082_v0 = vmul.f32 %v1062_v10, %v5593_v47 }
 0x592   :  { %v1083_v41 = vmul.f32 %v1063_v40, %v5603_v51  ;;  %v1110_v44 = vrot.slane %v1109_v38, 2  ;;  %v1095_v32 = vrot.slane %v1094_v7, 2  ;;  %v1126_v29 = vadd.f32 %v1125_v39, %v1124_v57  ;;  %v5625_v57 = vld [vmem:[%s6956_s17] ss:$0 sm:$0xff] }
 0x593   :  { %v1129_v63 = vsel %vm366_vm3, %v1079_v50, 0.0  ;;  %v1130_v58 = vsel %vm366_vm3, %v1080_v54, 0.0  ;;  %v1132_v6 = vsel %vm366_vm3, %v1081_v37, 0.0  ;;  %v1134_v28 = vsel %vm366_vm3, %v1082_v0, 0.0 }
 0x594   :  { %v1131_v3 = vadd.f32 %v1130_v58, %v1129_v63  ;;  %v1136_v34 = vsel %vm842_vm5, %v1083_v41, 0.0  ;;  %v1111_v13 = vadd.f32 %v1110_v44, %v1109_v38  ;;  %v1096_v55 = vadd.f32 %v1095_v32, %v1094_v7 }
 0x595   :  { %v1127_v61 = vrot.slane %v1126_v29, 1 }
 0x596   :  { %v1133_v45 = vadd.f32 %v1132_v6, %v1131_v3  ;;  %v1112_v30 = vrot.slane %v1111_v13, 1  ;;  %v1097_v5 = vrot.slane %v1096_v55, 1 }
 0x597   :  { %v1128_v35 = vadd.f32 %v1127_v61, %v1126_v29 }
 0x598   :  { %v1135_v22 = vadd.f32 %v1134_v28, %v1133_v45  ;;  %v1113_v17 = vadd.f32 %v1112_v30, %v1111_v13  ;;  %v1098_v40 = vadd.f32 %v1097_v5, %v1096_v55  ;;  %v5642_v5 = vsel %vm5142_vm4, %v5113_v56, %v5110_v53 }
 0x59a   :  { %v1137_v25 = vadd.f32 %v1136_v34, %v1135_v22  ;;  %v1224_v37 = vsel %vm1223_vm7, %v1113_v17, %v1098_v40  ;;  %v5633_v34 = vld [vmem:[%s6948_s9] ss:$0 sm:$0xff]  ;;  %v1473_v40 = vstv %s3996_s21 }
 0x59b   :  { %v1226_v38 = vsel %vm1225_vm8, %v1128_v35, %v1224_v37  ;;  %vm5652_vm10 = vcmp.lt.s32.totalorder %v5137_v1, %v1473_v40 }
 0x59c   :  { %v1138_v31 = vrot.slane %v1137_v25, 4 }
 0x59e   :  { %v1139_v43 = vadd.f32 %v1138_v31, %v1137_v25 }
 0x5a0   :  { %v1140_v20 = vrot.slane %v1139_v43, 2 }
 0x5a2   :  { %v1141_v10 = vadd.f32 %v1140_v20, %v1139_v43 }
 0x5a4   :  { %v1142_v50 = vrot.slane %v1141_v10, 1 }
 0x5a6   :  { %v1143_v54 = vadd.f32 %v1142_v50, %v1141_v10 }
 0x5a8   :  { %v1228_v0 = vsel %vm1227_vm9, %v1143_v54, %v1226_v38 }
 0x5a9   :  { %4224 = vmatmul.mubr.msk.f32.vlgmr.msra.gmra.mrb[8].mxu0 %vm366_vm3, %v1228_v0 }
 0x5aa   :  { %4451 = vmatpush3.bf16.msra.mxu0 %v5308_v48  ;;  %4245 = vmatprep.mubr.msk.f32.mxu0 %vm4892_vm0, %v6962_v4 }
 0x5ab   :  { %4452 = vmatprep.subr.bf16.mxu0 %v6960_v2 }
 0x5ae   :  { %4454 = vmatpush3.bf16.msra.mxu0 %v5318_v49 }
 0x5af   :  { %4461 = vmatprep.subr.bf16.mxu0 %v6960_v2 }
 0x61b   :  { %v626_v63 = vpop.f32.mrb[4].mxu1 }
 0x61c   :  { %v627_v58 = vadd.f32 %v5625_v57, %v626_v63  ;;  %v4196_v7 = vpop.f32.mrb[5].mxu1 }
 0x61e   :  { %v637_v3 = vsel %vm5142_vm4, %v627_v58, 0.0 }
 0x61f   :  { %638 = vst [vmem:[#allocation4] sm:$0xf] %v637_v3  ;;  %v1215_v41 = vpop.f32.mrb[6].mxu1 }
 0x620   :  { %v4214_v6 = vpop.f32.mrb[7].mxu1 }
 0x621   :  { %v5684_v6 = vld [vmem:[%s7010_s29 + $0x8] sm:$0xff] }
 0x622   :  { %7015 = vst [vmem:[#allocation14_spill] sm:$0xff] %v5684_v6 }
 0x627   :  { %v1367_v44 = vpop.f32.mrb[8].mxu1 }
 0x628   :  { %v4236_v45 = vpop.f32.mrb[9].mxu1 }
 0x629   :  { %v5690_v45 = vld [vmem:[%s7010_s29] sm:$0xff] }
 0x62a   :  { %7016 = vst [vmem:[#allocation15_spill] sm:$0xff] %v5690_v45 }
 0x67c   :  { %v1297_v39 = vpop.f32.mrb[8].mxu0 }
 0x67d   :  { %v1298_v28 = vadd.f32 %v1297_v39, %v1215_v41  ;;  %v4225_v32 = vpop.f32.mrb[9].mxu0 }
 0x67f   :  { %v1371_v22 = vadd.f32 %v1367_v44, %v1298_v28  ;;  %v5696_v28 = vld [vmem:[%s7010_s29 + $0x10] sm:$0xff] }
 0x680   :  { %7017 = vst [vmem:[#allocation16_spill] sm:$0xff] %v5696_v28 }
 0x681   :  { %v1372_v13 = vadd.f32 %v5633_v34, %v1371_v22  ;;  %v5702_v22 = vld [vmem:[%s7010_s29 + $0x18] sm:$0xff] }
 0x682   :  { %7018 = vst [vmem:[#allocation17_spill] sm:$0xff] %v5702_v22 }
 0x683   :  { %4602 = vtanh.f32 %v1372_v13  ;;  %v3994_v29 = vmul.f32 -1.442695, %v1372_v13 }
 0x685   :  { %4604 = vpow2.f32 %v3994_v29 }
 0x68d   :  { %v4603_v25 = vpop.eup %4602 }
 0x68e   :  { %1382 = vrot.lane.b32.xlu0 %v4603_v25, %s4894_s10 }
 0x68f   :  { %v4605_v55 = vpop.eup %4604 }
 0x690   :  { %v1376_v31 = vadd.f32 1.0, %v4605_v55  ;;  %v5711_v55 = vld [vmem:[%s7010_s29 + $0x20] sm:$0xf] }
 0x691   :  { %7019 = vst [vmem:[#allocation18_spill] sm:$0xff] %v5711_v55 }
 0x692   :  { %4606 = vrcp.f32 %v1376_v31 }
 0x69c   :  { %v4607_v30 = vpop.eup %4606 }
 0x69d   :  { %v1380_v20 = vmul.f32 %v4607_v30, %v5642_v5 }
 0x700   :  { %v1383_v43 = vpop.permute.xlu0 %1382 }
 0x701   :  { %v1385_v61 = vmul.f32 %v4607_v30, %v1383_v43 }
 0x703   :  { %1387 = vrot.lane.b32.xlu1 %v1385_v61, %s4895_s2 }
 0x775   :  { %v1388_v17 = vpop.permute.xlu1 %1387 }
 0x776   :  { %v5645_v10 = vadd.f32 %v1388_v17, %v1380_v20  ;;  %v5717_v20 = vld [vmem:[%s7010_s29 + $0x30] sm:$0xff] }
 0x777   :  { %7020 = vst [vmem:[#allocation19_spill] sm:$0xff] %v5717_v20 }
 0x778   :  { %4608 = vtanh.f32 %v5645_v10 }
 0x782   :  { %v4609_v35 = vpop.eup %4608 }
 0x783   :  { %1393 = vrot.lane.b32.xlu1 %v4609_v35, %s4894_s10  ;;  %v5724_v35 = vld [vmem:[%s6954_s15] ss:$0 sm:$0xff] }
 0x784   :  { %7021 = vst [vmem:[#allocation20_spill] sm:$0xff] %v5724_v35 }
 0x7f5   :  { %v1394_v50 = vpop.permute.xlu1 %1393 }
 0x7f6   :  { %v5649_v54 = vmul.f32 %v4607_v30, %v1394_v50 }
 0x7f8   :  { %v5660_v53 = vsel %vm5652_vm10, %v5649_v54, %v5149_v9 }
 0x7f9   :  { %7014 = vst [vmem:[#allocation13_spill] sm:$0xff] %v5660_v53  ;;  %1483 = vrot.lane.b32.xlu0 %v5660_v53, %s4895_s2 }
 0x86b   :  { %v5664_v56 = vpop.permute.xlu0 %1483 }
 0x86c   :  { %4257 = vmatmul.mubr.msk.f32.vlgmr.msra.gmra.mrb[10].mxu1 %vm366_vm3, %v5664_v56 }
 0x86d   :  { %4466 = vmatpush3.bf16.msra.mxu1 %v5039_v15  ;;  %4274 = vmatprep.mubr.msk.f32.mxu1 %vm4892_vm0, %v6962_v4 }
 0x86e   :  { %4467 = vmatprep.subr.bf16.mxu1 %v6960_v2 }
 0x871   :  { %4469 = vmatpush3.bf16.msra.mxu1 %v5058_v21 }
 0x872   :  { %4476 = vmatprep.subr.bf16.mxu1 %v6960_v2 }
 0x93f   :  { %v1553_v9 = vpop.f32.mrb[10].mxu1 }
 0x940   :  { %v1564_v37 = vrot.slane %v1553_v9, %v5164_v14  ;;  %v4258_v38 = vpop.f32.mrb[11].mxu1 }
 0x942   :  { %v1565_v0 = vcombine.high %v1564_v37, %v1564_v37  ;;  %v1572_v63 = vrot.slane %v1564_v37, %v5164_v14 }
 0x944   :  { %v1579_v58 = vrot.slane %v1565_v0, %v5164_v14  ;;  %v1580_v7 = vcombine.high %v1572_v63, %v1572_v63  ;;  %v1585_v3 = vrot.slane %v1572_v63, %v5167_v18  ;;  %v5733_v0 = vld [vmem:[%s7010_s29 + $0x28] sm:$0xff] }
 0x945   :  { %7022 = vst [vmem:[#allocation21_spill] sm:$0xff] %v5733_v0 }
 0x946   :  { %v5679_v41 = vrot.slane %v1579_v58, %v5167_v18  ;;  %v1603_v44 = vadd.f32 %v5684_v6, %v1585_v3  ;;  %v1602_v39 = vadd.f32 %v5690_v45, %v1585_v3  ;;  %v1604_v32 = vadd.f32 %v5696_v28, %v1585_v3 }
 0x947   :  { %v1605_v13 = vadd.f32 %v5702_v22, %v1585_v3  ;;  %v5706_v25 = vrot.slane %v1580_v7, %v5167_v18  ;;  %v1606_v31 = vadd.f32 %v5711_v55, %v1585_v3 }
 0x948   :  { %v1623_v29 = vmax.f32 %v1603_v44, 0.0  ;;  %v1622_v30 = vmax.f32 %v1602_v39, 0.0  ;;  %v1624_v43 = vmax.f32 %v1604_v32, 0.0  ;;  %v1608_v17 = vadd.f32 %v5717_v20, %v5679_v41  ;;  %v5742_v39 = vld [vmem:[%s7010_s29 + $0x58] sm:$0xff] }
 0x949   :  { %v1625_v61 = vmax.f32 %v1605_v13, 0.0  ;;  %v1626_v38 = vmax.f32 %v1606_v31, 0.0  ;;  %v1607_v63 = vadd.f32 %v5733_v0, %v5679_v41  ;;  %7023 = vst [vmem:[#allocation22_spill] sm:$0xff] %v5742_v39  ;;  %v1613_v32 = vadd.f32 %v5742_v39, %v5706_v25 }
 0x94a   :  { %v1643_v40 = vmul.f32 %v5724_v35, %v1623_v29  ;;  %v1642_v50 = vmul.f32 %v5724_v35, %v1622_v30  ;;  %v1644_v37 = vmul.f32 %v5724_v35, %v1624_v43  ;;  %v1628_v44 = vmax.f32 %v1608_v17, 0.0  ;;  %v5751_v30 = vld [vmem:[%s7010_s29 + $0x50] sm:$0xff] }
 0x94b   :  { %v1645_v3 = vmul.f32 %v5724_v35, %v1625_v61  ;;  %v1646_v29 = vmul.f32 %v5724_v35, %v1626_v38  ;;  %v1627_v31 = vmax.f32 %v1607_v63, 0.0  ;;  %7024 = vst [vmem:[#allocation23_spill] sm:$0xff] %v5751_v30  ;;  %v1612_v43 = vadd.f32 %v5751_v30, %v5706_v25 }
 0x94c   :  { %v1665_v9 = vsel %vm366_vm3, %v1643_v40, 0.0  ;;  %v1662_v7 = vsel %vm366_vm3, %v1642_v50, 0.0  ;;  %v1668_v13 = vsel %vm366_vm3, %v1644_v37, 0.0  ;;  %v1648_v17 = vmul.f32 %v5724_v35, %v1628_v44  ;;  %v5760_v50 = vld [vmem:[%s7010_s29 + $0x38] sm:$0xff] }
 0x94d   :  { %1666 = vadd.xlane.f32.xlu0 %v1665_v9  ;;  %1663 = vadd.xlane.f32.xlu1 %v1662_v7  ;;  %v1671_v61 = vsel %vm366_vm3, %v1645_v3, 0.0  ;;  %v1633_v40 = vmax.f32 %v1613_v32, 0.0  ;;  %7025 = vst [vmem:[#allocation24_spill] sm:$0xff] %v5760_v50  ;;  %v1609_v9 = vadd.f32 %v5760_v50, %v5679_v41  ;;  %v1581_v37 = vcombine.high %v1579_v58, %v1579_v58  ;;  %v5769_v3 = vld [vmem:[%s7010_s29 + $0x60] sm:$0xff]  ;;  %v5778_v58 = vld [vmem:[%s7010_s29 + $0x48] sm:$0xf] }
 0x94e   :  { %v1674_v38 = vsel %vm842_vm5, %v1646_v29, 0.0  ;;  %v1647_v63 = vmul.f32 %v5724_v35, %v1627_v31  ;;  %v1632_v7 = vmax.f32 %v1612_v43, 0.0  ;;  %7026 = vst [vmem:[#allocation25_spill] sm:$0xff] %v5769_v3  ;;  %v1614_v44 = vadd.f32 %v5769_v3, %v5706_v25  ;;  %7027 = vst [vmem:[#allocation26_spill] sm:$0xff] %v5778_v58 }
 0x94f   :  { %v1680_v32 = vsel %vm366_vm3, %v1648_v17, 0.0  ;;  %v1611_v29 = vadd.f32 %v5778_v58, %v5679_v41  ;;  %v1597_v31 = vrot.slane %v1581_v37, %v5167_v18  ;;  %v5788_v17 = vld [vmem:[%s7010_s29 + $0x40] sm:$0xff]  ;;  %v5797_v37 = vld [vmem:[%s7010_s29 + $0x70] sm:$0xf] }
 0x950   :  { %v1677_v43 = vsel %vm366_vm3, %v1647_v63, 0.0  ;;  %v1634_v2 = vmax.f32 %v1614_v44, 0.0  ;;  %7028 = vst [vmem:[#allocation27_spill] sm:$0xff] %v5788_v17  ;;  %7029 = vst [vmem:[#allocation28_spill] sm:$0xff] %v5797_v37  ;;  %v1616_v63 = vadd.f32 %v5797_v37, %v5706_v25 }
 0x951   :  { %1669 = vadd.xlane.f32.xlu0 %v1668_v13  ;;  %1672 = vadd.xlane.f32.xlu1 %v1671_v61  ;;  %v1653_v13 = vmul.f32 %v5724_v35, %v1633_v40  ;;  %v1629_v61 = vmax.f32 %v1609_v9, 0.0  ;;  %v1610_v40 = vadd.f32 %v5788_v17, %v5679_v41  ;;  %v1631_v4 = vmax.f32 %v1611_v29, 0.0 }
 0x952   :  { %v1654_v44 = vmul.f32 %v5724_v35, %v1634_v2  ;;  %v1636_v37 = vmax.f32 %v1616_v63, 0.0 }
 0x953   :  { %v1695_v9 = vsel %vm366_vm3, %v1653_v13, 0.0  ;;  %v1630_v41 = vmax.f32 %v1610_v40, 0.0  ;;  %v5806_v13 = vld [vmem:[%s7010_s29 + $0x68] sm:$0xff] }
 0x954   :  { %7030 = vst [vmem:[#allocation29_spill] sm:$0xff] %v5806_v13  ;;  %v1698_v40 = vsel %vm366_vm3, %v1654_v44, 0.0  ;;  %v1656_v63 = vmul.f32 %v5724_v35, %v1636_v37  ;;  %v5831_v44 = vld [vmem:[%s7010_s29 + $0x88] sm:$0xff] }
 0x955   :  { %1675 = vadd.xlane.f32.xlu0 %v1674_v38  ;;  %1681 = vadd.xlane.f32.xlu1 %v1680_v32  ;;  %v1652_v38 = vmul.f32 %v5724_v35, %v1632_v7  ;;  %v1649_v32 = vmul.f32 %v5724_v35, %v1629_v61  ;;  %v1615_v61 = vadd.f32 %v5806_v13, %v5706_v25  ;;  %v5823_v25 = vld [vmem:[%s7010_s29 + $0x78] sm:$0xff] }
 0x956   :  { %7032 = vst [vmem:[#allocation31_spill] sm:$0xff] %v5823_v25  ;;  %7033 = vst [vmem:[#allocation32_spill] sm:$0xff] %v5831_v44 }
 0x957   :  { %v1692_v7 = vsel %vm366_vm3, %v1652_v38, 0.0  ;;  %v1683_v29 = vsel %vm366_vm3, %v1649_v32, 0.0  ;;  %v5815_v38 = vld [vmem:[%s7010_s29 + $0x80] sm:$0xff]  ;;  %v1635_v58 = vmax.f32 %v1615_v61, 0.0 }
 0x958   :  { %7031 = vst [vmem:[#allocation30_spill] sm:$0xff] %v5815_v38  ;;  %v1618_v2 = vadd.f32 %v5815_v38, %v1597_v31 }
 0x959   :  { %1678 = vadd.xlane.f32.xlu0 %v1677_v43  ;;  %1696 = vadd.xlane.f32.xlu1 %v1695_v9  ;;  %v1651_v43 = vmul.f32 %v5724_v35, %v1631_v4  ;;  %v1650_v9 = vmul.f32 %v5724_v35, %v1630_v41  ;;  %v1617_v4 = vadd.f32 %v5823_v25, %v1597_v31 }
 0x95a   :  { %v1619_v41 = vadd.f32 %v5831_v44, %v1597_v31 }
 0x95b   :  { %v1689_v32 = vsel %vm842_vm5, %v1651_v43, 0.0  ;;  %v1686_v61 = vsel %vm366_vm3, %v1650_v9, 0.0  ;;  %v1637_v38 = vmax.f32 %v1617_v4, 0.0  ;;  %v5839_v43 = vld [vmem:[%s7010_s29 + $0x90] sm:$0xff]  ;;  %v5847_v9 = vld [vmem:[%s7010_s29 + $0x98] sm:$0xf] }
 0x95c   :  { %7034 = vst [vmem:[#allocation33_spill] sm:$0xff] %v5839_v43  ;;  %v1620_v37 = vadd.f32 %v5839_v43, %v1597_v31  ;;  %v1639_v25 = vmax.f32 %v1619_v41, 0.0  ;;  %7035 = vst [vmem:[#allocation34_spill] sm:$0xff] %v5847_v9 }
 0x95d   :  { %1693 = vadd.xlane.f32.xlu0 %v1692_v7  ;;  %1684 = vadd.xlane.f32.xlu1 %v1683_v29  ;;  %v1638_v7 = vmax.f32 %v1618_v2, 0.0  ;;  %v1655_v29 = vmul.f32 %v5724_v35, %v1635_v58  ;;  %v1704_v2 = vsel %vm842_vm5, %v1656_v63, 0.0  ;;  %v1621_v58 = vadd.f32 %v5847_v9, %v1597_v31 }
 0x95e   :  { %v1640_v44 = vmax.f32 %v1620_v37, 0.0 }
 0x95f   :  { %v1701_v4 = vsel %vm366_vm3, %v1655_v29, 0.0 }
 0x960   :  { %v1660_v43 = vmul.f32 %v5724_v35, %v1640_v44 }
 0x961   :  { %1699 = vadd.xlane.f32.xlu0 %v1698_v40  ;;  %1690 = vadd.xlane.f32.xlu1 %v1689_v32  ;;  %v1658_v40 = vmul.f32 %v5724_v35, %v1638_v7  ;;  %v1657_v32 = vmul.f32 %v5724_v35, %v1637_v38  ;;  %v1641_v7 = vmax.f32 %v1621_v58, 0.0 }
 0x962   :  { %v1716_v38 = vsel %vm366_vm3, %v1660_v43, 0.0 }
 0x963   :  { %v1710_v63 = vsel %vm366_vm3, %v1658_v40, 0.0  ;;  %v1707_v41 = vsel %vm366_vm3, %v1657_v32, 0.0  ;;  %v1661_v31 = vmul.f32 %v5724_v35, %v1641_v7 }
 0x965   :  { %1687 = vadd.xlane.f32.xlu0 %v1686_v61  ;;  %1705 = vadd.xlane.f32.xlu1 %v1704_v2  ;;  %v1659_v61 = vmul.f32 %v5724_v35, %v1639_v25  ;;  %v1719_v29 = vsel %vm842_vm5, %v1661_v31, 0.0 }
 0x967   :  { %v1713_v13 = vsel %vm366_vm3, %v1659_v61, 0.0 }
 0x969   :  { %1702 = vadd.xlane.f32.xlu0 %v1701_v4  ;;  %1711 = vadd.xlane.f32.xlu1 %v1710_v63 }
 0x96d   :  { %1708 = vadd.xlane.f32.xlu0 %v1707_v41  ;;  %1714 = vadd.xlane.f32.xlu1 %v1713_v13 }
 0x971   :  { %1717 = vadd.xlane.f32.xlu0 %v1716_v38  ;;  %1720 = vadd.xlane.f32.xlu1 %v1719_v29 }
 0x987   :  { %1398 = vrot.lane.b32.xlu0 %v5649_v54, %s4895_s2 }
 0x9da   :  { %v1667_v25 = vpop.xlane.xlu0 %1666  ;;  %v1664_v37 = vpop.xlane.xlu1 %1663 }
 0x9db   :  { %v1722_v2 = vmax.f32 %v1664_v37, %v1667_v25 }
 0x9de   :  { %v1670_v40 = vpop.xlane.xlu0 %1669  ;;  %v1673_v58 = vpop.xlane.xlu1 %1672 }
 0x9df   :  { %v1723_v44 = vmax.f32 %v1722_v2, %v1670_v40 }
 0x9e1   :  { %v1724_v4 = vmax.f32 %v1723_v44, %v1673_v58 }
 0x9e2   :  { %v1676_v32 = vpop.xlane.xlu0 %1675  ;;  %v5863_v13 = vpop.xlane.xlu1 %1681 }
 0x9e3   :  { %v1725_v63 = vsel %vm894_vm6, %v1676_v32, -inf }
 0x9e4   :  { %v1726_v43 = vmax.f32 %v1724_v4, %v1725_v63 }
 0x9e6   :  { %v1727_v61 = vrot.slane %v1726_v43, 4  ;;  %v5865_v7 = vpop.xlane.xlu0 %1678  ;;  %v5867_v41 = vpop.xlane.xlu1 %1696 }
 0x9e7   :  { %v1733_v50 = vmax.f32 %v5865_v7, %v5863_v13 }
 0x9e8   :  { %v1728_v31 = vmax.f32 %v1726_v43, %v1727_v61 }
 0x9ea   :  { %v1729_v54 = vrot.slane %v1728_v31, 2  ;;  %v5869_v38 = vpop.xlane.xlu0 %1693  ;;  %v5871_v29 = vpop.xlane.xlu1 %1684 }
 0x9eb   :  { %v1734_v63 = vmax.f32 %v1733_v50, %v5871_v29 }
 0x9ec   :  { %v1730_v2 = vmax.f32 %v1728_v31, %v1729_v54  ;;  %v1744_v31 = vmax.f32 %v5869_v38, %v5867_v41 }
 0x9ee   :  { %v1731_v9 = vrot.slane %v1730_v2, 1  ;;  %v5873_v44 = vpop.xlane.xlu0 %1699  ;;  %v5877_v17 = vpop.xlane.xlu1 %1690 }
 0x9f0   :  { %v1732_v4 = vmax.f32 %v1730_v2, %v1731_v9  ;;  %v1736_v9 = vsel %vm894_vm6, %v5877_v17, -inf }
 0x9f2   :  { %v1766_v39 = vsub.f32 %v1664_v37, %v1732_v4  ;;  %v1767_v3 = vsub.f32 %v1667_v25, %v1732_v4  ;;  %v1768_v43 = vsub.f32 %v1670_v40, %v1732_v4  ;;  %v5880_v61 = vpop.xlane.xlu0 %1687  ;;  %v1769_v20 = vsub.f32 %v1673_v58, %v1732_v4  ;;  %v5884_v54 = vpop.xlane.xlu1 %1705 }
 0x9f3   :  { %v1770_v30 = vsub.f32 %v1676_v32, %v1732_v4  ;;  %v1735_v35 = vmax.f32 %v1734_v63, %v5880_v61  ;;  %v1745_v25 = vmax.f32 %v1744_v31, %v5873_v44 }
 0x9f4   :  { %v1786_v0 = vmul.f32 1.442695, %v1766_v39  ;;  %v1788_v55 = vmul.f32 1.442695, %v1767_v3  ;;  %v1790_v50 = vmul.f32 1.442695, %v1768_v43 }
 0x9f5   :  { %v1737_v37 = vmax.f32 %v1735_v35, %v1736_v9  ;;  %v1794_v40 = vmul.f32 1.442695, %v1770_v30  ;;  %v1792_v32 = vmul.f32 1.442695, %v1769_v20  ;;  %v1747_v39 = vsel %vm894_vm6, %v5884_v54, -inf }
 0x9f6   :  { %4610 = vpow2.f32 %v1786_v0  ;;  %v5890_v58 = vpop.xlane.xlu0 %1702  ;;  %v5893_v22 = vpop.xlane.xlu1 %1711 }
 0x9f7   :  { %4612 = vpow2.f32 %v1788_v55  ;;  %v1738_v2 = vrot.slane %v1737_v37, 4  ;;  %v1746_v4 = vmax.f32 %v1745_v25, %v5890_v58 }
 0x9f8   :  { %4614 = vpow2.f32 %v1790_v50 }
 0x9f9   :  { %v1739_v3 = vmax.f32 %v1737_v37, %v1738_v2  ;;  %v1748_v63 = vmax.f32 %v1746_v4, %v1747_v39  ;;  %4616 = vpow2.f32 %v1794_v40 }
 0x9fa   :  { %v5897_v43 = vpop.xlane.xlu0 %1708  ;;  %4618 = vpow2.f32 %v1792_v32  ;;  %v5899_v30 = vpop.xlane.xlu1 %1714 }
 0x9fb   :  { %v1740_v35 = vrot.slane %v1739_v3, 2  ;;  %v1749_v0 = vrot.slane %v1748_v63, 4  ;;  %v1755_v55 = vmax.f32 %v5897_v43, %v5893_v22 }
 0x9fd   :  { %v1741_v20 = vmax.f32 %v1739_v3, %v1740_v35  ;;  %v1750_v31 = vmax.f32 %v1748_v63, %v1749_v0  ;;  %v1756_v9 = vmax.f32 %v1755_v55, %v5899_v30 }
 0x9fe   :  { %v5904_v25 = vpop.xlane.xlu0 %1717  ;;  %v5906_v2 = vpop.xlane.xlu1 %1720 }
 0x9ff   :  { %v1742_v50 = vrot.slane %v1741_v20, 1  ;;  %v1751_v37 = vrot.slane %v1750_v31, 2  ;;  %v1757_v40 = vmax.f32 %v1756_v9, %v5904_v25  ;;  %v1758_v4 = vsel %vm894_vm6, %v5906_v2, -inf }
 0xa00   :  { %v5909_v32 = vpop.eup %4610 }
 0xa01   :  { %v5913_v39 = vpop.eup %4612  ;;  %v1743_v28 = vmax.f32 %v1741_v20, %v1742_v50  ;;  %v1752_v3 = vmax.f32 %v1750_v31, %v1751_v37  ;;  %v1759_v63 = vmax.f32 %v1757_v40, %v1758_v4  ;;  %v7036_v40 = vmov 0.0  }
 0xa02   :  { %v1826_v35 = vadd.f32 %v5913_v39, %v5909_v32  ;;  %v1399_v0 = vpop.permute.xlu0 %1398  ;;  %v5917_v55 = vpop.eup %4614  ;;  %v7037_v4 = vmov 0.0|0.0  }
 0xa03   :  { %v1771_v45 = vsub.f32 %v5865_v7, %v1743_v28  ;;  %v1772_v9 = vsub.f32 %v5863_v13, %v1743_v28  ;;  %v1773_v6 = vsub.f32 %v5871_v29, %v1743_v28  ;;  %v1774_v18 = vsub.f32 %v5880_v61, %v1743_v28  ;;  %4246 = vmatmul.mubr.msk.f32.vlgmr.msra.gmra.mrb[10].mxu0 %vm366_vm3, %v1399_v0  ;;  %v5924_v14 = vpop.eup %4616  ;;  %v3998_v13 = vld [vmem:[%s6943_s4 + $0x8] sm:$0xf] }
 0xa04   :  { %v1827_v20 = vadd.f32 %v5917_v55, %v1826_v35  ;;  %v1775_v31 = vsub.f32 %v5877_v17, %v1743_v28  ;;  %v1753_v50 = vrot.slane %v1752_v3, 1  ;;  %v1760_v37 = vrot.slane %v1759_v63, 4  ;;  %4463 = vmatpush3.bf16.msra.mxu0 %v5041_v16  ;;  %4263 = vmatprep.mubr.msk.f32.mxu0 %vm4892_vm0, %v7036_v40  ;;  %v5934_v7 = vpop.eup %4618 }
 0xa05   :  { %v1796_v29 = vmul.f32 1.442695, %v1771_v45  ;;  %v1798_v61 = vmul.f32 1.442695, %v1772_v9  ;;  %4470 = vmatprep.subr.bf16.mxu0 %v7037_v4  ;;  %v1800_v28 = vmul.f32 1.442695, %v1773_v6 }
 0xa06   :  { %v1828_v35 = vadd.f32 %v5934_v7, %v1827_v20  ;;  %v1829_v17 = vsel %vm894_vm6, %v5924_v14, 0.0  ;;  %v1804_v0 = vmul.f32 1.442695, %v1775_v31  ;;  %v1754_v16 = vmax.f32 %v1752_v3, %v1753_v50 }
 0xa07   :  { %4620 = vpow2.f32 %v1796_v29  ;;  %4264 = vmatmul.mubr.msk.f32.vlgmr.msra.gmra.mrb[12].mxu0 %vm292_vm2, %v3998_v13  ;;  %v1802_v15 = vmul.f32 1.442695, %v1774_v18  ;;  %v1761_v53 = vmax.f32 %v1759_v63, %v1760_v37 }
 0xa08   :  { %v1830_v21 = vadd.f32 %v1829_v17, %v1828_v35  ;;  %4622 = vpow2.f32 %v1798_v61  ;;  %4472 = vmatpush3.bf16.msra.mxu0 %v5065_v23  ;;  %4285 = vmatprep.mubr.msk.f32.mxu0 %vm4892_vm0, %v7036_v40  ;;  %v1776_v45 = vsub.f32 %v5869_v38, %v1754_v16  ;;  %v1777_v6 = vsub.f32 %v5867_v41, %v1754_v16 }
 0xa09   :  { %v1778_v9 = vsub.f32 %v5873_v44, %v1754_v16  ;;  %4473 = vmatprep.subr.bf16.mxu0 %v7037_v4  ;;  %4624 = vpow2.f32 %v1800_v28  ;;  %v1779_v20 = vsub.f32 %v5890_v58, %v1754_v16  ;;  %v1780_v18 = vsub.f32 %v5884_v54, %v1754_v16 }
 0xa0a   :  { %v1831_v3 = vrot.slane %v1830_v21, 4  ;;  %4626 = vpow2.f32 %v1804_v0  ;;  %v1806_v63 = vmul.f32 1.442695, %v1776_v45  ;;  %v1808_v31 = vmul.f32 1.442695, %v1777_v6 }
 0xa0b   :  { %4628 = vpow2.f32 %v1802_v15  ;;  %v1810_v37 = vmul.f32 1.442695, %v1778_v9  ;;  %v1762_v13 = vrot.slane %v1761_v53, 2  ;;  %v1814_v41 = vmul.f32 1.442695, %v1780_v18 }
 0xa0c   :  { %v1832_v50 = vadd.f32 %v1831_v3, %v1830_v21  ;;  %4475 = vmatpush3.bf16.msra.mxu0 %v5091_v27  ;;  %4630 = vpow2.f32 %v1806_v63  ;;  %v1812_v44 = vmul.f32 1.442695, %v1779_v20 }
 0xa0d   :  { %4482 = vmatprep.subr.bf16.mxu0 %v7037_v4  ;;  %4632 = vpow2.f32 %v1808_v31  ;;  %v1763_v29 = vmax.f32 %v1761_v53, %v1762_v13 }
 0xa0e   :  { %v1833_v38 = vrot.slane %v1832_v50, 2  ;;  %4634 = vpow2.f32 %v1810_v37 }
 0xa0f   :  { %4286 = vmatmul.mubr.msk.f32.vlgmr.msra.gmra.mrb[14].mxu0 %vm366_vm3, %v5664_v56  ;;  %v1764_v54 = vrot.slane %v1763_v29, 1  ;;  %4636 = vpow2.f32 %v1814_v41 }
 0xa10   :  { %v1834_v16 = vadd.f32 %v1833_v38, %v1832_v50  ;;  %4484 = vmatpush3.bf16.msra.mxu0 %v5125_v60  ;;  %4307 = vmatprep.mubr.msk.f32.mxu0 %vm4892_vm0, %v7036_v40  ;;  %4638 = vpow2.f32 %v1812_v44 }
 0xa11   :  { %v5957_v15 = vpop.eup %4620  ;;  %4485 = vmatprep.subr.bf16.mxu0 %v7037_v4  ;;  %v1765_v53 = vmax.f32 %v1763_v29, %v1764_v54 }
 0xa12   :  { %v5960_v21 = vpop.eup %4622  ;;  %v1835_v58 = vrot.slane %v1834_v16, 1 }
 0xa13   :  { %v1837_v56 = vadd.f32 %v5960_v21, %v5957_v15  ;;  %v5964_v61 = vpop.eup %4624  ;;  %v1781_v35 = vsub.f32 %v5897_v43, %v1765_v53  ;;  %v1782_v28 = vsub.f32 %v5893_v22, %v1765_v53  ;;  %v1783_v17 = vsub.f32 %v5899_v30, %v1765_v53 }
 0xa14   :  { %4487 = vmatpush3.bf16.msra.mxu0 %v5131_v62  ;;  %v5970_v0 = vpop.eup %4626  ;;  %v1785_v6 = vsub.f32 %v5906_v2, %v1765_v53  ;;  %v1784_v3 = vsub.f32 %v5904_v25, %v1765_v53  ;;  %v1836_v22 = vadd.f32 %v1835_v58, %v1834_v16 }
 0xa15   :  { %v1838_v45 = vadd.f32 %v5964_v61, %v1837_v56  ;;  %4491 = vmatprep.subr.bf16.mxu0 %v7037_v4  ;;  %v5975_v9 = vpop.eup %4628  ;;  %v1816_v20 = vmul.f32 1.442695, %v1781_v35  ;;  %v1818_v43 = vmul.f32 1.442695, %v1782_v28  ;;  %v1840_v31 = vsel %vm894_vm6, %v5970_v0, 0.0 }
 0xa16   :  { %v5978_v18 = vpop.eup %4630  ;;  %v1820_v2 = vmul.f32 1.442695, %v1783_v17  ;;  %v1824_v25 = vmul.f32 1.442695, %v1785_v6  ;;  %v1822_v41 = vmul.f32 1.442695, %v1784_v3 }
 0xa17   :  { %v1839_v30 = vadd.f32 %v5975_v9, %v1838_v45  ;;  %v5981_v63 = vpop.eup %4632  ;;  %4640 = vpow2.f32 %v1816_v20 }
 0xa18   :  { %v1848_v37 = vadd.f32 %v5981_v63, %v5978_v18  ;;  %4642 = vpow2.f32 %v1818_v43  ;;  %v5987_v13 = vpop.eup %4634 }
 0xa19   :  { %v1841_v50 = vadd.f32 %v1840_v31, %v1839_v30  ;;  %v5989_v38 = vpop.eup %4636  ;;  %4644 = vrcp.f32 %v1836_v22 }
 0xa1a   :  { %v1849_v29 = vadd.f32 %v5987_v13, %v1848_v37  ;;  %v5992_v16 = vpop.eup %4638  ;;  %4646 = vpow2.f32 %v1820_v2  ;;  %v1851_v58 = vsel %vm894_vm6, %v5989_v38, 0.0 }
 0xa1b   :  { %v1842_v44 = vrot.slane %v1841_v50, 4  ;;  %4648 = vpow2.f32 %v1824_v25 }
 0xa1c   :  { %v1850_v53 = vadd.f32 %v5992_v16, %v1849_v29  ;;  %4650 = vpow2.f32 %v1822_v41 }
 0xa1d   :  { %v1843_v54 = vadd.f32 %v1842_v44, %v1841_v50 }
 0xa1e   :  { %v1852_v35 = vadd.f32 %v1851_v58, %v1850_v53 }
 0xa1f   :  { %v1844_v56 = vrot.slane %v1843_v54, 2 }
 0xa20   :  { %v1853_v45 = vrot.slane %v1852_v35, 4 }
 0xa21   :  { %v5997_v28 = vpop.eup %4640  ;;  %v1845_v17 = vadd.f32 %v1844_v56, %v1843_v54 }
 0xa22   :  { %v5999_v6 = vpop.eup %4642  ;;  %v1854_v20 = vadd.f32 %v1853_v45, %v1852_v35 }
 0xa23   :  { %v1846_v3 = vrot.slane %v1845_v17, 1  ;;  %v1859_v43 = vadd.f32 %v5999_v6, %v5997_v28  ;;  %v4645_v22 = vpop.eup %4644 }
 0xa24   :  { %v6003_v30 = vpop.eup %4646  ;;  %v1855_v2 = vrot.slane %v1854_v20, 2  ;;  %v1874_v44 = vmul.f32 %v4645_v22, %v5909_v32  ;;  %v1875_v29 = vmul.f32 %v4645_v22, %v5913_v39 }
 0xa25   :  { %v1847_v31 = vadd.f32 %v1846_v3, %v1845_v17  ;;  %v6005_v50 = vpop.eup %4648  ;;  %v1860_v37 = vadd.f32 %v6003_v30, %v1859_v43  ;;  %v1876_v43 = vmul.f32 %v4645_v22, %v5917_v55 }
 0xa26   :  { %v6008_v25 = vpop.eup %4650  ;;  %v1856_v41 = vadd.f32 %v1855_v2, %v1854_v20  ;;  %v1862_v58 = vsel %vm894_vm6, %v6005_v50, 0.0  ;;  %v1894_v17 = vmul.f32 %v1874_v44, %v5476_v19  ;;  %v1895_v45 = vmul.f32 %v1875_v29, %v5481_v24 }
 0xa27   :  { %4652 = vrcp.f32 %v1847_v31  ;;  %v1861_v54 = vadd.f32 %v6008_v25, %v1860_v37  ;;  %v1877_v37 = vmul.f32 %v4645_v22, %v5934_v7 }
 0xa28   :  { %v1857_v53 = vrot.slane %v1856_v41, 1  ;;  %v1914_v32 = vsel %vm366_vm3, %v1894_v17, 0.0  ;;  %v1915_v39 = vsel %vm366_vm3, %v1895_v45, 0.0 }
 0xa29   :  { %v1863_v56 = vadd.f32 %v1862_v58, %v1861_v54  ;;  %v1896_v54 = vmul.f32 %v1876_v43, %v5503_v42  ;;  %v1916_v44 = vadd.f32 %v1915_v39, %v1914_v32  ;;  %v6035_v42 = vld [vmem:[%s7011_s3 + $0x30] sm:$0xff]  ;;  %v1897_v17 = vmul.f32 %v1877_v37, %v5530_v26 }
 0xa2a   :  { %v1858_v35 = vadd.f32 %v1857_v53, %v1856_v41  ;;  %v6029_v53 = vld [vmem:[%s7011_s3 + $0x28] sm:$0xff] }
 0xa2b   :  { %v1864_v3 = vrot.slane %v1863_v56, 4  ;;  %v1917_v45 = vsel %vm366_vm3, %v1896_v54, 0.0  ;;  %v6061_v54 = vld [vmem:[%s7011_s3 + $0x50] sm:$0xff] }
 0xa2c   :  { %4654 = vrcp.f32 %v1858_v35  ;;  %v1918_v32 = vadd.f32 %v1917_v45, %v1916_v44  ;;  %v1919_v44 = vsel %vm366_vm3, %v1897_v17, 0.0 }
 0xa2d   :  { %v1865_v20 = vadd.f32 %v1864_v3, %v1863_v56 }
 0xa2f   :  { %v1866_v31 = vrot.slane %v1865_v20, 2 }
 0xa31   :  { %v4653_v2 = vpop.eup %4652  ;;  %v1867_v29 = vadd.f32 %v1866_v31, %v1865_v20 }
 0xa32   :  { %v1879_v41 = vmul.f32 %v4653_v2, %v5957_v15  ;;  %v1880_v19 = vmul.f32 %v4653_v2, %v5960_v21  ;;  %v1881_v24 = vmul.f32 %v4653_v2, %v5964_v61  ;;  %v1882_v55 = vmul.f32 %v4653_v2, %v5975_v9  ;;  %v6041_v15 = vld [vmem:[%s7011_s3 + $0x38] sm:$0xff] }
 0xa33   :  { %v1878_v61 = vmul.f32 %v4645_v22, %v5924_v14  ;;  %v1868_v56 = vrot.slane %v1867_v29, 1  ;;  %v1883_v35 = vmul.f32 %v4653_v2, %v5970_v0 }
 0xa34   :  { %v1899_v58 = vmul.f32 %v6029_v53, %v1879_v41  ;;  %v1900_v7 = vmul.f32 %v6035_v42, %v1880_v19  ;;  %v1901_v21 = vmul.f32 %v6041_v15, %v1881_v24  ;;  %v1902_v9 = vmul.f32 %v1882_v55, %v5512_v52 }
 0xa35   :  { %v1869_v41 = vadd.f32 %v1868_v56, %v1867_v29  ;;  %v1903_v37 = vmul.f32 %v1883_v35, %v5546_v46  ;;  %v1898_v24 = vmul.f32 %v1878_v61, %v5560_v33  ;;  %v6082_v29 = vld [vmem:[%s7011_s3 + $0x68] sm:$0xff] }
 0xa36   :  { %v1929_v3 = vsel %vm366_vm3, %v1899_v58, 0.0  ;;  %v1930_v43 = vsel %vm366_vm3, %v1900_v7, 0.0  ;;  %v4655_v20 = vpop.eup %4654  ;;  %v1932_v31 = vsel %vm366_vm3, %v1901_v21, 0.0  ;;  %v1934_v2 = vsel %vm366_vm3, %v1902_v9, 0.0 }
 0xa37   :  { %v1931_v39 = vadd.f32 %v1930_v43, %v1929_v3  ;;  %v1884_v14 = vmul.f32 %v4655_v20, %v5978_v18  ;;  %v1885_v52 = vmul.f32 %v4655_v20, %v5981_v63  ;;  %v1886_v0 = vmul.f32 %v4655_v20, %v5987_v13  ;;  %v6067_v18 = vld [vmem:[%s7011_s3 + $0x58] sm:$0xff]  ;;  %v6073_v13 = vld [vmem:[%s7011_s3 + $0x60] sm:$0xff] }
 0xa38   :  { %v1887_v26 = vmul.f32 %v4655_v20, %v5992_v16  ;;  %4656 = vrcp.f32 %v1869_v41  ;;  %v1888_v16 = vmul.f32 %v4655_v20, %v5989_v38  ;;  %v1920_v9 = vadd.f32 %v1919_v44, %v1918_v32 }
 0xa39   :  { %v1933_v22 = vadd.f32 %v1932_v31, %v1931_v39  ;;  %v1904_v19 = vmul.f32 %v6061_v54, %v1884_v14  ;;  %v1905_v63 = vmul.f32 %v6067_v18, %v1885_v52  ;;  %v1906_v46 = vmul.f32 %v6073_v13, %v1886_v0 }
 0xa3a   :  { %v1907_v58 = vmul.f32 %v6082_v29, %v1887_v26  ;;  %v1908_v33 = vmul.f32 %v1888_v16, %v5553_v11  ;;  %v1936_v61 = vsel %vm842_vm5, %v1903_v37, 0.0  ;;  %v1921_v45 = vsel %vm842_vm5, %v1898_v24, 0.0 }
 0xa3b   :  { %v1935_v55 = vadd.f32 %v1934_v2, %v1933_v22  ;;  %v1944_v7 = vsel %vm366_vm3, %v1904_v19, 0.0  ;;  %v1945_v21 = vsel %vm366_vm3, %v1905_v63, 0.0  ;;  %v1947_v38 = vsel %vm366_vm3, %v1906_v46, 0.0 }
 0xa3c   :  { %v1946_v56 = vadd.f32 %v1945_v21, %v1944_v7  ;;  %v1949_v3 = vsel %vm366_vm3, %v1907_v58, 0.0  ;;  %v1922_v43 = vadd.f32 %v1921_v45, %v1920_v9  ;;  %v1951_v39 = vsel %vm842_vm5, %v1908_v33, 0.0 }
 0xa3d   :  { %v1937_v17 = vadd.f32 %v1936_v61, %v1935_v55 }
 0xa3e   :  { %v1948_v35 = vadd.f32 %v1947_v38, %v1946_v56  ;;  %v1923_v26 = vrot.slane %v1922_v43, 4 }
 0xa3f   :  { %v1938_v41 = vrot.slane %v1937_v17, 4 }
 0xa40   :  { %v1950_v20 = vadd.f32 %v1949_v3, %v1948_v35  ;;  %v1924_v24 = vadd.f32 %v1923_v26, %v1922_v43 }
 0xa41   :  { %v1939_v46 = vadd.f32 %v1938_v41, %v1937_v17 }
 0xa42   :  { %v4657_v31 = vpop.eup %4656  ;;  %v1952_v32 = vadd.f32 %v1951_v39, %v1950_v20 }
 0xa43   :  { %v1892_v14 = vmul.f32 %v4657_v31, %v6008_v25  ;;  %v1889_v52 = vmul.f32 %v4657_v31, %v5997_v28  ;;  %v1890_v11 = vmul.f32 %v4657_v31, %v5999_v6  ;;  %v1891_v0 = vmul.f32 %v4657_v31, %v6003_v30 }
 0xa44   :  { %v1953_v22 = vrot.slane %v1952_v32, 4  ;;  %v1893_v2 = vmul.f32 %v4657_v31, %v6005_v50  ;;  %v1940_v44 = vrot.slane %v1939_v46, 2 }
 0xa45   :  { %v1909_v37 = vmul.f32 %v1889_v52, %v5575_v12  ;;  %v1910_v19 = vmul.f32 %v1890_v11, %v5580_v36  ;;  %v1911_v63 = vmul.f32 %v1891_v0, %v5585_v59  ;;  %v1912_v16 = vmul.f32 %v1892_v14, %v5593_v47 }
 0xa46   :  { %v1954_v25 = vadd.f32 %v1953_v22, %v1952_v32  ;;  %v1913_v55 = vmul.f32 %v1893_v2, %v5603_v51  ;;  %v1925_v59 = vrot.slane %v1924_v24, 2  ;;  %v1941_v21 = vadd.f32 %v1940_v44, %v1939_v46 }
 0xa47   :  { %v1959_v28 = vsel %vm366_vm3, %v1909_v37, 0.0  ;;  %v1960_v6 = vsel %vm366_vm3, %v1910_v19, 0.0  ;;  %v1962_v50 = vsel %vm366_vm3, %v1911_v63, 0.0  ;;  %v1964_v36 = vsel %vm366_vm3, %v1912_v16, 0.0 }
 0xa48   :  { %v1961_v30 = vadd.f32 %v1960_v6, %v1959_v28  ;;  %v1955_v58 = vrot.slane %v1954_v25, 2  ;;  %v1966_v47 = vsel %vm842_vm5, %v1913_v55, 0.0  ;;  %v1926_v38 = vadd.f32 %v1925_v59, %v1924_v24 }
 0xa49   :  { %v1942_v61 = vrot.slane %v1941_v21, 1 }
 0xa4a   :  { %v1963_v12 = vadd.f32 %v1962_v50, %v1961_v30  ;;  %v1956_v56 = vadd.f32 %v1955_v58, %v1954_v25  ;;  %v1927_v51 = vrot.slane %v1926_v38, 1 }
 0xa4b   :  { %v1943_v3 = vadd.f32 %v1942_v61, %v1941_v21 }
 0xa4c   :  { %v1965_v7 = vadd.f32 %v1964_v36, %v1963_v12  ;;  %v1957_v17 = vrot.slane %v1956_v56, 1  ;;  %v1928_v39 = vadd.f32 %v1927_v51, %v1926_v38  ;;  %v6128_v36 = vsel %vm5652_vm10, %v5645_v10, %v5642_v5  ;;  %v7040_v5 = vld [vmem:[#allocation13_spill] sm:$0xff]  ;;  %v7041_v38 = vld [vmem:[#allocation8_spill] sm:$0xff] }
 0xa4e   :  { %v1967_v9 = vadd.f32 %v1966_v47, %v1965_v7  ;;  %v1958_v20 = vadd.f32 %v1957_v17, %v1956_v56  ;;  %v2053_v32 = vsel %vm1223_vm7, %v1943_v3, %v1928_v39  ;;  %v2300_v47 = vstv %s4004_s28  ;;  %v7044_v39 = vld [vmem:[#allocation12_spill] sm:$0xff]  ;;  %s4898_s28 = smov [#allocation4]  }
 0xa4f   :  { %vm6138_vm11 = vcmp.lt.s32.totalorder %v5137_v1, %v2300_v47  ;;  %s3966_s30 = sshll.u32 %s4898_s28, 4  ;;  %s3967_s30 = int_to_ptr.vmem [resolvable:$true] %s3966_s30 }
 0xa50   :  { %v1968_v33 = vrot.slane %v1967_v9, 4  ;;  %v2054_v14 = vsel %vm1225_vm8, %v1958_v20, %v2053_v32  ;;  %v7045_v32 = vld [vmem:[#allocation14_spill] sm:$0xff]  ;;  %p4869_p6 = scmp.lt.s32.totalorder %s3967_s30, %s3967_s30 }
 0xa52   :  { %v1969_v35 = vadd.f32 %v1968_v33, %v1967_v9  ;;  %v7042_v33 = vld [vmem:[#allocation10_spill] sm:$0xff] }
 0xa54   :  { %v1970_v45 = vrot.slane %v1969_v35, 2 }
 0xa56   :  { %v1971_v43 = vadd.f32 %v1970_v45, %v1969_v35  ;;  %v7043_v35 = vld [vmem:[#allocation11_spill] sm:$0xff] }
 0xa58   :  { %v1972_v31 = vrot.slane %v1971_v43, 1 }
 0xa5a   :  { %v1973_v41 = vadd.f32 %v1972_v31, %v1971_v43 }
 0xa5c   :  { %v2055_v52 = vsel %vm1227_vm9, %v1973_v41, %v2054_v14 }
 0xa5d   :  { %4275 = vmatmul.mubr.msk.f32.vlgmr.msra.gmra.mrb[12].mxu1 %vm366_vm3, %v2055_v52  ;;  %v7046_v52 = vld [vmem:[#allocation15_spill] sm:$0xff] }
 0xa5e   :  { %4478 = vmatpush3.bf16.msra.mxu1 %v5308_v48  ;;  %4296 = vmatprep.mubr.msk.f32.mxu1 %vm4892_vm0, %v7036_v40 }
 0xa5f   :  { %4479 = vmatprep.subr.bf16.mxu1 %v7037_v4 }
 0xa62   :  { %4481 = vmatpush3.bf16.msra.mxu1 %v5318_v49 }
 0xa63   :  { %4488 = vmatprep.subr.bf16.mxu1 %v7037_v4 }
 0xad6   :  { %v1468_v11 = vpop.f32.mrb[10].mxu0 }
 0xad7   :  { %v1469_v0 = vadd.f32 %v5625_v57, %v1468_v11  ;;  %v4247_v26 = vpop.f32.mrb[11].mxu0 }
 0xad9   :  { %v1477_v22 = vsel %vm5652_vm10, %v1469_v0, 0.0  ;;  %v7047_v0 = vld [vmem:[#allocation16_spill] sm:$0xff] }
 0xada   :  { %1479 = vst [vmem:[#allocation4 + $0x4] sm:$0xf] %v1477_v22  ;;  %v2045_v2 = vpop.f32.mrb[12].mxu0  ;;  %v7048_v22 = vld [vmem:[#allocation17_spill] sm:$0xff] }
 0xadb   :  { %v4265_v37 = vpop.f32.mrb[13].mxu0 }
 0xae2   :  { %v2194_v19 = vpop.f32.mrb[14].mxu0 }
 0xae3   :  { %v4287_v63 = vpop.f32.mrb[15].mxu0 }
 0xae4   :  { %v7049_v63 = vld [vmem:[#allocation18_spill] sm:$0xff] }
 0xb30   :  { %v2124_v46 = vpop.f32.mrb[12].mxu1 }
 0xb31   :  { %v2125_v16 = vadd.f32 %v2124_v46, %v2045_v2  ;;  %v4276_v25 = vpop.f32.mrb[13].mxu1 }
 0xb33   :  { %v2198_v28 = vadd.f32 %v2194_v19, %v2125_v16 }
 0xb35   :  { %v2199_v6 = vadd.f32 %v5633_v34, %v2198_v28 }
 0xb37   :  { %4658 = vtanh.f32 %v2199_v6  ;;  %v4002_v57 = vmul.f32 -1.442695, %v2199_v6  ;;  %v7050_v6 = vld [vmem:[#allocation21_spill] sm:$0xff] }
 0xb39   :  { %4660 = vpow2.f32 %v4002_v57  ;;  %v7051_v57 = vld [vmem:[#allocation20_spill] sm:$0xff] }
 0xb41   :  { %v4659_v24 = vpop.eup %4658 }
 0xb42   :  { %2209 = vrot.lane.b32.xlu1 %v4659_v24, %s4894_s10 }
 0xb43   :  { %v4661_v30 = vpop.eup %4660 }
 0xb44   :  { %v2203_v55 = vadd.f32 1.0, %v4661_v30 }
 0xb46   :  { %4662 = vrcp.f32 %v2203_v55 }
 0xb50   :  { %v4663_v50 = vpop.eup %4662 }
 0xb51   :  { %v2207_v34 = vmul.f32 %v4663_v50, %v6128_v36 }
 0xbb4   :  { %v2210_v44 = vpop.permute.xlu1 %2209 }
 0xbb5   :  { %v2212_v12 = vmul.f32 %v4663_v50, %v2210_v44 }
 0xbb7   :  { %2214 = vrot.lane.b32.xlu1 %v2212_v12, %s4895_s2 }
 0xc29   :  { %v2215_v58 = vpop.permute.xlu1 %2214 }
 0xc2a   :  { %v6131_v59 = vadd.f32 %v2215_v58, %v2207_v34  ;;  %v7052_v34 = vld [vmem:[#allocation23_spill] sm:$0xff] }
 0xc2c   :  { %4664 = vtanh.f32 %v6131_v59 }
 0xc36   :  { %v4665_v7 = vpop.eup %4664 }
 0xc37   :  { %2220 = vrot.lane.b32.xlu0 %v4665_v7, %s4894_s10 }
 0xca9   :  { %v2221_v21 = vpop.permute.xlu0 %2220 }
 0xcaa   :  { %v6135_v9 = vmul.f32 %v4663_v50, %v2221_v21 }
 0xcac   :  { %v6146_v10 = vsel %vm6138_vm11, %v6135_v9, %v7040_v5  ;;  %v7053_v5 = vld [vmem:[#allocation19_spill] sm:$0xff] }
 0xcad   :  { %2310 = vrot.lane.b32.xlu1 %v6146_v10, %s4895_s2 }
 0xd1f   :  { %v6150_v56 = vpop.permute.xlu1 %2310 }
 0xd20   :  { %4308 = vmatmul.mubr.msk.f32.vlgmr.msra.gmra.mrb[16].mxu0 %vm366_vm3, %v6150_v56 }
 0xd21   :  { %4493 = vmatpush3.bf16.msra.mxu0 %v7041_v38  ;;  %4325 = vmatprep.mubr.msk.f32.mxu0 %vm4892_vm0, %v7036_v40 }
 0xd22   :  { %4494 = vmatprep.subr.bf16.mxu0 %v7037_v4 }
 0xd25   :  { %4496 = vmatpush3.bf16.msra.mxu0 %v7042_v33 }
 0xd26   :  { %4503 = vmatprep.subr.bf16.mxu0 %v7037_v4 }
 0xdf3   :  { %v2380_v61 = vpop.f32.mrb[16].mxu0 }
 0xdf4   :  { %v2391_v17 = vrot.slane %v2380_v61, %v7043_v35  ;;  %v4309_v51 = vpop.f32.mrb[17].mxu0 }
 0xdf6   :  { %v2392_v45 = vcombine.high %v2391_v17, %v2391_v17  ;;  %v2399_v3 = vrot.slane %v2391_v17, %v7043_v35 }
 0xdf8   :  { %v2406_v43 = vrot.slane %v2392_v45, %v7043_v35  ;;  %v2407_v20 = vcombine.high %v2399_v3, %v2399_v3  ;;  %v2412_v31 = vrot.slane %v2399_v3, %v7044_v39  ;;  %v7054_v3 = vld [vmem:[#allocation25_spill] sm:$0xff] }
 0xdfa   :  { %v2416_v41 = vrot.slane %v2406_v43, %v7044_v39  ;;  %v2430_v14 = vadd.f32 %v7045_v32, %v2412_v31  ;;  %v2429_v11 = vadd.f32 %v7046_v52, %v2412_v31  ;;  %v2431_v26 = vadd.f32 %v7047_v0, %v2412_v31  ;;  %v7055_v52 = vld [vmem:[#allocation22_spill] sm:$0xff] }
 0xdfb   :  { %v2432_v2 = vadd.f32 %v7048_v22, %v2412_v31  ;;  %v2420_v37 = vrot.slane %v2407_v20, %v7044_v39  ;;  %v2433_v46 = vadd.f32 %v7049_v63, %v2412_v31  ;;  %v2408_v0 = vcombine.high %v2406_v43, %v2406_v43 }
 0xdfc   :  { %v2450_v19 = vmax.f32 %v2430_v14, 0.0  ;;  %v2449_v16 = vmax.f32 %v2429_v11, 0.0  ;;  %v2451_v25 = vmax.f32 %v2431_v26, 0.0  ;;  %v2434_v24 = vadd.f32 %v7050_v6, %v2416_v41  ;;  %v7057_v6 = vld [vmem:[#allocation24_spill] sm:$0xff] }
 0xdfd   :  { %v2452_v28 = vmax.f32 %v2432_v2, 0.0  ;;  %v2453_v12 = vmax.f32 %v2433_v46, 0.0  ;;  %v2439_v58 = vadd.f32 %v7052_v34, %v2420_v37  ;;  %v2435_v61 = vadd.f32 %v7053_v5, %v2416_v41 }
 0xdfe   :  { %v2470_v30 = vmul.f32 %v7051_v57, %v2450_v19  ;;  %v2469_v55 = vmul.f32 %v7051_v57, %v2449_v16  ;;  %v2471_v44 = vmul.f32 %v7051_v57, %v2451_v25  ;;  %v2454_v21 = vmax.f32 %v2434_v24, 0.0  ;;  %v7056_v19 = vld [vmem:[#allocation27_spill] sm:$0xff]  ;;  %v6193_v16 = vld [vmem:[%s6954_s15] ss:$0 sm:$0xff] }
 0xdff   :  { %v2472_v47 = vmul.f32 %v7051_v57, %v2452_v28  ;;  %v2473_v51 = vmul.f32 %v7051_v57, %v2453_v12  ;;  %v2459_v45 = vmax.f32 %v2439_v58, 0.0  ;;  %v2441_v20 = vadd.f32 %v7054_v3, %v2420_v37 }
 0xe00   :  { %v2492_v50 = vsel %vm366_vm3, %v2470_v30, 0.0  ;;  %v2489_v7 = vsel %vm366_vm3, %v2469_v55, 0.0  ;;  %v2495_v17 = vsel %vm366_vm3, %v2471_v44, 0.0  ;;  %v2474_v32 = vmul.f32 %v7051_v57, %v2454_v21 }
 0xe01   :  { %2493 = vadd.xlane.f32.xlu1 %v2492_v50  ;;  %2490 = vadd.xlane.f32.xlu0 %v2489_v7  ;;  %v2498_v31 = vsel %vm366_vm3, %v2472_v47, 0.0  ;;  %v2455_v14 = vmax.f32 %v2435_v61, 0.0  ;;  %v2440_v11 = vadd.f32 %v7055_v52, %v2420_v37  ;;  %v2501_v26 = vsel %vm842_vm5, %v2473_v51, 0.0  ;;  %v7058_v50 = vld [vmem:[#allocation29_spill] sm:$0xff]  ;;  %v7059_v7 = vld [vmem:[#allocation26_spill] sm:$0xff] }
 0xe02   :  { %v2479_v22 = vmul.f32 %v7051_v57, %v2459_v45  ;;  %v2461_v2 = vmax.f32 %v2441_v20, 0.0  ;;  %v2437_v63 = vadd.f32 %v7056_v19, %v2416_v41  ;;  %v2504_v46 = vsel %vm366_vm3, %v2474_v32, 0.0  ;;  %v7063_v19 = vld [vmem:[#allocation30_spill] sm:$0xff] }
 0xe03   :  { %v2475_v25 = vmul.f32 %v6193_v16, %v2455_v14  ;;  %v2460_v28 = vmax.f32 %v2440_v11, 0.0  ;;  %v2436_v43 = vadd.f32 %v7057_v6, %v2416_v41  ;;  %v2424_v24 = vrot.slane %v2408_v0, %v7044_v39  ;;  %v7062_v11 = vld [vmem:[#allocation33_spill] sm:$0xff] }
 0xe04   :  { %v2519_v57 = vsel %vm366_vm3, %v2479_v22, 0.0  ;;  %v2481_v30 = vmul.f32 %v6193_v16, %v2461_v2  ;;  %v2457_v55 = vmax.f32 %v2437_v63, 0.0  ;;  %v2442_v44 = vadd.f32 %v7058_v50, %v2420_v37 }
 0xe05   :  { %2496 = vadd.xlane.f32.xlu1 %v2495_v17  ;;  %2499 = vadd.xlane.f32.xlu0 %v2498_v31  ;;  %v2507_v12 = vsel %vm366_vm3, %v2475_v25, 0.0  ;;  %v2480_v34 = vmul.f32 %v6193_v16, %v2460_v28  ;;  %v2456_v58 = vmax.f32 %v2436_v43, 0.0  ;;  %v2438_v47 = vadd.f32 %v7059_v7, %v2416_v41  ;;  %v7060_v17 = vld [vmem:[#allocation31_spill] sm:$0xff]  ;;  %v7061_v31 = vld [vmem:[#allocation28_spill] sm:$0xff] }
 0xe06   :  { %v2525_v21 = vsel %vm366_vm3, %v2481_v30, 0.0  ;;  %v2477_v5 = vmul.f32 %v6193_v16, %v2457_v55  ;;  %v2462_v61 = vmax.f32 %v2442_v44, 0.0  ;;  %v2444_v51 = vadd.f32 %v7060_v17, %v2424_v24 }
 0xe07   :  { %v2522_v45 = vsel %vm366_vm3, %v2480_v34, 0.0  ;;  %v2476_v3 = vmul.f32 %v6193_v16, %v2456_v58  ;;  %v2458_v20 = vmax.f32 %v2438_v47, 0.0  ;;  %v2443_v32 = vadd.f32 %v7061_v31, %v2420_v37  ;;  %v7065_v58 = vld [vmem:[#allocation34_spill] sm:$0xff] }
 0xe08   :  { %v2513_v14 = vsel %vm366_vm3, %v2477_v5, 0.0  ;;  %v2482_v41 = vmul.f32 %v6193_v16, %v2462_v61  ;;  %v2464_v52 = vmax.f32 %v2444_v51, 0.0  ;;  %v2447_v0 = vadd.f32 %v7062_v11, %v2424_v24 }
 0xe09   :  { %2502 = vadd.xlane.f32.xlu1 %v2501_v26  ;;  %2505 = vadd.xlane.f32.xlu0 %v2504_v46  ;;  %v2510_v26 = vsel %vm366_vm3, %v2476_v3, 0.0  ;;  %v2478_v22 = vmul.f32 %v6193_v16, %v2458_v20  ;;  %v2463_v2 = vmax.f32 %v2443_v32, 0.0  ;;  %v2445_v63 = vadd.f32 %v7063_v19, %v2424_v24 }
 0xe0a   :  { %v2528_v46 = vsel %vm366_vm3, %v2482_v41, 0.0  ;;  %v2484_v37 = vmul.f32 %v6193_v16, %v2464_v52  ;;  %v2467_v25 = vmax.f32 %v2447_v0, 0.0  ;;  %v2448_v7 = vadd.f32 %v7065_v58, %v2424_v24 }
 0xe0b   :  { %v2516_v28 = vsel %vm842_vm5, %v2478_v22, 0.0  ;;  %v2483_v6 = vmul.f32 %v6193_v16, %v2463_v2  ;;  %v2465_v43 = vmax.f32 %v2445_v63, 0.0 }
 0xe0c   :  { %v2534_v55 = vsel %vm366_vm3, %v2484_v37, 0.0  ;;  %v2487_v50 = vmul.f32 %v6193_v16, %v2467_v25  ;;  %v2468_v61 = vmax.f32 %v2448_v7, 0.0 }
 0xe0d   :  { %2520 = vadd.xlane.f32.xlu1 %v2519_v57  ;;  %2508 = vadd.xlane.f32.xlu0 %v2507_v12  ;;  %v7064_v57 = vld [vmem:[#allocation32_spill] sm:$0xff]  ;;  %v2531_v44 = vsel %vm842_vm5, %v2483_v6, 0.0  ;;  %v2485_v12 = vmul.f32 %v6193_v16, %v2465_v43 }
 0xe0e   :  { %v2446_v30 = vadd.f32 %v7064_v57, %v2424_v24  ;;  %v2543_v47 = vsel %vm366_vm3, %v2487_v50, 0.0  ;;  %v2488_v51 = vmul.f32 %v6193_v16, %v2468_v61 }
 0xe10   :  { %v2466_v34 = vmax.f32 %v2446_v30, 0.0 }
 0xe11   :  { %2526 = vadd.xlane.f32.xlu1 %v2525_v21  ;;  %2523 = vadd.xlane.f32.xlu0 %v2522_v45  ;;  %v2537_v21 = vsel %vm366_vm3, %v2485_v12, 0.0  ;;  %v2546_v45 = vsel %vm842_vm5, %v2488_v51, 0.0 }
 0xe12   :  { %v2486_v5 = vmul.f32 %v6193_v16, %v2466_v34 }
 0xe14   :  { %v2540_v17 = vsel %vm366_vm3, %v2486_v5, 0.0 }
 0xe15   :  { %2514 = vadd.xlane.f32.xlu1 %v2513_v14  ;;  %2511 = vadd.xlane.f32.xlu0 %v2510_v26 }
 0xe19   :  { %2529 = vadd.xlane.f32.xlu1 %v2528_v46  ;;  %2517 = vadd.xlane.f32.xlu0 %v2516_v28 }
 0xe1d   :  { %2535 = vadd.xlane.f32.xlu1 %v2534_v55  ;;  %2532 = vadd.xlane.f32.xlu0 %v2531_v44 }
 0xe21   :  { %2544 = vadd.xlane.f32.xlu1 %v2543_v47  ;;  %2538 = vadd.xlane.f32.xlu0 %v2537_v21 }
 0xe25   :  { %2541 = vadd.xlane.f32.xlu0 %v2540_v17 }
 0xe29   :  { %2547 = vadd.xlane.f32.xlu0 %v2546_v45 }
 0xe32   :  { %2225 = vrot.lane.b32.xlu1 %v6135_v9, %s4895_s2 }
 0xe8e   :  { %v2494_v24 = vpop.xlane.xlu1 %2493  ;;  %v2491_v3 = vpop.xlane.xlu0 %2490 }
 0xe8f   :  { %v2549_v20 = vmax.f32 %v2491_v3, %v2494_v24 }
 0xe92   :  { %v2497_v31 = vpop.xlane.xlu1 %2496  ;;  %v2500_v14 = vpop.xlane.xlu0 %2499 }
 0xe93   :  { %v2550_v32 = vmax.f32 %v2549_v20, %v2497_v31 }
 0xe95   :  { %v2551_v41 = vmax.f32 %v2550_v32, %v2500_v14 }
 0xe96   :  { %v2503_v52 = vpop.xlane.xlu1 %2502  ;;  %v6235_v0 = vpop.xlane.xlu0 %2505 }
 0xe97   :  { %v2552_v11 = vsel %vm894_vm6, %v2503_v52, -inf }
 0xe98   :  { %v2553_v26 = vmax.f32 %v2551_v41, %v2552_v11 }
 0xe9a   :  { %v2554_v22 = vrot.slane %v2553_v26, 4  ;;  %v6237_v2 = vpop.xlane.xlu1 %2520  ;;  %v6239_v19 = vpop.xlane.xlu0 %2508 }
 0xe9b   :  { %v2560_v6 = vmax.f32 %v6235_v0, %v6239_v19 }
 0xe9c   :  { %v2555_v63 = vmax.f32 %v2553_v26, %v2554_v22 }
 0xe9e   :  { %v2556_v9 = vrot.slane %v2555_v63, 2  ;;  %v6241_v46 = vpop.xlane.xlu1 %2526  ;;  %v6243_v37 = vpop.xlane.xlu0 %2523 }
 0xe9f   :  { %v2571_v50 = vmax.f32 %v6237_v2, %v6243_v37 }
 0xea0   :  { %v2557_v25 = vmax.f32 %v2555_v63, %v2556_v9 }
 0xea1   :  { %v2572_v45 = vmax.f32 %v2571_v50, %v6241_v46 }
 0xea2   :  { %v2558_v28 = vrot.slane %v2557_v25, 1  ;;  %v6247_v43 = vpop.xlane.xlu1 %2514  ;;  %v6249_v57 = vpop.xlane.xlu0 %2511 }
 0xea3   :  { %v2561_v55 = vmax.f32 %v2560_v6, %v6249_v57 }
 0xea4   :  { %v2559_v30 = vmax.f32 %v2557_v25, %v2558_v28 }
 0xea5   :  { %v2562_v21 = vmax.f32 %v2561_v55, %v6247_v43 }
 0xea6   :  { %v2593_v44 = vsub.f32 %v2491_v3, %v2559_v30  ;;  %v2594_v12 = vsub.f32 %v2494_v24, %v2559_v30  ;;  %v2595_v34 = vsub.f32 %v2497_v31, %v2559_v30  ;;  %v6254_v58 = vpop.xlane.xlu1 %2529  ;;  %v2596_v7 = vsub.f32 %v2500_v14, %v2559_v30  ;;  %v6257_v5 = vpop.xlane.xlu0 %2517 }
 0xea7   :  { %v2597_v47 = vsub.f32 %v2503_v52, %v2559_v30  ;;  %v2563_v20 = vsel %vm894_vm6, %v6257_v5, -inf  ;;  %v2573_v14 = vmax.f32 %v2572_v45, %v6254_v58 }
 0xea8   :  { %v2613_v61 = vmul.f32 1.442695, %v2593_v44  ;;  %v2615_v17 = vmul.f32 1.442695, %v2594_v12  ;;  %v2617_v51 = vmul.f32 1.442695, %v2595_v34  ;;  %v2564_v24 = vmax.f32 %v2562_v21, %v2563_v20 }
 0xea9   :  { %v2621_v3 = vmul.f32 1.442695, %v2597_v47  ;;  %v2619_v32 = vmul.f32 1.442695, %v2596_v7  ;;  %v7066_v21 = vld [vmem:[#allocation9_spill] sm:$0xff] }
 0xeaa   :  { %4666 = vpow2.f32 %v2613_v61  ;;  %v6262_v31 = vpop.xlane.xlu1 %2535  ;;  %v6265_v41 = vpop.xlane.xlu0 %2532  ;;  %v2565_v52 = vrot.slane %v2564_v24, 4  ;;  %v4006_v61 = vld [vmem:[%s6943_s4 + $0xc] sm:$0xf] }
 0xeab   :  { %4668 = vpow2.f32 %v2615_v17  ;;  %v2574_v11 = vsel %vm894_vm6, %v6265_v41, -inf }
 0xeac   :  { %4670 = vpow2.f32 %v2617_v51  ;;  %v2575_v26 = vmax.f32 %v2573_v14, %v2574_v11  ;;  %v2566_v22 = vmax.f32 %v2564_v24, %v2565_v52 }
 0xead   :  { %4672 = vpow2.f32 %v2621_v3 }
 0xeae   :  { %v6269_v63 = vpop.xlane.xlu1 %2544  ;;  %4674 = vpow2.f32 %v2619_v32  ;;  %v2576_v9 = vrot.slane %v2575_v26, 4  ;;  %v6271_v25 = vpop.xlane.xlu0 %2538  ;;  %v2567_v28 = vrot.slane %v2566_v22, 2 }
 0xeaf   :  { %v2582_v55 = vmax.f32 %v6262_v31, %v6271_v25 }
 0xeb0   :  { %v2577_v6 = vmax.f32 %v2575_v26, %v2576_v9  ;;  %v2568_v30 = vmax.f32 %v2566_v22, %v2567_v28 }
 0xeb2   :  { %v2226_v50 = vpop.permute.xlu1 %2225  ;;  %v2578_v44 = vrot.slane %v2577_v6, 2  ;;  %v6275_v12 = vpop.xlane.xlu0 %2541  ;;  %v2569_v7 = vrot.slane %v2568_v30, 1 }
 0xeb3   :  { %4297 = vmatmul.mubr.msk.f32.vlgmr.msra.gmra.mrb[14].mxu1 %vm366_vm3, %v2226_v50  ;;  %v2583_v47 = vmax.f32 %v2582_v55, %v6275_v12 }
 0xeb4   :  { %v6278_v34 = vpop.eup %4666  ;;  %4490 = vmatpush3.bf16.msra.mxu1 %v7066_v21  ;;  %4314 = vmatprep.mubr.msk.f32.mxu1 %vm4892_vm0, %v7036_v40  ;;  %v2579_v51 = vmax.f32 %v2577_v6, %v2578_v44  ;;  %v2570_v20 = vmax.f32 %v2568_v30, %v2569_v7 }
 0xeb5   :  { %v6287_v17 = vpop.eup %4668  ;;  %4497 = vmatprep.subr.bf16.mxu1 %v7037_v4  ;;  %v2584_v32 = vmax.f32 %v2583_v47, %v6269_v63 }
 0xeb6   :  { %v2653_v45 = vadd.f32 %v6287_v17, %v6278_v34  ;;  %v6292_v3 = vpop.eup %4670  ;;  %v2580_v24 = vrot.slane %v2579_v51, 1  ;;  %v2598_v11 = vsub.f32 %v6235_v0, %v2570_v20  ;;  %v2599_v26 = vsub.f32 %v6239_v19, %v2570_v20 }
 0xeb7   :  { %4315 = vmatmul.mubr.msk.f32.vlgmr.msra.gmra.mrb[16].mxu1 %vm292_vm2, %v4006_v61  ;;  %v6296_v14 = vpop.eup %4672  ;;  %v2600_v22 = vsub.f32 %v6249_v57, %v2570_v20  ;;  %v2601_v28 = vsub.f32 %v6247_v43, %v2570_v20  ;;  %v2602_v6 = vsub.f32 %v6257_v5, %v2570_v20 }
 0xeb8   :  { %v2654_v52 = vadd.f32 %v6292_v3, %v2653_v45  ;;  %4499 = vmatpush3.bf16.msra.mxu1 %v5065_v23  ;;  %v6303_v9 = vpop.eup %4674  ;;  %v2581_v30 = vmax.f32 %v2579_v51, %v2580_v24  ;;  %4336 = vmatprep.mubr.msk.f32.mxu1 %vm4892_vm0, %v7036_v40  ;;  %v2623_v55 = vmul.f32 1.442695, %v2598_v11  ;;  %v2625_v19 = vmul.f32 1.442695, %v2599_v26  ;;  %v6316_v51 = vpop.xlane.xlu0 %2547 }
 0xeb9   :  { %4500 = vmatprep.subr.bf16.mxu1 %v7037_v4  ;;  %v2627_v50 = vmul.f32 1.442695, %v2600_v22  ;;  %v2656_v57 = vsel %vm894_vm6, %v6296_v14, 0.0  ;;  %v2629_v44 = vmul.f32 1.442695, %v2601_v28 }
 0xeba   :  { %v2655_v0 = vadd.f32 %v6303_v9, %v2654_v52  ;;  %v2603_v7 = vsub.f32 %v6237_v2, %v2581_v30  ;;  %v2604_v43 = vsub.f32 %v6243_v37, %v2581_v30  ;;  %4676 = vpow2.f32 %v2623_v55 }
 0xebb   :  { %v2631_v47 = vmul.f32 1.442695, %v2602_v6  ;;  %v2605_v61 = vsub.f32 %v6241_v46, %v2581_v30  ;;  %4678 = vpow2.f32 %v2625_v19  ;;  %v2607_v45 = vsub.f32 %v6265_v41, %v2581_v30 }
 0xebc   :  { %v2657_v5 = vadd.f32 %v2656_v57, %v2655_v0  ;;  %4502 = vmatpush3.bf16.msra.mxu1 %v5091_v27  ;;  %v2633_v20 = vmul.f32 1.442695, %v2603_v7  ;;  %4680 = vpow2.f32 %v2627_v50  ;;  %v2606_v2 = vsub.f32 %v6254_v58, %v2581_v30 }
 0xebd   :  { %4509 = vmatprep.subr.bf16.mxu1 %v7037_v4  ;;  %v2635_v37 = vmul.f32 1.442695, %v2604_v43  ;;  %4682 = vpow2.f32 %v2629_v44  ;;  %v2585_v52 = vsel %vm894_vm6, %v6316_v51, -inf  ;;  %v2637_v11 = vmul.f32 1.442695, %v2605_v61 }
 0xebe   :  { %v2658_v24 = vrot.slane %v2657_v5, 4  ;;  %4684 = vpow2.f32 %v2631_v47  ;;  %v2586_v26 = vmax.f32 %v2584_v32, %v2585_v52  ;;  %v2641_v41 = vmul.f32 1.442695, %v2607_v45 }
 0xebf   :  { %4337 = vmatmul.mubr.msk.f32.vlgmr.msra.gmra.mrb[18].mxu1 %vm366_vm3, %v6150_v56  ;;  %4686 = vpow2.f32 %v2633_v20  ;;  %v2639_v58 = vmul.f32 1.442695, %v2606_v2 }
 0xec0   :  { %v2659_v46 = vadd.f32 %v2658_v24, %v2657_v5  ;;  %4511 = vmatpush3.bf16.msra.mxu1 %v5125_v60  ;;  %4358 = vmatprep.mubr.msk.f32.mxu1 %vm4892_vm0, %v7036_v40  ;;  %4688 = vpow2.f32 %v2635_v37  ;;  %v2587_v22 = vrot.slane %v2586_v26, 4 }
 0xec1   :  { %4512 = vmatprep.subr.bf16.mxu1 %v7037_v4  ;;  %4690 = vpow2.f32 %v2637_v11 }
 0xec2   :  { %v2660_v28 = vrot.slane %v2659_v46, 2  ;;  %v2588_v6 = vmax.f32 %v2586_v26, %v2587_v22  ;;  %4692 = vpow2.f32 %v2641_v41 }
 0xec3   :  { %4694 = vpow2.f32 %v2639_v58 }
 0xec4   :  { %4514 = vmatpush3.bf16.msra.mxu1 %v5131_v62  ;;  %v6332_v56 = vpop.eup %4676  ;;  %v2589_v60 = vrot.slane %v2588_v6, 2  ;;  %v2661_v30 = vadd.f32 %v2660_v28, %v2659_v46 }
 0xec5   :  { %4518 = vmatprep.subr.bf16.mxu1 %v7037_v4  ;;  %v6334_v32 = vpop.eup %4678 }
 0xec6   :  { %v6336_v0 = vpop.eup %4680  ;;  %v2664_v55 = vadd.f32 %v6334_v32, %v6332_v56  ;;  %v2590_v19 = vmax.f32 %v2588_v6, %v2589_v60  ;;  %v2662_v43 = vrot.slane %v2661_v30, 1 }
 0xec7   :  { %v6340_v50 = vpop.eup %4682 }
 0xec8   :  { %v6342_v57 = vpop.eup %4684  ;;  %v2665_v62 = vadd.f32 %v6336_v0, %v2664_v55  ;;  %v2591_v44 = vrot.slane %v2590_v19, 1  ;;  %v2663_v26 = vadd.f32 %v2662_v43, %v2661_v30 }
 0xec9   :  { %v6345_v7 = vpop.eup %4686  ;;  %v2667_v45 = vsel %vm894_vm6, %v6342_v57, 0.0 }
 0xeca   :  { %v6347_v5 = vpop.eup %4688  ;;  %v2666_v47 = vadd.f32 %v6340_v50, %v2665_v62  ;;  %v2592_v61 = vmax.f32 %v2590_v19, %v2591_v44 }
 0xecb   :  { %v2675_v20 = vadd.f32 %v6347_v5, %v6345_v7  ;;  %v6354_v24 = vpop.eup %4690 }
 0xecc   :  { %v2668_v2 = vadd.f32 %v2667_v45, %v2666_v47  ;;  %v2608_v37 = vsub.f32 %v6262_v31, %v2592_v61  ;;  %v2609_v52 = vsub.f32 %v6271_v25, %v2592_v61  ;;  %v2610_v46 = vsub.f32 %v6275_v12, %v2592_v61  ;;  %v6359_v11 = vpop.eup %4692 }
 0xecd   :  { %v2676_v41 = vadd.f32 %v6354_v24, %v2675_v20  ;;  %v2611_v58 = vsub.f32 %v6269_v63, %v2592_v61  ;;  %v6363_v22 = vpop.eup %4694  ;;  %v2612_v6 = vsub.f32 %v6316_v51, %v2592_v61  ;;  %v2678_v12 = vsel %vm894_vm6, %v6359_v11, 0.0 }
 0xece   :  { %v2669_v28 = vrot.slane %v2668_v2, 4  ;;  %v2643_v60 = vmul.f32 1.442695, %v2608_v37  ;;  %v2645_v55 = vmul.f32 1.442695, %v2609_v52 }
 0xecf   :  { %v2677_v31 = vadd.f32 %v6363_v22, %v2676_v41  ;;  %v2647_v19 = vmul.f32 1.442695, %v2610_v46  ;;  %v2649_v62 = vmul.f32 1.442695, %v2611_v58  ;;  %v2651_v44 = vmul.f32 1.442695, %v2612_v6 }
 0xed0   :  { %v2670_v25 = vadd.f32 %v2669_v28, %v2668_v2  ;;  %4696 = vpow2.f32 %v2643_v60 }
 0xed1   :  { %v2679_v30 = vadd.f32 %v2678_v12, %v2677_v31  ;;  %4698 = vpow2.f32 %v2645_v55 }
 0xed2   :  { %4700 = vrcp.f32 %v2663_v26  ;;  %v2671_v63 = vrot.slane %v2670_v25, 2 }
 0xed3   :  { %4702 = vpow2.f32 %v2647_v19  ;;  %v2680_v47 = vrot.slane %v2679_v30, 4 }
 0xed4   :  { %v2672_v43 = vadd.f32 %v2671_v63, %v2670_v25  ;;  %4704 = vpow2.f32 %v2649_v62  ;;  %v6390_v63 = vld [vmem:[%s7011_s3] sm:$0xff] }
 0xed5   :  { %v2681_v61 = vadd.f32 %v2680_v47, %v2679_v30  ;;  %4706 = vpow2.f32 %v2651_v44 }
 0xed6   :  { %v2673_v51 = vrot.slane %v2672_v43, 1 }
 0xed7   :  { %v2682_v20 = vrot.slane %v2681_v61, 2 }
 0xed8   :  { %v2674_v45 = vadd.f32 %v2673_v51, %v2672_v43 }
 0xed9   :  { %v2683_v37 = vadd.f32 %v2682_v20, %v2681_v61 }
 0xeda   :  { %v6369_v2 = vpop.eup %4696  ;;  %4708 = vrcp.f32 %v2674_v45 }
 0xedb   :  { %v6371_v52 = vpop.eup %4698  ;;  %v2684_v41 = vrot.slane %v2683_v37, 1 }
 0xedc   :  { %v4701_v46 = vpop.eup %4700  ;;  %v2686_v26 = vadd.f32 %v6371_v52, %v6369_v2 }
 0xedd   :  { %v6375_v58 = vpop.eup %4702  ;;  %v2685_v28 = vadd.f32 %v2684_v41, %v2683_v37  ;;  %v2701_v31 = vmul.f32 %v4701_v46, %v6278_v34  ;;  %v2702_v19 = vmul.f32 %v4701_v46, %v6287_v17  ;;  %v6396_v34 = vld [vmem:[%s7011_s3 + $0x8] sm:$0xff]  ;;  %v2703_v45 = vmul.f32 %v4701_v46, %v6292_v3 }
 0xede   :  { %v2687_v6 = vadd.f32 %v6375_v58, %v2686_v26  ;;  %v6378_v60 = vpop.eup %4704 }
 0xedf   :  { %v6380_v55 = vpop.eup %4706  ;;  %4710 = vrcp.f32 %v2685_v28  ;;  %v2721_v44 = vmul.f32 %v6390_v63, %v2701_v31  ;;  %v2722_v17 = vmul.f32 %v6396_v34, %v2702_v19 }
 0xee0   :  { %v2688_v25 = vadd.f32 %v6378_v60, %v2687_v6  ;;  %v2689_v12 = vsel %vm894_vm6, %v6380_v55, 0.0 }
 0xee1   :  { %v2741_v26 = vsel %vm366_vm3, %v2721_v44, 0.0  ;;  %v2742_v28 = vsel %vm366_vm3, %v2722_v17, 0.0 }
 0xee2   :  { %v2690_v30 = vadd.f32 %v2689_v12, %v2688_v25 }
 0xee4   :  { %v4709_v62 = vpop.eup %4708  ;;  %v2691_v43 = vrot.slane %v2690_v30, 4 }
 0xee5   :  { %v2706_v47 = vmul.f32 %v4709_v62, %v6332_v56  ;;  %v2707_v51 = vmul.f32 %v4709_v62, %v6334_v32  ;;  %v2708_v61 = vmul.f32 %v4709_v62, %v6336_v0  ;;  %v2709_v6 = vmul.f32 %v4709_v62, %v6340_v50 }
 0xee6   :  { %v2692_v20 = vadd.f32 %v2691_v43, %v2690_v30  ;;  %v2704_v56 = vmul.f32 %v4701_v46, %v6303_v9  ;;  %v2743_v30 = vadd.f32 %v2742_v28, %v2741_v26  ;;  %v2710_v17 = vmul.f32 %v4709_v62, %v6342_v57  ;;  %v6437_v57 = vld [vmem:[%s7011_s3 + $0x18] sm:$0xff]  ;;  %v6448_v26 = vld [vmem:[%s7011_s3 + $0x48] sm:$0xf] }
 0xee7   :  { %v2726_v37 = vmul.f32 %v6029_v53, %v2706_v47  ;;  %v2727_v41 = vmul.f32 %v6035_v42, %v2707_v51  ;;  %v2728_v32 = vmul.f32 %v6041_v15, %v2708_v61  ;;  %v2705_v53 = vmul.f32 %v4701_v46, %v6296_v14  ;;  %v6416_v42 = vld [vmem:[%s7011_s3 + $0x10] sm:$0xff]  ;;  %v6426_v14 = vld [vmem:[%s7011_s3 + $0x40] sm:$0xff] }
 0xee8   :  { %v2693_v31 = vrot.slane %v2692_v20, 2  ;;  %v2723_v25 = vmul.f32 %v6416_v42, %v2703_v45  ;;  %v2729_v46 = vmul.f32 %v6426_v14, %v2709_v6  ;;  %v2724_v62 = vmul.f32 %v6437_v57, %v2704_v56 }
 0xee9   :  { %v2756_v0 = vsel %vm366_vm3, %v2726_v37, 0.0  ;;  %v2757_v3 = vsel %vm366_vm3, %v2727_v41, 0.0  ;;  %v4711_v19 = vpop.eup %4710  ;;  %v2759_v51 = vsel %vm366_vm3, %v2728_v32, 0.0  ;;  %v2730_v28 = vmul.f32 %v6448_v26, %v2710_v17 }
 0xeea   :  { %v2758_v50 = vadd.f32 %v2757_v3, %v2756_v0  ;;  %v2694_v12 = vadd.f32 %v2693_v31, %v2692_v20  ;;  %v2711_v9 = vmul.f32 %v4711_v19, %v6345_v7  ;;  %v2712_v15 = vmul.f32 %v4711_v19, %v6347_v5  ;;  %v6462_v0 = vld [vmem:[%s7011_s3 + $0x20] sm:$0xf] }
 0xeeb   :  { %v2713_v44 = vmul.f32 %v4711_v19, %v6354_v24  ;;  %v2714_v47 = vmul.f32 %v4711_v19, %v6363_v22  ;;  %v2715_v45 = vmul.f32 %v4711_v19, %v6359_v11  ;;  %v2744_v22 = vsel %vm366_vm3, %v2723_v25, 0.0 }
 0xeec   :  { %v2695_v43 = vrot.slane %v2694_v12, 1  ;;  %v2731_v7 = vmul.f32 %v6061_v54, %v2711_v9  ;;  %v2732_v5 = vmul.f32 %v6067_v18, %v2712_v15  ;;  %v2760_v61 = vadd.f32 %v2759_v51, %v2758_v50 }
 0xeed   :  { %v2733_v24 = vmul.f32 %v6073_v13, %v2713_v44  ;;  %v2734_v37 = vmul.f32 %v6082_v29, %v2714_v47  ;;  %v2745_v13 = vadd.f32 %v2744_v22, %v2743_v30  ;;  %v2761_v11 = vsel %vm366_vm3, %v2729_v46, 0.0  ;;  %v6456_v29 = vld [vmem:[%s7011_s3 + $0x70] sm:$0xf] }
 0xeee   :  { %v2696_v20 = vadd.f32 %v2695_v43, %v2694_v12  ;;  %v2771_v54 = vsel %vm366_vm3, %v2731_v7, 0.0  ;;  %v2772_v18 = vsel %vm366_vm3, %v2732_v5, 0.0  ;;  %v2762_v31 = vadd.f32 %v2761_v11, %v2760_v61  ;;  %v6496_v22 = vld [vmem:[%s7011_s3 + $0x90] sm:$0xff]  ;;  %v6504_v11 = vld [vmem:[%s7011_s3 + $0x98] sm:$0xf] }
 0xeef   :  { %v2773_v41 = vadd.f32 %v2772_v18, %v2771_v54  ;;  %v2774_v6 = vsel %vm366_vm3, %v2733_v24, 0.0  ;;  %v2735_v56 = vmul.f32 %v6456_v29, %v2715_v45  ;;  %v2725_v3 = vmul.f32 %v6462_v0, %v2705_v53  ;;  %v6478_v45 = vld [vmem:[%s7011_s3 + $0x78] sm:$0xff] }
 0xef0   :  { %4712 = vrcp.f32 %v2696_v20  ;;  %v2746_v19 = vsel %vm366_vm3, %v2724_v62, 0.0  ;;  %v2776_v25 = vsel %vm366_vm3, %v2734_v37, 0.0  ;;  %v2763_v30 = vsel %vm842_vm5, %v2730_v28, 0.0 }
 0xef1   :  { %v2775_v32 = vadd.f32 %v2774_v6, %v2773_v41  ;;  %v2747_v50 = vadd.f32 %v2746_v19, %v2745_v13  ;;  %v2764_v9 = vadd.f32 %v2763_v30, %v2762_v31  ;;  %v2778_v15 = vsel %vm842_vm5, %v2735_v56, 0.0 }
 0xef2   :  { %v2748_v44 = vsel %vm842_vm5, %v2725_v3, 0.0 }
 0xef3   :  { %v2777_v12 = vadd.f32 %v2776_v25, %v2775_v32  ;;  %v2749_v46 = vadd.f32 %v2748_v44, %v2747_v50  ;;  %v2765_v47 = vrot.slane %v2764_v9, 4 }
 0xef5   :  { %v2779_v17 = vadd.f32 %v2778_v15, %v2777_v12  ;;  %v2750_v62 = vrot.slane %v2749_v46, 4 }
 0xef7   :  { %v2780_v5 = vrot.slane %v2779_v17, 4  ;;  %v2751_v41 = vadd.f32 %v2750_v62, %v2749_v46 }
 0xef9   :  { %v2781_v54 = vadd.f32 %v2780_v5, %v2779_v17  ;;  %v2752_v25 = vrot.slane %v2751_v41, 2 }
 0xefa   :  { %v4713_v43 = vpop.eup %4712 }
 0xefb   :  { %v2716_v51 = vmul.f32 %v4713_v43, %v6369_v2  ;;  %v2717_v53 = vmul.f32 %v4713_v43, %v6371_v52  ;;  %v2718_v7 = vmul.f32 %v4713_v43, %v6375_v58  ;;  %v2719_v24 = vmul.f32 %v4713_v43, %v6378_v60  ;;  %v6484_v2 = vld [vmem:[%s7011_s3 + $0x80] sm:$0xff]  ;;  %v6490_v58 = vld [vmem:[%s7011_s3 + $0x88] sm:$0xff] }
 0xefc   :  { %v2720_v61 = vmul.f32 %v4713_v43, %v6380_v55  ;;  %v2766_v55 = vadd.f32 %v2765_v47, %v2764_v9  ;;  %v2782_v3 = vrot.slane %v2781_v54, 2  ;;  %v2753_v44 = vadd.f32 %v2752_v25, %v2751_v41 }
 0xefd   :  { %v2736_v20 = vmul.f32 %v6478_v45, %v2716_v51  ;;  %v2737_v52 = vmul.f32 %v6484_v2, %v2717_v53  ;;  %v2738_v60 = vmul.f32 %v6490_v58, %v2718_v7  ;;  %v2739_v37 = vmul.f32 %v6496_v22, %v2719_v24 }
 0xefe   :  { %v2740_v6 = vmul.f32 %v6504_v11, %v2720_v61  ;;  %v2767_v56 = vrot.slane %v2766_v55, 2  ;;  %v2783_v15 = vadd.f32 %v2782_v3, %v2781_v54  ;;  %v2754_v51 = vrot.slane %v2753_v44, 1  ;;  %v6523_v54 = vld [vmem:[%s6956_s17] ss:$0 sm:$0xff] }
 0xeff   :  { %v2786_v18 = vsel %vm366_vm3, %v2736_v20, 0.0  ;;  %v2787_v13 = vsel %vm366_vm3, %v2737_v52, 0.0  ;;  %v2789_v31 = vsel %vm366_vm3, %v2738_v60, 0.0  ;;  %v2791_v19 = vsel %vm366_vm3, %v2739_v37, 0.0 }
 0xf00   :  { %v2788_v28 = vadd.f32 %v2787_v13, %v2786_v18  ;;  %v2793_v12 = vsel %vm842_vm5, %v2740_v6, 0.0  ;;  %v2768_v30 = vadd.f32 %v2767_v56, %v2766_v55  ;;  %v2784_v47 = vrot.slane %v2783_v15, 1 }
 0xf01   :  { %v2755_v62 = vadd.f32 %v2754_v51, %v2753_v44 }
 0xf02   :  { %v2790_v32 = vadd.f32 %v2789_v31, %v2788_v28  ;;  %v2769_v46 = vrot.slane %v2768_v30, 1  ;;  %v2785_v24 = vadd.f32 %v2784_v47, %v2783_v15  ;;  %v6540_v47 = vsel %vm6138_vm11, %v6131_v59, %v6128_v36 }
 0xf04   :  { %v2792_v50 = vadd.f32 %v2791_v19, %v2790_v32  ;;  %v2770_v7 = vadd.f32 %v2769_v46, %v2768_v30 }
 0xf06   :  { %v2794_v9 = vadd.f32 %v2793_v12, %v2792_v50  ;;  %v2880_v52 = vsel %vm1223_vm7, %v2770_v7, %v2755_v62  ;;  %v6531_v50 = vld [vmem:[%s6948_s9] ss:$0 sm:$0xff]  ;;  %s4012_s9 = sld [smem:[#allocation3 + $0x3]] }
 0xf07   :  { %v2881_v60 = vsel %vm1225_vm8, %v2785_v24, %v2880_v52 }
 0xf08   :  { %v2795_v17 = vrot.slane %v2794_v9, 4 }
 0xf0a   :  { %v2796_v43 = vadd.f32 %v2795_v17, %v2794_v9 }
 0xf0c   :  { %v2797_v53 = vrot.slane %v2796_v43, 2  ;;  %v3127_v24 = vstv %s4012_s9 }
 0xf0d   :  { %vm6550_vm12 = vcmp.lt.s32.totalorder %v5137_v1, %v3127_v24  ;;  %v4829_v24 = vld [vmem:[%s7010_s29 + $0x28] sm:$0xff] }
 0xf0e   :  { %v2798_v5 = vadd.f32 %v2797_v53, %v2796_v43 }
 0xf10   :  { %v2799_v61 = vrot.slane %v2798_v5, 1 }
 0xf12   :  { %v2800_v20 = vadd.f32 %v2799_v61, %v2798_v5 }
 0xf14   :  { %v2882_v55 = vsel %vm1227_vm9, %v2800_v20, %v2881_v60 }
 0xf15   :  { %4326 = vmatmul.mubr.msk.f32.vlgmr.msra.gmra.mrb[18].mxu0 %vm366_vm3, %v2882_v55 }
 0xf16   :  { %4505 = vmatpush3.bf16.msra.mxu0 %v5308_v48  ;;  %4347 = vmatprep.mubr.msk.f32.mxu0 %vm4892_vm0, %v7036_v40 }
 0xf17   :  { %4506 = vmatprep.subr.bf16.mxu0 %v7037_v4 }
 0xf1a   :  { %4508 = vmatpush3.bf16.msra.mxu0 %v5318_v49 }
 0xf1b   :  { %4515 = vmatprep.subr.bf16.mxu0 %v7037_v4 }
 0xf86   :  { %v2295_v37 = vpop.f32.mrb[14].mxu1 }
 0xf87   :  { %v2296_v18 = vadd.f32 %v6523_v54, %v2295_v37  ;;  %v4298_v13 = vpop.f32.mrb[15].mxu1 }
 0xf89   :  { %v2304_v41 = vsel %vm6138_vm11, %v2296_v18, 0.0 }
 0xf8a   :  { %2306 = vst [vmem:[#allocation4 + $0x8] sm:$0xf] %v2304_v41  ;;  %v2872_v28 = vpop.f32.mrb[16].mxu1 }
 0xf8b   :  { %v4316_v6 = vpop.f32.mrb[17].mxu1 }
 0xf92   :  { %v3021_v31 = vpop.f32.mrb[18].mxu1 }
 0xf93   :  { %v4338_v56 = vpop.f32.mrb[19].mxu1 }
 0xf94   :  { %v4826_v56 = vld [vmem:[%s7010_s29 + $0x18] sm:$0xff] }
 0xfe8   :  { %v2951_v32 = vpop.f32.mrb[18].mxu0 }
 0xfe9   :  { %v2952_v3 = vadd.f32 %v2951_v32, %v2872_v28  ;;  %v4327_v19 = vpop.f32.mrb[19].mxu0  ;;  %v4824_v28 = vld [vmem:[%s7010_s29] sm:$0xff] }
 0xfeb   :  { %v3025_v25 = vadd.f32 %v3021_v31, %v2952_v3  ;;  %v4825_v31 = vld [vmem:[%s7010_s29 + $0x10] sm:$0xff] }
 0xfed   :  { %v3026_v12 = vadd.f32 %v6531_v50, %v3025_v25  ;;  %v4827_v25 = vld [vmem:[%s7010_s29 + $0x20] sm:$0xf] }
 0xfef   :  { %4714 = vtanh.f32 %v3026_v12  ;;  %v4010_v9 = vmul.f32 -1.442695, %v3026_v12 }
 0xff1   :  { %4716 = vpow2.f32 %v4010_v9 }
 0xff9   :  { %v4715_v30 = vpop.eup %4714 }
 0xffa   :  { %3036 = vrot.lane.b32.xlu0 %v4715_v30, %s4894_s10 }
 0xffb   :  { %v4717_v15 = vpop.eup %4716 }
 0xffc   :  { %v3030_v44 = vadd.f32 1.0, %v4717_v15 }
 0xffe   :  { %4718 = vrcp.f32 %v3030_v44  ;;  %v4828_v44 = vld [vmem:[%s7010_s29 + $0x30] sm:$0xff] }
0x1008   :  { %v4719_v17 = vpop.eup %4718 }
0x1009   :  { %v3034_v51 = vmul.f32 %v4719_v17, %v6540_v47 }
0x106c   :  { %v3037_v46 = vpop.permute.xlu0 %3036 }
0x106d   :  { %v3039_v43 = vmul.f32 %v4719_v17, %v3037_v46 }
0x106f   :  { %3041 = vrot.lane.b32.xlu1 %v3039_v43, %s4895_s2 }
0x10e1   :  { %v3042_v53 = vpop.permute.xlu1 %3041 }
0x10e2   :  { %v6543_v7 = vadd.f32 %v3042_v53, %v3034_v51 }
0x10e4   :  { %4720 = vtanh.f32 %v6543_v7 }
0x10ee   :  { %v4721_v5 = vpop.eup %4720 }
0x10ef   :  { %3047 = vrot.lane.b32.xlu1 %v4721_v5, %s4894_s10 }
0x1161   :  { %v3048_v62 = vpop.permute.xlu1 %3047 }
0x1162   :  { %v6547_v61 = vmul.f32 %v4719_v17, %v3048_v62 }
0x1164   :  { %v3134_v36 = vsel %vm6550_vm12, %v6547_v61, %v6146_v10 }
0x1165   :  { %3137 = vrot.lane.b32.xlu0 %v3134_v36, %s4895_s2 }
0x11d7   :  { %v6559_v59 = vpop.permute.xlu0 %3137 }
0x11d8   :  { %4359 = vmatmul.mubr.msk.f32.vlgmr.msra.gmra.mrb[20].mxu1 %vm366_vm3, %v6559_v59 }
0x11d9   :  { %4520 = vmatpush3.bf16.msra.mxu1 %v7041_v38  ;;  %4376 = vmatprep.mubr.msk.f32.mxu1 %vm4892_vm0, %v7036_v40 }
0x11da   :  { %4521 = vmatprep.subr.bf16.mxu1 %v7037_v4 }
0x11dd   :  { %4523 = vmatpush3.bf16.msra.mxu1 %v7042_v33  ;;  %v4823_v33 = vld [vmem:[%s7010_s29 + $0x8] sm:$0xff] }
0x11de   :  { %4530 = vmatprep.subr.bf16.mxu1 %v7037_v4 }
0x12ab   :  { %v3207_v20 = vpop.f32.mrb[20].mxu1 }
0x12ac   :  { %v3218_v10 = vrot.slane %v3207_v20, %v7043_v35  ;;  %v4360_v52 = vpop.f32.mrb[21].mxu1 }
0x12ad   :  { %v4830_v52 = vld [vmem:[%s7010_s29 + $0x58] sm:$0xff] }
0x12ae   :  { %v3219_v60 = vcombine.high %v3218_v10, %v3218_v10  ;;  %v3226_v55 = vrot.slane %v3218_v10, %v7043_v35 }
0x12b0   :  { %v3233_v37 = vrot.slane %v3219_v60, %v7043_v35  ;;  %v3234_v18 = vcombine.high %v3226_v55, %v3226_v55  ;;  %v3239_v38 = vrot.slane %v3226_v55, %v7044_v39 }
0x12b2   :  { %v3243_v13 = vrot.slane %v3233_v37, %v7044_v39  ;;  %v3257_v41 = vadd.f32 %v4823_v33, %v3239_v38  ;;  %v3256_v6 = vadd.f32 %v4824_v28, %v3239_v38  ;;  %v3258_v35 = vadd.f32 %v4825_v31, %v3239_v38  ;;  %v4831_v33 = vld [vmem:[%s7010_s29 + $0x50] sm:$0xff] }
0x12b3   :  { %v3259_v32 = vadd.f32 %v4826_v56, %v3239_v38  ;;  %v6587_v3 = vrot.slane %v3234_v18, %v7044_v39  ;;  %v3260_v12 = vadd.f32 %v4827_v25, %v3239_v38 }
0x12b4   :  { %v3277_v19 = vmax.f32 %v3257_v41, 0.0  ;;  %v3276_v30 = vmax.f32 %v3256_v6, 0.0  ;;  %v3278_v9 = vmax.f32 %v3258_v35, 0.0  ;;  %v3262_v17 = vadd.f32 %v4828_v44, %v3243_v13  ;;  %v4832_v35 = vld [vmem:[%s7010_s29 + $0x38] sm:$0xff] }
0x12b5   :  { %v3279_v15 = vmax.f32 %v3259_v32, 0.0  ;;  %v3280_v5 = vmax.f32 %v3260_v12, 0.0  ;;  %v3261_v62 = vadd.f32 %v4829_v24, %v3243_v13  ;;  %v3267_v60 = vadd.f32 %v4830_v52, %v6587_v3  ;;  %v4835_v24 = vld [vmem:[%s7010_s29 + $0x40] sm:$0xff] }
0x12b6   :  { %v3297_v46 = vmul.f32 %v6193_v16, %v3277_v19  ;;  %v3296_v43 = vmul.f32 %v6193_v16, %v3276_v30  ;;  %v3298_v53 = vmul.f32 %v6193_v16, %v3278_v9  ;;  %v3282_v10 = vmax.f32 %v3262_v17, 0.0  ;;  %v4833_v30 = vld [vmem:[%s7010_s29 + $0x60] sm:$0xff] }
0x12b7   :  { %v3299_v20 = vmul.f32 %v6193_v16, %v3279_v15  ;;  %v3300_v18 = vmul.f32 %v6193_v16, %v3280_v5  ;;  %v3281_v38 = vmax.f32 %v3261_v62, 0.0  ;;  %v3266_v41 = vadd.f32 %v4831_v33, %v6587_v3 }
0x12b8   :  { %v3319_v51 = vsel %vm366_vm3, %v3297_v46, 0.0  ;;  %v3316_v36 = vsel %vm366_vm3, %v3296_v43, 0.0  ;;  %v3322_v55 = vsel %vm366_vm3, %v3298_v53, 0.0  ;;  %v3302_v6 = vmul.f32 %v6193_v16, %v3282_v10 }
0x12b9   :  { %3320 = vadd.xlane.f32.xlu0 %v3319_v51  ;;  %3317 = vadd.xlane.f32.xlu1 %v3316_v36  ;;  %v3325_v28 = vsel %vm366_vm3, %v3299_v20, 0.0  ;;  %v3287_v31 = vmax.f32 %v3267_v60, 0.0  ;;  %v3263_v56 = vadd.f32 %v4832_v35, %v3243_v13  ;;  %v3235_v32 = vcombine.high %v3233_v37, %v3233_v37  ;;  %v4834_v37 = vld [vmem:[%s7010_s29 + $0x48] sm:$0xf] }
0x12ba   :  { %v3328_v19 = vsel %vm842_vm5, %v3300_v18, 0.0  ;;  %v3301_v25 = vmul.f32 %v6193_v16, %v3281_v38  ;;  %v3286_v12 = vmax.f32 %v3266_v41, 0.0  ;;  %v3268_v9 = vadd.f32 %v4833_v30, %v6587_v3 }
0x12bb   :  { %v3334_v15 = vsel %vm366_vm3, %v3302_v6, 0.0  ;;  %v3307_v44 = vmul.f32 %v6193_v16, %v3287_v31  ;;  %v3283_v17 = vmax.f32 %v3263_v56, 0.0  ;;  %v3265_v46 = vadd.f32 %v4834_v37, %v3243_v13  ;;  %v4838_v6 = vld [vmem:[%s7010_s29 + $0x80] sm:$0xff] }
0x12bc   :  { %v3251_v43 = vrot.slane %v3235_v32, %v7044_v39  ;;  %v3331_v51 = vsel %vm366_vm3, %v3301_v25, 0.0  ;;  %v3306_v53 = vmul.f32 %v6193_v16, %v3286_v12  ;;  %v3288_v5 = vmax.f32 %v3268_v9, 0.0  ;;  %v4836_v39 = vld [vmem:[%s7010_s29 + $0x70] sm:$0xf]  ;;  %v4840_v12 = vld [vmem:[%s6954_s15] ss:$0 sm:$0xff] }
0x12bd   :  { %3323 = vadd.xlane.f32.xlu0 %v3322_v55  ;;  %3326 = vadd.xlane.f32.xlu1 %v3325_v28  ;;  %v3264_v62 = vadd.f32 %v4835_v24, %v3243_v13  ;;  %v3349_v36 = vsel %vm366_vm3, %v3307_v44, 0.0  ;;  %v3303_v20 = vmul.f32 %v6193_v16, %v3283_v17  ;;  %v3285_v10 = vmax.f32 %v3265_v46, 0.0  ;;  %v4837_v13 = vld [vmem:[%s7010_s29 + $0x68] sm:$0xff]  ;;  %v4842_v46 = vld [vmem:[%s7010_s29 + $0x90] sm:$0xff] }
0x12be   :  { %v3270_v52 = vadd.f32 %v4836_v39, %v6587_v3  ;;  %v3346_v60 = vsel %vm366_vm3, %v3306_v53, 0.0  ;;  %v3308_v55 = vmul.f32 %v6193_v16, %v3288_v5  ;;  %v3269_v38 = vadd.f32 %v4837_v13, %v6587_v3  ;;  %v4839_v3 = vld [vmem:[%s7010_s29 + $0x78] sm:$0xff] }
0x12bf   :  { %v3284_v18 = vmax.f32 %v3264_v62, 0.0  ;;  %v3337_v33 = vsel %vm366_vm3, %v3303_v20, 0.0  ;;  %v3305_v41 = vmul.f32 %v6193_v16, %v3285_v10  ;;  %v3272_v31 = vadd.f32 %v4838_v6, %v3251_v43  ;;  %v4843_v62 = vld [vmem:[%s7010_s29 + $0x98] sm:$0xf] }
0x12c0   :  { %v3290_v28 = vmax.f32 %v3270_v52, 0.0  ;;  %v3352_v35 = vsel %vm366_vm3, %v3308_v55, 0.0  ;;  %v3289_v32 = vmax.f32 %v3269_v38, 0.0 }
0x12c1   :  { %3329 = vadd.xlane.f32.xlu0 %v3328_v19  ;;  %3335 = vadd.xlane.f32.xlu1 %v3334_v15  ;;  %v3304_v56 = vmul.f32 %v6193_v16, %v3284_v18  ;;  %v3271_v19 = vadd.f32 %v4839_v3, %v3251_v43  ;;  %v3343_v25 = vsel %vm842_vm5, %v3305_v41, 0.0  ;;  %v3292_v9 = vmax.f32 %v3272_v31, 0.0  ;;  %v4841_v15 = vld [vmem:[%s7010_s29 + $0x88] sm:$0xff] }
0x12c2   :  { %v3310_v30 = vmul.f32 %v4840_v12, %v3290_v28  ;;  %v3273_v16 = vadd.f32 %v4841_v15, %v3251_v43  ;;  %v3309_v17 = vmul.f32 %v4840_v12, %v3289_v32 }
0x12c3   :  { %v3340_v44 = vsel %vm366_vm3, %v3304_v56, 0.0  ;;  %v3291_v37 = vmax.f32 %v3271_v19, 0.0  ;;  %v3312_v5 = vmul.f32 %v4840_v12, %v3292_v9 }
0x12c4   :  { %v3358_v53 = vsel %vm842_vm5, %v3310_v30, 0.0  ;;  %v3293_v24 = vmax.f32 %v3273_v16, 0.0  ;;  %v3355_v20 = vsel %vm366_vm3, %v3309_v17, 0.0 }
0x12c5   :  { %3332 = vadd.xlane.f32.xlu0 %v3331_v51  ;;  %3350 = vadd.xlane.f32.xlu1 %v3349_v36  ;;  %v3274_v51 = vadd.f32 %v4842_v46, %v3251_v43  ;;  %v3275_v36 = vadd.f32 %v4843_v62, %v3251_v43  ;;  %v3311_v10 = vmul.f32 %v4840_v12, %v3291_v37  ;;  %v3364_v52 = vsel %vm366_vm3, %v3312_v5, 0.0 }
0x12c7   :  { %v3294_v39 = vmax.f32 %v3274_v51, 0.0  ;;  %v3295_v55 = vmax.f32 %v3275_v36, 0.0  ;;  %v3361_v18 = vsel %vm366_vm3, %v3311_v10, 0.0 }
0x12c9   :  { %3347 = vadd.xlane.f32.xlu0 %v3346_v60  ;;  %3338 = vadd.xlane.f32.xlu1 %v3337_v33  ;;  %v3313_v60 = vmul.f32 %v4840_v12, %v3293_v24  ;;  %v3314_v13 = vmul.f32 %v4840_v12, %v3294_v39  ;;  %v3315_v33 = vmul.f32 %v4840_v12, %v3295_v55 }
0x12cb   :  { %v3367_v38 = vsel %vm366_vm3, %v3313_v60, 0.0  ;;  %v3370_v43 = vsel %vm366_vm3, %v3314_v13, 0.0  ;;  %v3373_v41 = vsel %vm842_vm5, %v3315_v33, 0.0 }
0x12cd   :  { %3353 = vadd.xlane.f32.xlu0 %v3352_v35  ;;  %3344 = vadd.xlane.f32.xlu1 %v3343_v25 }
0x12d1   :  { %3341 = vadd.xlane.f32.xlu0 %v3340_v44  ;;  %3359 = vadd.xlane.f32.xlu1 %v3358_v53 }
0x12d5   :  { %3356 = vadd.xlane.f32.xlu0 %v3355_v20  ;;  %3365 = vadd.xlane.f32.xlu1 %v3364_v52 }
0x12d9   :  { %3362 = vadd.xlane.f32.xlu0 %v3361_v18  ;;  %3368 = vadd.xlane.f32.xlu1 %v3367_v38 }
0x12dd   :  { %3371 = vadd.xlane.f32.xlu0 %v3370_v43  ;;  %3374 = vadd.xlane.f32.xlu1 %v3373_v41 }
0x12f3   :  { %3052 = vrot.lane.b32.xlu0 %v6547_v61, %s4895_s2 }
0x1346   :  { %v3321_v28 = vpop.xlane.xlu0 %3320  ;;  %v3318_v6 = vpop.xlane.xlu1 %3317 }
0x1347   :  { %v3376_v31 = vmax.f32 %v3318_v6, %v3321_v28 }
0x134a   :  { %v3324_v35 = vpop.xlane.xlu0 %3323  ;;  %v3327_v32 = vpop.xlane.xlu1 %3326 }
0x134b   :  { %v3377_v56 = vmax.f32 %v3376_v31, %v3324_v35 }
0x134d   :  { %v3378_v3 = vmax.f32 %v3377_v56, %v3327_v32 }
0x134e   :  { %v3330_v19 = vpop.xlane.xlu0 %3329  ;;  %v6682_v12 = vpop.xlane.xlu1 %3335 }
0x134f   :  { %v3379_v25 = vsel %vm894_vm6, %v3330_v19, -inf }
0x1350   :  { %v3380_v30 = vmax.f32 %v3378_v3, %v3379_v25 }
0x1352   :  { %v3381_v9 = vrot.slane %v3380_v30, 4  ;;  %v6684_v15 = vpop.xlane.xlu0 %3332  ;;  %v6686_v16 = vpop.xlane.xlu1 %3350 }
0x1353   :  { %v3387_v5 = vmax.f32 %v6684_v15, %v6682_v12 }
0x1354   :  { %v3382_v44 = vmax.f32 %v3380_v30, %v3381_v9 }
0x1356   :  { %v3383_v61 = vrot.slane %v3382_v44, 2  ;;  %v6688_v17 = vpop.xlane.xlu0 %3347  ;;  %v6690_v37 = vpop.xlane.xlu1 %3338 }
0x1357   :  { %v3388_v36 = vmax.f32 %v3387_v5, %v6690_v37  ;;  %v3398_v18 = vmax.f32 %v6688_v17, %v6686_v16 }
0x1358   :  { %v3384_v46 = vmax.f32 %v3382_v44, %v3383_v61 }
0x135a   :  { %v3385_v51 = vrot.slane %v3384_v46, 1  ;;  %v6692_v53 = vpop.xlane.xlu0 %3353  ;;  %v6696_v24 = vpop.xlane.xlu1 %3344 }
0x135b   :  { %v3390_v41 = vsel %vm894_vm6, %v6696_v24, -inf }
0x135c   :  { %v3386_v62 = vmax.f32 %v3384_v46, %v3385_v51 }
0x135e   :  { %v3420_v20 = vsub.f32 %v3318_v6, %v3386_v62  ;;  %v3421_v10 = vsub.f32 %v3321_v28, %v3386_v62  ;;  %v3422_v39 = vsub.f32 %v3324_v35, %v3386_v62  ;;  %v6699_v52 = vpop.xlane.xlu0 %3341  ;;  %v3423_v60 = vsub.f32 %v3327_v32, %v3386_v62  ;;  %v6703_v13 = vpop.xlane.xlu1 %3359 }
0x135f   :  { %v3424_v55 = vsub.f32 %v3330_v19, %v3386_v62  ;;  %v3389_v38 = vmax.f32 %v3388_v36, %v6699_v52  ;;  %v3399_v28 = vmax.f32 %v3398_v18, %v6692_v53  ;;  %v3401_v30 = vsel %vm894_vm6, %v6703_v13, -inf }
0x1360   :  { %v3440_v33 = vmul.f32 1.442695, %v3420_v20  ;;  %v3442_v43 = vmul.f32 1.442695, %v3421_v10  ;;  %v3444_v31 = vmul.f32 1.442695, %v3422_v39 }
0x1361   :  { %v3391_v6 = vmax.f32 %v3389_v38, %v3390_v41  ;;  %v3448_v35 = vmul.f32 1.442695, %v3424_v55  ;;  %v3446_v32 = vmul.f32 1.442695, %v3423_v60 }
0x1362   :  { %4722 = vpow2.f32 %v3440_v33  ;;  %v6709_v56 = vpop.xlane.xlu0 %3356  ;;  %v6712_v25 = vpop.xlane.xlu1 %3365 }
0x1363   :  { %4724 = vpow2.f32 %v3442_v43  ;;  %v3392_v3 = vrot.slane %v3391_v6, 4  ;;  %v3400_v19 = vmax.f32 %v3399_v28, %v6709_v56 }
0x1364   :  { %4726 = vpow2.f32 %v3444_v31 }
0x1365   :  { %v3393_v9 = vmax.f32 %v3391_v6, %v3392_v3  ;;  %v3402_v44 = vmax.f32 %v3400_v19, %v3401_v30  ;;  %4728 = vpow2.f32 %v3448_v35 }
0x1366   :  { %v6716_v61 = vpop.xlane.xlu0 %3362  ;;  %4730 = vpow2.f32 %v3446_v32  ;;  %v6718_v5 = vpop.xlane.xlu1 %3368 }
0x1367   :  { %v3394_v46 = vrot.slane %v3393_v9, 2  ;;  %v3403_v51 = vrot.slane %v3402_v44, 4  ;;  %v3409_v62 = vmax.f32 %v6716_v61, %v6712_v25 }
0x1369   :  { %v3395_v36 = vmax.f32 %v3393_v9, %v3394_v46  ;;  %v3404_v20 = vmax.f32 %v3402_v44, %v3403_v51  ;;  %v3410_v10 = vmax.f32 %v3409_v62, %v6718_v5 }
0x136a   :  { %v6723_v39 = vpop.xlane.xlu0 %3371  ;;  %v6725_v18 = vpop.xlane.xlu1 %3374 }
0x136b   :  { %v3396_v60 = vrot.slane %v3395_v36, 1  ;;  %v3405_v55 = vrot.slane %v3404_v20, 2  ;;  %v3411_v38 = vmax.f32 %v3410_v10, %v6723_v39  ;;  %v3412_v43 = vsel %vm894_vm6, %v6725_v18, -inf }
0x136c   :  { %v6728_v33 = vpop.eup %4722 }
0x136d   :  { %v6732_v41 = vpop.eup %4724  ;;  %v3397_v31 = vmax.f32 %v3395_v36, %v3396_v60  ;;  %v3406_v28 = vmax.f32 %v3404_v20, %v3405_v55  ;;  %v3413_v6 = vmax.f32 %v3411_v38, %v3412_v43 }
0x136e   :  { %v3480_v35 = vadd.f32 %v6732_v41, %v6728_v33  ;;  %v3053_v32 = vpop.permute.xlu0 %3052  ;;  %v6736_v3 = vpop.eup %4726 }
0x136f   :  { %v3425_v19 = vsub.f32 %v6684_v15, %v3397_v31  ;;  %v3426_v30 = vsub.f32 %v6682_v12, %v3397_v31  ;;  %v3427_v9 = vsub.f32 %v6690_v37, %v3397_v31  ;;  %v3428_v44 = vsub.f32 %v6699_v52, %v3397_v31  ;;  %4348 = vmatmul.mubr.msk.f32.vlgmr.msra.gmra.mrb[20].mxu0 %vm366_vm3, %v3053_v32  ;;  %v6743_v46 = vpop.eup %4728  ;;  %v4014_v12 = vld [vmem:[%s6943_s4 + $0x10] sm:$0xf] }
0x1370   :  { %v3481_v51 = vadd.f32 %v6736_v3, %v3480_v35  ;;  %v3429_v62 = vsub.f32 %v6696_v24, %v3397_v31  ;;  %v3407_v36 = vrot.slane %v3406_v28, 1  ;;  %v3414_v20 = vrot.slane %v3413_v6, 4  ;;  %4517 = vmatpush3.bf16.msra.mxu0 %v7066_v21  ;;  %4365 = vmatprep.mubr.msk.f32.mxu0 %vm4892_vm0, %v7036_v40  ;;  %v6753_v15 = vpop.eup %4730 }
0x1371   :  { %v3450_v37 = vmul.f32 1.442695, %v3425_v19  ;;  %v3452_v52 = vmul.f32 1.442695, %v3426_v30  ;;  %4524 = vmatprep.subr.bf16.mxu0 %v7037_v4  ;;  %v3454_v24 = vmul.f32 1.442695, %v3427_v9 }
0x1372   :  { %v3482_v10 = vadd.f32 %v6753_v15, %v3481_v51  ;;  %v3483_v60 = vsel %vm894_vm6, %v6743_v46, 0.0  ;;  %v3458_v21 = vmul.f32 1.442695, %v3429_v62  ;;  %v3408_v55 = vmax.f32 %v3406_v28, %v3407_v36 }
0x1373   :  { %4732 = vpow2.f32 %v3450_v37  ;;  %4366 = vmatmul.mubr.msk.f32.vlgmr.msra.gmra.mrb[22].mxu0 %vm292_vm2, %v4014_v12  ;;  %v3456_v43 = vmul.f32 1.442695, %v3428_v44  ;;  %v3415_v31 = vmax.f32 %v3413_v6, %v3414_v20 }
0x1374   :  { %v3484_v38 = vadd.f32 %v3483_v60, %v3482_v10  ;;  %4734 = vpow2.f32 %v3452_v52  ;;  %4526 = vmatpush3.bf16.msra.mxu0 %v5065_v23  ;;  %4387 = vmatprep.mubr.msk.f32.mxu0 %vm4892_vm0, %v7036_v40  ;;  %v3430_v35 = vsub.f32 %v6688_v17, %v3408_v55  ;;  %v3431_v32 = vsub.f32 %v6686_v16, %v3408_v55 }
0x1375   :  { %v3432_v19 = vsub.f32 %v6692_v53, %v3408_v55  ;;  %4527 = vmatprep.subr.bf16.mxu0 %v7037_v4  ;;  %4736 = vpow2.f32 %v3454_v24  ;;  %v3433_v30 = vsub.f32 %v6709_v56, %v3408_v55  ;;  %v3434_v9 = vsub.f32 %v6703_v13, %v3408_v55 }
0x1376   :  { %v3485_v28 = vrot.slane %v3484_v38, 4  ;;  %4738 = vpow2.f32 %v3458_v21  ;;  %v3460_v6 = vmul.f32 1.442695, %v3430_v35  ;;  %v3462_v23 = vmul.f32 1.442695, %v3431_v32 }
0x1377   :  { %4740 = vpow2.f32 %v3456_v43  ;;  %v3464_v51 = vmul.f32 1.442695, %v3432_v19  ;;  %v3416_v62 = vrot.slane %v3415_v31, 2  ;;  %v3468_v16 = vmul.f32 1.442695, %v3434_v9 }
0x1378   :  { %v3486_v44 = vadd.f32 %v3485_v28, %v3484_v38  ;;  %4529 = vmatpush3.bf16.msra.mxu0 %v5091_v27  ;;  %4742 = vpow2.f32 %v3460_v6  ;;  %v3466_v53 = vmul.f32 1.442695, %v3433_v30 }
0x1379   :  { %4744 = vpow2.f32 %v3462_v23  ;;  %v3417_v36 = vmax.f32 %v3415_v31, %v3416_v62 }
0x137a   :  { %v3487_v17 = vrot.slane %v3486_v44, 2  ;;  %4746 = vpow2.f32 %v3464_v51 }
0x137b   :  { %4388 = vmatmul.mubr.msk.f32.vlgmr.msra.gmra.mrb[24].mxu0 %vm366_vm3, %v6559_v59  ;;  %v3418_v13 = vrot.slane %v3417_v36, 1  ;;  %4748 = vpow2.f32 %v3468_v16 }
0x137c   :  { %v3488_v56 = vadd.f32 %v3487_v17, %v3486_v44  ;;  %4750 = vpow2.f32 %v3466_v53 }
0x137d   :  { %v6772_v20 = vpop.eup %4732  ;;  %v3419_v37 = vmax.f32 %v3417_v36, %v3418_v13 }
0x137e   :  { %v6774_v12 = vpop.eup %4734  ;;  %v3489_v27 = vrot.slane %v3488_v56, 1 }
0x137f   :  { %v3491_v52 = vadd.f32 %v6774_v12, %v6772_v20  ;;  %v6778_v10 = vpop.eup %4736  ;;  %v3435_v24 = vsub.f32 %v6716_v61, %v3419_v37  ;;  %v3436_v59 = vsub.f32 %v6712_v25, %v3419_v37  ;;  %v3437_v60 = vsub.f32 %v6718_v5, %v3419_v37 }
0x1380   :  { %v6783_v21 = vpop.eup %4738  ;;  %v3439_v38 = vsub.f32 %v6725_v18, %v3419_v37  ;;  %v3438_v31 = vsub.f32 %v6723_v39, %v3419_v37  ;;  %v3490_v28 = vadd.f32 %v3489_v27, %v3488_v56 }
0x1381   :  { %v3492_v55 = vadd.f32 %v6778_v10, %v3491_v52  ;;  %v6787_v43 = vpop.eup %4740  ;;  %v3470_v35 = vmul.f32 1.442695, %v3435_v24  ;;  %v3472_v32 = vmul.f32 1.442695, %v3436_v59  ;;  %v3494_v5 = vsel %vm894_vm6, %v6783_v21, 0.0 }
0x1382   :  { %v6790_v19 = vpop.eup %4742  ;;  %v3474_v30 = vmul.f32 1.442695, %v3437_v60  ;;  %v3478_v39 = vmul.f32 1.442695, %v3439_v38  ;;  %v3476_v23 = vmul.f32 1.442695, %v3438_v31 }
0x1383   :  { %v3493_v61 = vadd.f32 %v6787_v43, %v3492_v55  ;;  %v6793_v25 = vpop.eup %4744  ;;  %4752 = vpow2.f32 %v3470_v35 }
0x1384   :  { %v3502_v18 = vadd.f32 %v6793_v25, %v6790_v19  ;;  %4754 = vpow2.f32 %v3472_v32  ;;  %v6799_v6 = vpop.eup %4746 }
0x1385   :  { %v3495_v9 = vadd.f32 %v3494_v5, %v3493_v61  ;;  %v6801_v44 = vpop.eup %4748  ;;  %4756 = vrcp.f32 %v3490_v28 }
0x1386   :  { %v3503_v62 = vadd.f32 %v6799_v6, %v3502_v18  ;;  %v6804_v16 = vpop.eup %4750  ;;  %4758 = vpow2.f32 %v3474_v30  ;;  %v3505_v36 = vsel %vm894_vm6, %v6801_v44, 0.0 }
0x1387   :  { %v3496_v51 = vrot.slane %v3495_v9, 4  ;;  %4760 = vpow2.f32 %v3478_v39 }
0x1388   :  { %v3504_v53 = vadd.f32 %v6804_v16, %v3503_v62  ;;  %4762 = vpow2.f32 %v3476_v23 }
0x1389   :  { %v3497_v17 = vadd.f32 %v3496_v51, %v3495_v9 }
0x138a   :  { %v3506_v13 = vadd.f32 %v3505_v36, %v3504_v53 }
0x138b   :  { %v3498_v56 = vrot.slane %v3497_v17, 2 }
0x138c   :  { %v3507_v52 = vrot.slane %v3506_v13, 4 }
0x138d   :  { %v6809_v37 = vpop.eup %4752  ;;  %v3499_v27 = vadd.f32 %v3498_v56, %v3497_v17 }
0x138e   :  { %v6811_v24 = vpop.eup %4754  ;;  %v3508_v60 = vadd.f32 %v3507_v52, %v3506_v13 }
0x138f   :  { %v3500_v59 = vrot.slane %v3499_v27, 1  ;;  %v3513_v55 = vadd.f32 %v6811_v24, %v6809_v37  ;;  %v4757_v38 = vpop.eup %4756 }
0x1390   :  { %v6815_v31 = vpop.eup %4758  ;;  %v3509_v32 = vrot.slane %v3508_v60, 2  ;;  %v3528_v9 = vmul.f32 %v4757_v38, %v6728_v33  ;;  %v3529_v18 = vmul.f32 %v4757_v38, %v6732_v41  ;;  %v3530_v13 = vmul.f32 %v4757_v38, %v6736_v3 }
0x1391   :  { %v3501_v35 = vadd.f32 %v3500_v59, %v3499_v27  ;;  %v6817_v28 = vpop.eup %4760  ;;  %v3514_v61 = vadd.f32 %v6815_v31, %v3513_v55 }
0x1392   :  { %v6820_v5 = vpop.eup %4762  ;;  %v3510_v30 = vadd.f32 %v3509_v32, %v3508_v60  ;;  %v3516_v51 = vsel %vm894_vm6, %v6817_v28, 0.0  ;;  %v3548_v53 = vmul.f32 %v6390_v63, %v3528_v9  ;;  %v3549_v36 = vmul.f32 %v6396_v34, %v3529_v18 }
0x1393   :  { %4764 = vrcp.f32 %v3501_v35  ;;  %v3515_v39 = vadd.f32 %v6820_v5, %v3514_v61  ;;  %v3531_v60 = vmul.f32 %v4757_v38, %v6753_v15  ;;  %v3550_v55 = vmul.f32 %v6416_v42, %v3530_v13  ;;  %v4845_v15 = vld [vmem:[%s7011_s3 + $0x30] sm:$0xff] }
0x1394   :  { %v3511_v23 = vrot.slane %v3510_v30, 1  ;;  %v3568_v33 = vsel %vm366_vm3, %v3548_v53, 0.0  ;;  %v3569_v41 = vsel %vm366_vm3, %v3549_v36, 0.0 }
0x1395   :  { %v3517_v62 = vadd.f32 %v3516_v51, %v3515_v39  ;;  %v3570_v32 = vadd.f32 %v3569_v41, %v3568_v33  ;;  %v3571_v51 = vsel %vm366_vm3, %v3550_v55, 0.0 }
0x1396   :  { %v3512_v17 = vadd.f32 %v3511_v23, %v3510_v30  ;;  %v4844_v30 = vld [vmem:[%s7011_s3 + $0x28] sm:$0xff]  ;;  %v3551_v23 = vmul.f32 %v6437_v57, %v3531_v60 }
0x1397   :  { %v3518_v56 = vrot.slane %v3517_v62, 4  ;;  %v3572_v36 = vadd.f32 %v3571_v51, %v3570_v32 }
0x1398   :  { %4766 = vrcp.f32 %v3512_v17 }
0x1399   :  { %v3519_v27 = vadd.f32 %v3518_v56, %v3517_v62 }
0x139b   :  { %v3520_v52 = vrot.slane %v3519_v27, 2 }
0x139d   :  { %v4765_v59 = vpop.eup %4764  ;;  %v3521_v61 = vadd.f32 %v3520_v52, %v3519_v27  ;;  %v4847_v52 = vld [vmem:[%s7011_s3 + $0x50] sm:$0xff] }
0x139e   :  { %v3533_v35 = vmul.f32 %v4765_v59, %v6772_v20  ;;  %v3534_v63 = vmul.f32 %v4765_v59, %v6774_v12  ;;  %v3535_v34 = vmul.f32 %v4765_v59, %v6778_v10  ;;  %v3536_v3 = vmul.f32 %v4765_v59, %v6787_v43  ;;  %v4846_v20 = vld [vmem:[%s7011_s3 + $0x38] sm:$0xff] }
0x139f   :  { %v3532_v10 = vmul.f32 %v4757_v38, %v6743_v46  ;;  %v3522_v18 = vrot.slane %v3521_v61, 1  ;;  %v3537_v39 = vmul.f32 %v4765_v59, %v6783_v21 }
0x13a0   :  { %v3553_v9 = vmul.f32 %v4844_v30, %v3533_v35  ;;  %v3554_v42 = vmul.f32 %v4845_v15, %v3534_v63  ;;  %v3555_v12 = vmul.f32 %v4846_v20, %v3535_v34  ;;  %v3556_v43 = vmul.f32 %v6426_v14, %v3536_v3  ;;  %v4850_v63 = vld [vmem:[%s7011_s3 + $0x68] sm:$0xff] }
0x13a1   :  { %v3523_v27 = vadd.f32 %v3522_v18, %v3521_v61  ;;  %v3557_v41 = vmul.f32 %v6448_v26, %v3537_v39  ;;  %v3552_v55 = vmul.f32 %v6462_v0, %v3532_v10  ;;  %v3573_v35 = vsel %vm366_vm3, %v3551_v23, 0.0 }
0x13a2   :  { %v3583_v62 = vsel %vm366_vm3, %v3553_v9, 0.0  ;;  %v3584_v17 = vsel %vm366_vm3, %v3554_v42, 0.0  ;;  %v4767_v53 = vpop.eup %4766  ;;  %v3586_v13 = vsel %vm366_vm3, %v3555_v12, 0.0  ;;  %v3588_v33 = vsel %vm366_vm3, %v3556_v43, 0.0 }
0x13a3   :  { %v3585_v56 = vadd.f32 %v3584_v17, %v3583_v62  ;;  %v3538_v46 = vmul.f32 %v4767_v53, %v6790_v19  ;;  %v3539_v14 = vmul.f32 %v4767_v53, %v6793_v25  ;;  %v3540_v21 = vmul.f32 %v4767_v53, %v6799_v6  ;;  %v4848_v19 = vld [vmem:[%s7011_s3 + $0x58] sm:$0xff]  ;;  %v4849_v6 = vld [vmem:[%s7011_s3 + $0x60] sm:$0xff]  ;;  %s4020_s3 = sld [smem:[#allocation3 + $0x4]] }
0x13a4   :  { %v3541_v57 = vmul.f32 %v4767_v53, %v6804_v16  ;;  %4768 = vrcp.f32 %v3523_v27  ;;  %v3542_v60 = vmul.f32 %v4767_v53, %v6801_v44  ;;  %v3574_v61 = vadd.f32 %v3573_v35, %v3572_v36 }
0x13a5   :  { %v3587_v38 = vadd.f32 %v3586_v13, %v3585_v56  ;;  %v3558_v59 = vmul.f32 %v4847_v52, %v3538_v46  ;;  %v3559_v25 = vmul.f32 %v4848_v19, %v3539_v14  ;;  %v3560_v16 = vmul.f32 %v4849_v6, %v3540_v21 }
0x13a6   :  { %v3561_v34 = vmul.f32 %v4850_v63, %v3541_v57  ;;  %v3562_v44 = vmul.f32 %v6456_v29, %v3542_v60  ;;  %v3590_v0 = vsel %vm842_vm5, %v3557_v41, 0.0  ;;  %v3575_v20 = vsel %vm842_vm5, %v3552_v55, 0.0 }
0x13a7   :  { %v3589_v26 = vadd.f32 %v3588_v33, %v3587_v38  ;;  %v3598_v3 = vsel %vm366_vm3, %v3558_v59, 0.0  ;;  %v3599_v32 = vsel %vm366_vm3, %v3559_v25, 0.0  ;;  %v3601_v9 = vsel %vm366_vm3, %v3560_v16, 0.0 }
0x13a8   :  { %v3600_v30 = vadd.f32 %v3599_v32, %v3598_v3  ;;  %v3603_v12 = vsel %vm366_vm3, %v3561_v34, 0.0  ;;  %v3576_v10 = vadd.f32 %v3575_v20, %v3574_v61  ;;  %v3605_v18 = vsel %vm842_vm5, %v3562_v44, 0.0 }
0x13a9   :  { %v3591_v42 = vadd.f32 %v3590_v0, %v3589_v26 }
0x13aa   :  { %v3602_v15 = vadd.f32 %v3601_v9, %v3600_v30  ;;  %v3577_v36 = vrot.slane %v3576_v10, 4 }
0x13ab   :  { %v3592_v23 = vrot.slane %v3591_v42, 4 }
0x13ac   :  { %v3604_v43 = vadd.f32 %v3603_v12, %v3602_v15  ;;  %v3578_v38 = vadd.f32 %v3577_v36, %v3576_v10 }
0x13ad   :  { %v3593_v21 = vadd.f32 %v3592_v23, %v3591_v42 }
0x13ae   :  { %v4769_v39 = vpop.eup %4768  ;;  %v3606_v51 = vadd.f32 %v3605_v18, %v3604_v43 }
0x13af   :  { %v3546_v62 = vmul.f32 %v4769_v39, %v6820_v5  ;;  %v3543_v17 = vmul.f32 %v4769_v39, %v6809_v37  ;;  %v3544_v29 = vmul.f32 %v4769_v39, %v6811_v24  ;;  %v3545_v53 = vmul.f32 %v4769_v39, %v6815_v31 }
0x13b0   :  { %v3607_v56 = vrot.slane %v3606_v51, 4  ;;  %v3547_v13 = vmul.f32 %v4769_v39, %v6817_v28  ;;  %v3594_v41 = vrot.slane %v3593_v21, 2 }
0x13b1   :  { %v3563_v27 = vmul.f32 %v6478_v45, %v3543_v17  ;;  %v3564_v46 = vmul.f32 %v6484_v2, %v3544_v29  ;;  %v3565_v14 = vmul.f32 %v6490_v58, %v3545_v53  ;;  %v3566_v57 = vmul.f32 %v6496_v22, %v3546_v62 }
0x13b2   :  { %v3608_v5 = vadd.f32 %v3607_v56, %v3606_v51  ;;  %v3567_v33 = vmul.f32 %v6504_v11, %v3547_v13  ;;  %v3579_v58 = vrot.slane %v3578_v38, 2  ;;  %v3595_v19 = vadd.f32 %v3594_v41, %v3593_v21 }
0x13b3   :  { %v3613_v37 = vsel %vm366_vm3, %v3563_v27, 0.0  ;;  %v3614_v24 = vsel %vm366_vm3, %v3564_v46, 0.0  ;;  %v3616_v28 = vsel %vm366_vm3, %v3565_v14, 0.0  ;;  %v3618_v2 = vsel %vm366_vm3, %v3566_v57, 0.0 }
0x13b4   :  { %v3615_v31 = vadd.f32 %v3614_v24, %v3613_v37  ;;  %v3609_v52 = vrot.slane %v3608_v5, 2  ;;  %v3620_v22 = vsel %vm842_vm5, %v3567_v33, 0.0  ;;  %v3580_v16 = vadd.f32 %v3579_v58, %v3578_v38 }
0x13b5   :  { %v3596_v55 = vrot.slane %v3595_v19, 1  ;;  %v3135_v13 = vsel %vm6550_vm12, %v6543_v7, %v6540_v47  ;;  %v3954_v37 = vstv %s4020_s3  ;;  %v4851_v47 = vld [vmem:[%s6956_s17] ss:$0 sm:$0xff] }
0x13b6   :  { %v3617_v45 = vadd.f32 %v3616_v28, %v3615_v31  ;;  %v3610_v6 = vadd.f32 %v3609_v52, %v3608_v5  ;;  %v3581_v11 = vrot.slane %v3580_v16, 1  ;;  %vm3955_vm13 = vcmp.lt.s32.totalorder %v5137_v1, %v3954_v37 }
0x13b7   :  { %v3597_v34 = vadd.f32 %v3596_v55, %v3595_v19 }
0x13b8   :  { %v3619_v59 = vadd.f32 %v3618_v2, %v3617_v45  ;;  %v3611_v35 = vrot.slane %v3610_v6, 1  ;;  %v3582_v61 = vadd.f32 %v3581_v11, %v3580_v16 }
0x13ba   :  { %v3621_v25 = vadd.f32 %v3620_v22, %v3619_v59  ;;  %v3612_v32 = vadd.f32 %v3611_v35, %v3610_v6  ;;  %v3707_v44 = vsel %vm1223_vm7, %v3597_v34, %v3582_v61 }
0x13bc   :  { %v3622_v60 = vrot.slane %v3621_v25, 4  ;;  %v3708_v0 = vsel %vm1225_vm8, %v3612_v32, %v3707_v44 }
0x13be   :  { %v3623_v26 = vadd.f32 %v3622_v60, %v3621_v25 }
0x13c0   :  { %v3624_v63 = vrot.slane %v3623_v26, 2 }
0x13c2   :  { %v3625_v3 = vadd.f32 %v3624_v63, %v3623_v26 }
0x13c4   :  { %v3626_v30 = vrot.slane %v3625_v3, 1 }
0x13c6   :  { %v3627_v9 = vadd.f32 %v3626_v30, %v3625_v3 }
0x13c8   :  { %v3709_v15 = vsel %vm1227_vm9, %v3627_v9, %v3708_v0 }
0x13c9   :  { %4377 = vmatmul.mubr.msk.f32.vlgmr.msra.gmra.mrb[22].mxu1 %vm366_vm3, %v3709_v15 }
0x13ca   :  { %4532 = vmatpush3.bf16.msra.mxu1 %v5308_v48  ;;  %4398 = vmatprep.mubr.msk.f32.mxu1 %vm4892_vm0, %v7036_v40 }
0x13cb   :  { %4533 = vmatprep.subr.bf16.mxu1 %v7037_v4 }
0x13ce   :  { %4535 = vmatpush3.bf16.msra.mxu1 %v5318_v49 }
0x1442   :  { %v3122_v42 = vpop.f32.mrb[20].mxu0 }
0x1443   :  { %v3123_v20 = vadd.f32 %v6523_v54, %v3122_v42  ;;  %v4349_v12 = vpop.f32.mrb[21].mxu0 }
0x1445   :  { %v3131_v10 = vsel %vm6550_vm12, %v3123_v20, 0.0 }
0x1446   :  { %3133 = vst [vmem:[#allocation4 + $0xc] sm:$0xf] %v3131_v10  ;;  %v3699_v43 = vpop.f32.mrb[22].mxu0 }
0x1447   :  { %v4367_v18 = vpop.f32.mrb[23].mxu0 }
0x144e   :  { %v3848_v39 = vpop.f32.mrb[24].mxu0 }
0x144f   :  { %v4389_v23 = vpop.f32.mrb[25].mxu0 }
0x149c   :  { %v3778_v48 = vpop.f32.mrb[22].mxu1 }
0x149d   :  { %v3779_v51 = vadd.f32 %v3778_v48, %v3699_v43  ;;  %v4378_v62 = vpop.f32.mrb[23].mxu1 }
0x149f   :  { %v3852_v40 = vadd.f32 %v3848_v39, %v3779_v51 }
0x14a1   :  { %v3853_v4 = vadd.f32 %v6531_v50, %v3852_v40 }
0x14a3   :  { %4770 = vtanh.f32 %v3853_v4  ;;  %v4018_v54 = vmul.f32 -1.442695, %v3853_v4 }
0x14a5   :  { %4772 = vpow2.f32 %v4018_v54 }
0x14ad   :  { %v4771_v49 = vpop.eup %4770 }
0x14ae   :  { %3863 = vrot.lane.b32.xlu1 %v4771_v49, %s4894_s10 }
0x14af   :  { %v4773_v17 = vpop.eup %4772 }
0x14b0   :  { %v3857_v29 = vadd.f32 1.0, %v4773_v17 }
0x14b2   :  { %4774 = vrcp.f32 %v3857_v29 }
0x14bc   :  { %v4775_v53 = vpop.eup %4774 }
0x14bd   :  { %v3861_v50 = vmul.f32 %v4775_v53, %v3135_v13 }
0x1520   :  { %v3864_v36 = vpop.permute.xlu1 %3863 }
0x1521   :  { %v3866_v56 = vmul.f32 %v4775_v53, %v3864_v36 }
0x1523   :  { %3868 = vrot.lane.b32.xlu1 %v3866_v56, %s4895_s2 }
0x1595   :  { %v3869_v27 = vpop.permute.xlu1 %3868 }
0x1596   :  { %v3871_v46 = vadd.f32 %v3869_v27, %v3861_v50 }
0x1598   :  { %4776 = vtanh.f32 %v3871_v46 }
0x15a2   :  { %v4777_v14 = vpop.eup %4776 }
0x15a3   :  { %3874 = vrot.lane.b32.xlu0 %v4777_v14, %s4894_s10 }
0x1615   :  { %v3875_v21 = vpop.permute.xlu0 %3874 }
0x1616   :  { %v3877_v57 = vmul.f32 %v4775_v53, %v3875_v21 }
0x1618   :  { %3879 = vrot.lane.b32.xlu1 %v3877_v57, %s4895_s2  ;;  %s4864_s2 = scalar_lea.vmem %s3967_s30, 320 }
0x1619   :  { %p4865_p5 = scmp.ne.s32.totalorder %s3967_s30, %s4864_s2  ;;  %p4870_p7 = scmp.lt.s32.totalorder %s4864_s2, %s4864_s2 }
0x161b   :  { %p4871_p8 = por %p4870_p7, %p4869_p6 }
0x161d   :  { %p4872_p9 = pnand %p4871_p8, %p4865_p5 }
0x168a   :  { %v3880_v5 = vpop.permute.xlu1 %3879 }
0x168b   :  { %4399 = vmatmul.mubr.msk.f32.vlgmr.msra.gmra.mrb[24].mxu1 %vm366_vm3, %v3880_v5 }
0x175e   :  { %v3949_v8 = vpop.f32.mrb[24].mxu1 }
0x175f   :  { %v3950_v7 = vadd.f32 %v4851_v47, %v3949_v8  ;;  %v4400_v24 = vpop.f32.mrb[25].mxu1 }
0x1761   :  { %v3958_v38 = vsel %vm3955_vm13, %v3950_v7, 0.0 }
0x1762   :  { %3960 = vst [vmem:[#allocation4 + $0x10] sm:$0xf] %v3958_v38 }
0x1763   :  { %4875 = shalt.err (!%p4872_p9)
}
0x1764   :  { %s4876_s20 = scalar_lea.hbm %s6957_s18, 320 }
0x1765   :  { %p4877_p10 = scmp.ne.s32.totalorder %s6957_s18, %s4876_s20  ;;  %p4880_p11 = scmp.lt.u32.totalorder %s4876_s20, %s6957_s18 }
0x1767   :  { %p4882_p12 = pnand %p4880_p11, %p4877_p10 }
0x1769   :  { %4885 = shalt.err (!%p4882_p12)
}
0x176a   :  { %s4899_s29 = smov 4  }
0x176b   :  { %3972 = dma.vmem_to_hbm [thread:$0]  %s3967_s30, 320, %s6957_s18, [#allocation5], %s4894_s10, %s4894_s10, %s4899_s29  }
0x176c   :  { %4888 = dma.done.wait [#allocation5], 320  }
0x176d   :  { %4889 = vsyncadd [#allocation5], 4294966976 }
0x176e   :  { %3976 = vsyncpa [#allocation5], 1 }

</bundles_post_ra>
